<compile_context>
chip_gen: v7x
topology: tpu7x:2x2x1
jax: 0.10.0
libtpu: 0.0.40
codegen_flags: <defaults>
</compile_context>

<pallas_src>
import functools

import jax
import jax.numpy as jnp
from jax.experimental import pallas as pl
from jax.experimental.pallas import tpu as pltpu

CPAD = 128   # lane-dense channel padding used for all inter-layer activations


# ------------------------------- helpers -----------------------------------

def _round_up(x, m):
    return (x + m - 1) // m * m


def _choose_tm(m):
    """Row tile: >=2 M blocks when possible (v7x has 2 TCs), capped at 256."""
    if m <= 8:
        return 8
    return min(256, _round_up((m + 1) // 2, 8))


# ----------------------------- Pallas kernels ------------------------------

def _fused_matmul_kernel(*refs, apply_relu, has_residual):
    """o = [relu]((x @ w) * scale + shift [+ residual]); full K in-block."""
    if has_residual:
        x_ref, w_ref, scale_ref, shift_ref, res_ref, o_ref = refs
    else:
        x_ref, w_ref, scale_ref, shift_ref, o_ref = refs
    acc = jnp.dot(x_ref[...], w_ref[...], preferred_element_type=jnp.float32)
    acc = acc * scale_ref[...] + shift_ref[...]
    if has_residual:
        acc = acc + res_ref[...].astype(jnp.float32)
    if apply_relu:
        acc = jnp.maximum(acc, 0.0)
    o_ref[...] = acc.astype(o_ref.dtype)


def _head_kernel(x_ref, w_ref, b_ref, o_ref):
    """Fused global-average-pool + linear: mean over spatial axis, matmul, bias."""
    feat = jnp.mean(x_ref[...].astype(jnp.float32), axis=1)          # (N, C)
    o_ref[...] = jnp.dot(feat, w_ref[...],
                         preferred_element_type=jnp.float32) + b_ref[...]


# --------------------------- fused matmul wrapper ---------------------------

def fused_matmul(x, w_p, scale_p, shift_p, residual=None, apply_relu=True):
    """out = [relu]((x @ w_p) * scale_p + shift_p [+ residual]).

    x:        (M, K) bf16 activations (K <= Kp; zero-padded here if needed).
    w_p:      (Kp, Np) bf16, prepared ONCE (BN folded, transposed, padded).
    scale_p / shift_p: (1, Np) f32 folded BatchNorm affine (zero-padded lanes).
    residual: (M, Np) bf16 or None.
    Returns (M, Np) bf16 (channel lanes stay padded; only M rows are sliced).
    """
    M, K = x.shape
    Kp, Np = w_p.shape
    assert K <= Kp and Np % 128 == 0

    tm = _choose_tm(M)
    Mp = _round_up(M, tm)
    tn = 128

    x_p = x.astype(jnp.bfloat16)
    if (Mp, Kp) != (M, K):
        x_p = jnp.pad(x_p, ((0, Mp - M), (0, Kp - K)))

    args = [x_p, w_p, scale_p, shift_p]
    in_specs = [
        pl.BlockSpec((tm, Kp), lambda i, j: (i, 0)),
        pl.BlockSpec((Kp, tn), lambda i, j: (0, j)),
        pl.BlockSpec((1, tn), lambda i, j: (0, j)),
        pl.BlockSpec((1, tn), lambda i, j: (0, j)),
    ]
    if residual is not None:
        res_p = residual.astype(jnp.bfloat16)
        if Mp != M:
            res_p = jnp.pad(res_p, ((0, Mp - M), (0, 0)))
        args.append(res_p)
        in_specs.append(pl.BlockSpec((tm, tn), lambda i, j: (i, j)))

    kernel = functools.partial(_fused_matmul_kernel,
                               apply_relu=apply_relu,
                               has_residual=residual is not None)
    out = pl.pallas_call(
        kernel,
        out_shape=jax.ShapeDtypeStruct((Mp, Np), jnp.bfloat16),
        grid=(Mp // tm, Np // tn),
        in_specs=in_specs,
        out_specs=pl.BlockSpec((tm, tn), lambda i, j: (i, j)),
        compiler_params=pltpu.CompilerParams(
            dimension_semantics=("parallel", "parallel"),
            vmem_limit_bytes=16 * 1024 * 1024),
    )(*args)
    if Mp != M:
        out = out[:M]
    return out


# ------------------------------- conv helpers ------------------------------

def _fold_bn(gamma, beta, mean, var, eps=1e-5):
    scale = gamma / jnp.sqrt(var + eps)
    shift = beta - mean * scale
    return scale, shift


def _im2col3x3(x, stride):
    """x NHWC bf16 -> (N, Ho, Wo, 9*C) patches, pad=1."""
    n, h, w, c = x.shape
    xp = jnp.pad(x, ((0, 0), (1, 1), (1, 1), (0, 0)))
    ho = (h + 2 - 3) // stride + 1
    wo = (w + 2 - 3) // stride + 1
    cols = []
    for kh in range(3):
        for kw in range(3):
            cols.append(xp[:, kh:kh + (ho - 1) * stride + 1:stride,
                           kw:kw + (wo - 1) * stride + 1:stride, :])
    return jnp.concatenate(cols, axis=-1), ho, wo


def conv3x3_bn(x, cw, stride=1, residual=None, apply_relu=True):
    """3x3 conv (pad=1, no bias) + BN [+ residual] [+ relu]; bf16 in/out."""
    patches, ho, wo = _im2col3x3(x.astype(jnp.bfloat16), stride)
    n = x.shape[0]
    k = patches.shape[-1]
    x2d = patches.reshape(n * ho * wo, k)
    res2d = None
    if residual is not None:
        res2d = residual.reshape(n * ho * wo, -1)
    out2d = fused_matmul(x2d, cw['w2d'], cw['scale'], cw['shift'],
                         residual=res2d, apply_relu=apply_relu)
    return out2d.reshape(n, ho, wo, -1)


def conv1x1_bn(x, cw, stride):
    """1x1 strided shortcut conv + BN (no relu)."""
    # TODO(synk): fold the stride into the kernel's index_map / pl.ds.
    xs = x[:, ::stride, ::stride, :]
    n, ho, wo, cin = xs.shape
    out2d = fused_matmul(xs.reshape(n * ho * wo, cin), cw['w2d'],
                         cw['scale'], cw['shift'],
                         residual=None, apply_relu=False)
    return out2d.reshape(n, ho, wo, -1)


def maxpool3x3_s2_p1(x):
    """3x3/stride-2/pad-1 max pool as a pairwise max tree in XLA.
    Inputs are post-ReLU (>=0) so -inf spatial padding never escapes, and the
    zero-valued padded channel lanes stay exactly 0."""
    n, h, w, c = x.shape
    xp = jnp.pad(x, ((0, 0), (1, 1), (1, 1), (0, 0)),
                 constant_values=-jnp.inf)
    ho = (h + 2 - 3) // 2 + 1
    wo = (w + 2 - 3) // 2 + 1
    out = None
    for kh in range(3):
        for kw in range(3):
            sl = xp[:, kh:kh + (ho - 1) * 2 + 1:2,
                    kw:kw + (wo - 1) * 2 + 1:2, :]
            out = sl if out is None else jnp.maximum(out, sl)
    return out


def head_pool_linear(h, head_p):
    """Fused global-average-pool + Linear (single Pallas call)."""
    n, hh, ww, c = h.shape
    x3 = h.reshape(n, hh * ww, c)
    w = head_p['w']                         # (CPAD, ncp) f32, prepared once
    b = head_p['b']                         # (1, nc)  f32, unpadded (nc static)
    nc = b.shape[1]
    ncp = w.shape[1]
    b_p = jnp.pad(b, ((0, 0), (0, ncp - nc)))
    out = pl.pallas_call(
        _head_kernel,
        out_shape=jax.ShapeDtypeStruct((n, ncp), jnp.float32),
        grid=(1,),
        in_specs=[
            pl.BlockSpec(x3.shape, lambda i: (0, 0, 0)),
            pl.BlockSpec(w.shape, lambda i: (0, 0)),
            pl.BlockSpec(b_p.shape, lambda i: (0, 0)),
        ],
        out_specs=pl.BlockSpec((n, ncp), lambda i: (0, 0)),
        compiler_params=pltpu.CompilerParams(
            dimension_semantics=("arbitrary",)),
    )(x3, w, b_p)
    return out[:, :nc]


# ------------------------------- model ------------------------------------

def basic_block(x, blk, stride):
    h = conv3x3_bn(x, blk['conv1'], stride=stride, apply_relu=True)
    if 'shortcut' in blk:
        sc = conv1x1_bn(x, blk['shortcut'], stride)
    else:
        sc = x                                   # identity shortcut
    # relu(bn2(conv2(h)) + shortcut)
    return conv3x3_bn(h, blk['conv2'], stride=1, residual=sc, apply_relu=True)


def resnet_forward(prepared, x_nchw):
    x = jnp.transpose(x_nchw, (0, 2, 3, 1)).astype(jnp.bfloat16)   # NCHW->NHWC
    h = conv3x3_bn(x, prepared['stem'], stride=1, apply_relu=True)
    h = maxpool3x3_s2_p1(h)
    for li, layer in enumerate(('layer1', 'layer2', 'layer3', 'layer4')):
        for bi, blk in enumerate(prepared[layer]):
            stride = 2 if (li > 0 and bi == 0) else 1
            h = basic_block(h, blk, stride)
        # SpatialDropout(drop=0.5) after each layer is identity in eval mode.
    return head_pool_linear(h, prepared['head'])   # (N, num_classes) f32


# --------------------------- parameter handling ----------------------------

def _prepare_conv3x3(w, bn, cin_stored):
    """(Cout,Cin,3,3) weight + BN -> kernel-ready (Kp,128*) bf16 + (1,128*) f32."""
    cout, cin = w.shape[0], w.shape[1]
    np_out = _round_up(max(cout, 128), 128)
    wt = jnp.transpose(w, (2, 3, 1, 0))                       # (3,3,Cin,Cout)
    wt = jnp.pad(wt, ((0, 0), (0, 0),
                      (0, cin_stored - cin), (0, np_out - cout)))
    w2d = wt.reshape(9 * cin_stored, np_out)
    kp = _round_up(max(9 * cin_stored, 128), 128)
    w2d = jnp.pad(w2d, ((0, kp - 9 * cin_stored), (0, 0))).astype(jnp.bfloat16)
    scale, shift = _fold_bn(*bn)
    scale_p = jnp.pad(scale.reshape(1, cout),
                      ((0, 0), (0, np_out - cout))).astype(jnp.float32)
    shift_p = jnp.pad(shift.reshape(1, cout),
                      ((0, 0), (0, np_out - cout))).astype(jnp.float32)
    return {'w2d': w2d, 'scale': scale_p, 'shift': shift_p}


def _prepare_conv1x1(w, bn, cin_stored):
    """(Cout,Cin,1,1) weight + BN -> kernel-ready (cin_stored,128*) bf16."""
    cout, cin = w.shape[0], w.shape[1]
    np_out = _round_up(max(cout, 128), 128)
    wt = jnp.transpose(w, (2, 3, 1, 0)).reshape(cin, cout)
    wt = jnp.pad(wt, ((0, cin_stored - cin),
                      (0, np_out - cout))).astype(jnp.bfloat16)
    scale, shift = _fold_bn(*bn)
    scale_p = jnp.pad(scale.reshape(1, cout),
                      ((0, 0), (0, np_out - cout))).astype(jnp.float32)
    shift_p = jnp.pad(shift.reshape(1, cout),
                      ((0, 0), (0, np_out - cout))).astype(jnp.float32)
    return {'w2d': wt, 'scale': scale_p, 'shift': shift_p}


def prepare_params(params):
    """One-time weight prep: BN folding, transpose, lane padding, bf16 cast."""
    assert params['linear_w'].shape[1] <= CPAD, "nf*8 must be <= 128"
    # Stem ingests the raw 3-channel image; everything else ingests CPAD lanes.
    prep = {'stem': _prepare_conv3x3(params['conv1_w'], params['bn1'],
                                     cin_stored=params['conv1_w'].shape[1])}
    for layer in ('layer1', 'layer2', 'layer3', 'layer4'):
        blocks = []
        for blk in params[layer]:
            p = {'conv1': _prepare_conv3x3(blk['conv1_w'], blk['bn1'], CPAD),
                 'conv2': _prepare_conv3x3(blk['conv2_w'], blk['bn2'], CPAD)}
            if 'sc_w' in blk:
                p['shortcut'] = _prepare_conv1x1(blk['sc_w'], blk['bn_sc'], CPAD)
            blocks.append(p)
        prep[layer] = blocks
    in_f, nc = params['linear_w'].shape[1], params['linear_w'].shape[0]
    ncp = _round_up(max(nc, 128), 128)
    w_head = jnp.pad(jnp.transpose(params['linear_w'], (1, 0)),
                     ((0, CPAD - in_f), (0, ncp - nc))).astype(jnp.float32)
    prep['head'] = {'w': w_head,
                    'b': params['linear_b'].reshape(1, nc).astype(jnp.float32)}
    return prep


def init_params(key, nf=8, num_blocks=(2, 2, 2, 2), num_classes=10):
    keys = iter(jax.random.split(key, 256))

    def conv_w(cout, cin, k):
        fan_in = cin * k * k
        return (jax.random.normal(next(keys), (cout, cin, k, k), jnp.float32)
                / jnp.sqrt(float(fan_in)))

    def bn(c):
        gamma = 1.0 + 0.1 * jax.random.normal(next(keys), (c,), jnp.float32)
        beta = 0.1 * jax.random.normal(next(keys), (c,), jnp.float32)
        mean = 0.1 * jax.random.normal(next(keys), (c,), jnp.float32)
        var = 1.0 + 0.1 * jnp.abs(jax.random.normal(next(keys), (c,),
                                                    jnp.float32))
        return (gamma, beta, mean, var)

    params = {'conv1_w': conv_w(nf, 3, 3), 'bn1': bn(nf)}
    in_planes = nf
    for li, (mult, nb, stride) in enumerate(
            zip((1, 2, 4, 8), num_blocks, (1, 2, 2, 2)), start=1):
        planes = nf * mult
        blocks = []
        strides = [stride] + [1] * (nb - 1)
        for s in strides:
            blk = {
                'conv1_w': conv_w(planes, in_planes, 3), 'bn1': bn(planes),
                'conv2_w': conv_w(planes, planes, 3), 'bn2': bn(planes),
            }
            if s != 1 or in_planes != planes:
                blk['sc_w'] = conv_w(planes, in_planes, 1)
                blk['bn_sc'] = bn(planes)
            blocks.append(blk)
            in_planes = planes
        params[f'layer{li}'] = blocks
    params['linear_w'] = (jax.random.normal(next(keys),
                                            (num_classes, nf * 8), jnp.float32)
                          / jnp.sqrt(float(nf * 8)))
    params['linear_b'] = 0.1 * jax.random.normal(next(keys), (num_classes,),
                                                 jnp.float32)
    return params


if __name__ == "__main__":
    key = jax.random.PRNGKey(0)
    pkey, xkey = jax.random.split(key)
    # ResNet(BasicBlock, [2,2,2,2], num_classes=10, nf=8) at small shapes.
    params = init_params(pkey, nf=8, num_blocks=(2, 2, 2, 2), num_classes=10)
    prepared = prepare_params(params)
    x = jax.random.normal(xkey, (2, 3, 16, 16), jnp.float32)   # NCHW input
    forward = jax.jit(resnet_forward)
    out = forward(prepared, x)
    out = jax.block_until_ready(out)
    assert out.shape == (2, 10) and out.dtype == jnp.float32
    print("KERNEL_OK")
</pallas_src>

<mosaic_0001>
module attributes {stable_mosaic.version = 11 : i64} {
  func.func @_fused_matmul_kernel(%arg0: i32, %arg1: i32, %arg2: memref<256x128xbf16, #tpu.memory_space<vmem>>, %arg3: memref<128x128xbf16, #tpu.memory_space<vmem>>, %arg4: memref<1x128xf32, #tpu.memory_space<vmem>>, %arg5: memref<1x128xf32, #tpu.memory_space<vmem>>, %arg6: memref<256x128xbf16, #tpu.memory_space<vmem>>) attributes {dimension_semantics = [#tpu.dimension_semantics<parallel>, #tpu.dimension_semantics<parallel>], iteration_bounds = array<i64: 2, 1>, scalar_prefetch = 0 : i64, scratch_operands = 0 : i64, tpu.core_type = #tpu.core_type<tc>, window_params = [{transform_indices = @transform_0, window_bounds = array<i64: 256, 128>}, {transform_indices = @transform_1, window_bounds = array<i64: 128, 128>}, {transform_indices = @transform_2, window_bounds = array<i64: 1, 128>}, {transform_indices = @transform_3, window_bounds = array<i64: 1, 128>}, {transform_indices = @transform_4, window_bounds = array<i64: 256, 128>}]} {
    %c0 = arith.constant 0 : index
    %c0_0 = arith.constant 0 : index
    %0 = vector.load %arg2[%c0, %c0_0] : memref<256x128xbf16, #tpu.memory_space<vmem>>, vector<256x128xbf16>
    %c0_1 = arith.constant 0 : index
    %c0_2 = arith.constant 0 : index
    %1 = vector.load %arg3[%c0_1, %c0_2] : memref<128x128xbf16, #tpu.memory_space<vmem>>, vector<128x128xbf16>
    %cst = arith.constant dense<0.000000e+00> : vector<256x128xf32>
    %2 = tpu.matmul %0, %1, %cst {dimension_numbers = #tpu.dot_dimension_numbers<[1], [0], [0], [1], [0, 0, 1, 1], [], []>} : vector<256x128xbf16>, vector<128x128xbf16>, vector<256x128xf32> -> vector<256x128xf32>
    %c0_3 = arith.constant 0 : index
    %c0_4 = arith.constant 0 : index
    %3 = vector.load %arg4[%c0_3, %c0_4] : memref<1x128xf32, #tpu.memory_space<vmem>>, vector<1x128xf32>
    %4 = vector.broadcast %3 : vector<1x128xf32> to vector<256x128xf32>
    %5 = arith.mulf %2, %4 : vector<256x128xf32>
    %c0_5 = arith.constant 0 : index
    %c0_6 = arith.constant 0 : index
    %6 = vector.load %arg5[%c0_5, %c0_6] : memref<1x128xf32, #tpu.memory_space<vmem>>, vector<1x128xf32>
    %7 = vector.broadcast %6 : vector<1x128xf32> to vector<256x128xf32>
    %8 = arith.addf %5, %7 : vector<256x128xf32>
    %cst_7 = arith.constant 0.000000e+00 : f32
    %9 = vector.broadcast %cst_7 : f32 to vector<256x128xf32>
    %10 = arith.maximumf %8, %9 : vector<256x128xf32>
    %11 = arith.truncf %10 : vector<256x128xf32> to vector<256x128xbf16>
    %c0_8 = arith.constant 0 : index
    %c0_9 = arith.constant 0 : index
    %12 = vector.load %arg6[%c0_8, %c0_9] : memref<256x128xbf16, #tpu.memory_space<vmem>>, vector<256x128xbf16>
    tpu.vector_store %arg6[%c0_8, %c0_9], %11 {strides = array<i32>} : memref<256x128xbf16, #tpu.memory_space<vmem>>, vector<256x128xbf16>,
    return
  }
  func.func @transform_0(%arg0: i32, %arg1: i32) -> (i32, i32) {
    %c0_i32 = arith.constant 0 : i32
    %c0_i32_0 = arith.constant 0 : i32
    return %arg0, %c0_i32 : i32, i32
  }
  func.func @transform_1(%arg0: i32, %arg1: i32) -> (i32, i32) {
    %c0_i32 = arith.constant 0 : i32
    %c0_i32_0 = arith.constant 0 : i32
    return %c0_i32, %arg1 : i32, i32
  }
  func.func @transform_2(%arg0: i32, %arg1: i32) -> (i32, i32) {
    %c0_i32 = arith.constant 0 : i32
    %c0_i32_0 = arith.constant 0 : i32
    return %c0_i32, %arg1 : i32, i32
  }
  func.func @transform_3(%arg0: i32, %arg1: i32) -> (i32, i32) {
    %c0_i32 = arith.constant 0 : i32
    %c0_i32_0 = arith.constant 0 : i32
    return %c0_i32, %arg1 : i32, i32
  }
  func.func @transform_4(%arg0: i32, %arg1: i32) -> (i32, i32) {
    %c0_i32 = arith.constant 0 : i32
    return %arg0, %arg1 : i32, i32
  }
}

module attributes {stable_mosaic.version = 11 : i64} {
  func.func @_fused_matmul_kernel(%arg0: i32, %arg1: i32, %arg2: memref<64x1152xbf16, #tpu.memory_space<vmem>>, %arg3: memref<1152x128xbf16, #tpu.memory_space<vmem>>, %arg4: memref<1x128xf32, #tpu.memory_space<vmem>>, %arg5: memref<1x128xf32, #tpu.memory_space<vmem>>, %arg6: memref<64x128xbf16, #tpu.memory_space<vmem>>) attributes {dimension_semantics = [#tpu.dimension_semantics<parallel>, #tpu.dimension_semantics<parallel>], iteration_bounds = array<i64: 2, 1>, scalar_prefetch = 0 : i64, scratch_operands = 0 : i64, tpu.core_type = #tpu.core_type<tc>, window_params = [{transform_indices = @transform_0, window_bounds = array<i64: 64, 1152>}, {transform_indices = @transform_1, window_bounds = array<i64: 1152, 128>}, {transform_indices = @transform_2, window_bounds = array<i64: 1, 128>}, {transform_indices = @transform_3, window_bounds = array<i64: 1, 128>}, {transform_indices = @transform_4, window_bounds = array<i64: 64, 128>}]} {
    %c0 = arith.constant 0 : index
    %c0_0 = arith.constant 0 : index
    %0 = vector.load %arg2[%c0, %c0_0] : memref<64x1152xbf16, #tpu.memory_space<vmem>>, vector<64x1152xbf16>
    %c0_1 = arith.constant 0 : index
    %c0_2 = arith.constant 0 : index
    %1 = vector.load %arg3[%c0_1, %c0_2] : memref<1152x128xbf16, #tpu.memory_space<vmem>>, vector<1152x128xbf16>
    %cst = arith.constant dense<0.000000e+00> : vector<64x128xf32>
    %2 = tpu.matmul %0, %1, %cst {dimension_numbers = #tpu.dot_dimension_numbers<[1], [0], [0], [1], [0, 0, 1, 1], [], []>} : vector<64x1152xbf16>, vector<1152x128xbf16>, vector<64x128xf32> -> vector<64x128xf32>
    %c0_3 = arith.constant 0 : index
    %c0_4 = arith.constant 0 : index
    %3 = vector.load %arg4[%c0_3, %c0_4] : memref<1x128xf32, #tpu.memory_space<vmem>>, vector<1x128xf32>
    %4 = vector.broadcast %3 : vector<1x128xf32> to vector<64x128xf32>
    %5 = arith.mulf %2, %4 : vector<64x128xf32>
    %c0_5 = arith.constant 0 : index
    %c0_6 = arith.constant 0 : index
    %6 = vector.load %arg5[%c0_5, %c0_6] : memref<1x128xf32, #tpu.memory_space<vmem>>, vector<1x128xf32>
    %7 = vector.broadcast %6 : vector<1x128xf32> to vector<64x128xf32>
    %8 = arith.addf %5, %7 : vector<64x128xf32>
    %cst_7 = arith.constant 0.000000e+00 : f32
    %9 = vector.broadcast %cst_7 : f32 to vector<64x128xf32>
    %10 = arith.maximumf %8, %9 : vector<64x128xf32>
    %11 = arith.truncf %10 : vector<64x128xf32> to vector<64x128xbf16>
    %c0_8 = arith.constant 0 : index
    %c0_9 = arith.constant 0 : index
    %12 = vector.load %arg6[%c0_8, %c0_9] : memref<64x128xbf16, #tpu.memory_space<vmem>>, vector<64x128xbf16>
    tpu.vector_store %arg6[%c0_8, %c0_9], %11 {strides = array<i32>} : memref<64x128xbf16, #tpu.memory_space<vmem>>, vector<64x128xbf16>,
    return
  }
  func.func @transform_0(%arg0: i32, %arg1: i32) -> (i32, i32) {
    %c0_i32 = arith.constant 0 : i32
    %c0_i32_0 = arith.constant 0 : i32
    return %arg0, %c0_i32 : i32, i32
  }
  func.func @transform_1(%arg0: i32, %arg1: i32) -> (i32, i32) {
    %c0_i32 = arith.constant 0 : i32
    %c0_i32_0 = arith.constant 0 : i32
    return %c0_i32, %arg1 : i32, i32
  }
  func.func @transform_2(%arg0: i32, %arg1: i32) -> (i32, i32) {
    %c0_i32 = arith.constant 0 : i32
    %c0_i32_0 = arith.constant 0 : i32
    return %c0_i32, %arg1 : i32, i32
  }
  func.func @transform_3(%arg0: i32, %arg1: i32) -> (i32, i32) {
    %c0_i32 = arith.constant 0 : i32
    %c0_i32_0 = arith.constant 0 : i32
    return %c0_i32, %arg1 : i32, i32
  }
  func.func @transform_4(%arg0: i32, %arg1: i32) -> (i32, i32) {
    %c0_i32 = arith.constant 0 : i32
    return %arg0, %arg1 : i32, i32
  }
}

module attributes {stable_mosaic.version = 11 : i64} {
  func.func @_fused_matmul_kernel(%arg0: i32, %arg1: i32, %arg2: memref<64x1152xbf16, #tpu.memory_space<vmem>>, %arg3: memref<1152x128xbf16, #tpu.memory_space<vmem>>, %arg4: memref<1x128xf32, #tpu.memory_space<vmem>>, %arg5: memref<1x128xf32, #tpu.memory_space<vmem>>, %arg6: memref<64x128xbf16, #tpu.memory_space<vmem>>, %arg7: memref<64x128xbf16, #tpu.memory_space<vmem>>) attributes {dimension_semantics = [#tpu.dimension_semantics<parallel>, #tpu.dimension_semantics<parallel>], iteration_bounds = array<i64: 2, 1>, scalar_prefetch = 0 : i64, scratch_operands = 0 : i64, tpu.core_type = #tpu.core_type<tc>, window_params = [{transform_indices = @transform_0, window_bounds = array<i64: 64, 1152>}, {transform_indices = @transform_1, window_bounds = array<i64: 1152, 128>}, {transform_indices = @transform_2, window_bounds = array<i64: 1, 128>}, {transform_indices = @transform_3, window_bounds = array<i64: 1, 128>}, {transform_indices = @transform_4, window_bounds = array<i64: 64, 128>}, {transform_indices = @transform_5, window_bounds = array<i64: 64, 128>}]} {
    %c0 = arith.constant 0 : index
    %c0_0 = arith.constant 0 : index
    %0 = vector.load %arg2[%c0, %c0_0] : memref<64x1152xbf16, #tpu.memory_space<vmem>>, vector<64x1152xbf16>
    %c0_1 = arith.constant 0 : index
    %c0_2 = arith.constant 0 : index
    %1 = vector.load %arg3[%c0_1, %c0_2] : memref<1152x128xbf16, #tpu.memory_space<vmem>>, vector<1152x128xbf16>
    %cst = arith.constant dense<0.000000e+00> : vector<64x128xf32>
    %2 = tpu.matmul %0, %1, %cst {dimension_numbers = #tpu.dot_dimension_numbers<[1], [0], [0], [1], [0, 0, 1, 1], [], []>} : vector<64x1152xbf16>, vector<1152x128xbf16>, vector<64x128xf32> -> vector<64x128xf32>
    %c0_3 = arith.constant 0 : index
    %c0_4 = arith.constant 0 : index
    %3 = vector.load %arg4[%c0_3, %c0_4] : memref<1x128xf32, #tpu.memory_space<vmem>>, vector<1x128xf32>
    %4 = vector.broadcast %3 : vector<1x128xf32> to vector<64x128xf32>
    %5 = arith.mulf %2, %4 : vector<64x128xf32>
    %c0_5 = arith.constant 0 : index
    %c0_6 = arith.constant 0 : index
    %6 = vector.load %arg5[%c0_5, %c0_6] : memref<1x128xf32, #tpu.memory_space<vmem>>, vector<1x128xf32>
    %7 = vector.broadcast %6 : vector<1x128xf32> to vector<64x128xf32>
    %8 = arith.addf %5, %7 : vector<64x128xf32>
    %c0_7 = arith.constant 0 : index
    %c0_8 = arith.constant 0 : index
    %9 = vector.load %arg6[%c0_7, %c0_8] : memref<64x128xbf16, #tpu.memory_space<vmem>>, vector<64x128xbf16>
    %10 = arith.extf %9 : vector<64x128xbf16> to vector<64x128xf32>
    %11 = arith.addf %8, %10 : vector<64x128xf32>
    %cst_9 = arith.constant 0.000000e+00 : f32
    %12 = vector.broadcast %cst_9 : f32 to vector<64x128xf32>
    %13 = arith.maximumf %11, %12 : vector<64x128xf32>
    %14 = arith.truncf %13 : vector<64x128xf32> to vector<64x128xbf16>
    %c0_10 = arith.constant 0 : index
    %c0_11 = arith.constant 0 : index
    %15 = vector.load %arg7[%c0_10, %c0_11] : memref<64x128xbf16, #tpu.memory_space<vmem>>, vector<64x128xbf16>
    tpu.vector_store %arg7[%c0_10, %c0_11], %14 {strides = array<i32>} : memref<64x128xbf16, #tpu.memory_space<vmem>>, vector<64x128xbf16>,
    return
  }
  func.func @transform_0(%arg0: i32, %arg1: i32) -> (i32, i32) {
    %c0_i32 = arith.constant 0 : i32
    %c0_i32_0 = arith.constant 0 : i32
    return %arg0, %c0_i32 : i32, i32
  }
  func.func @transform_1(%arg0: i32, %arg1: i32) -> (i32, i32) {
    %c0_i32 = arith.constant 0 : i32
    %c0_i32_0 = arith.constant 0 : i32
    return %c0_i32, %arg1 : i32, i32
  }
  func.func @transform_2(%arg0: i32, %arg1: i32) -> (i32, i32) {
    %c0_i32 = arith.constant 0 : i32
    %c0_i32_0 = arith.constant 0 : i32
    return %c0_i32, %arg1 : i32, i32
  }
  func.func @transform_3(%arg0: i32, %arg1: i32) -> (i32, i32) {
    %c0_i32 = arith.constant 0 : i32
    %c0_i32_0 = arith.constant 0 : i32
    return %c0_i32, %arg1 : i32, i32
  }
  func.func @transform_4(%arg0: i32, %arg1: i32) -> (i32, i32) {
    %c0_i32 = arith.constant 0 : i32
    return %arg0, %arg1 : i32, i32
  }
  func.func @transform_5(%arg0: i32, %arg1: i32) -> (i32, i32) {
    %c0_i32 = arith.constant 0 : i32
    return %arg0, %arg1 : i32, i32
  }
}

module attributes {stable_mosaic.version = 11 : i64} {
  func.func @_fused_matmul_kernel(%arg0: i32, %arg1: i32, %arg2: memref<16x1152xbf16, #tpu.memory_space<vmem>>, %arg3: memref<1152x128xbf16, #tpu.memory_space<vmem>>, %arg4: memref<1x128xf32, #tpu.memory_space<vmem>>, %arg5: memref<1x128xf32, #tpu.memory_space<vmem>>, %arg6: memref<16x128xbf16, #tpu.memory_space<vmem>>) attributes {dimension_semantics = [#tpu.dimension_semantics<parallel>, #tpu.dimension_semantics<parallel>], iteration_bounds = array<i64: 2, 1>, scalar_prefetch = 0 : i64, scratch_operands = 0 : i64, tpu.core_type = #tpu.core_type<tc>, window_params = [{transform_indices = @transform_0, window_bounds = array<i64: 16, 1152>}, {transform_indices = @transform_1, window_bounds = array<i64: 1152, 128>}, {transform_indices = @transform_2, window_bounds = array<i64: 1, 128>}, {transform_indices = @transform_3, window_bounds = array<i64: 1, 128>}, {transform_indices = @transform_4, window_bounds = array<i64: 16, 128>}]} {
    %c0 = arith.constant 0 : index
    %c0_0 = arith.constant 0 : index
    %0 = vector.load %arg2[%c0, %c0_0] : memref<16x1152xbf16, #tpu.memory_space<vmem>>, vector<16x1152xbf16>
    %c0_1 = arith.constant 0 : index
    %c0_2 = arith.constant 0 : index
    %1 = vector.load %arg3[%c0_1, %c0_2] : memref<1152x128xbf16, #tpu.memory_space<vmem>>, vector<1152x128xbf16>
    %cst = arith.constant dense<0.000000e+00> : vector<16x128xf32>
    %2 = tpu.matmul %0, %1, %cst {dimension_numbers = #tpu.dot_dimension_numbers<[1], [0], [0], [1], [0, 0, 1, 1], [], []>} : vector<16x1152xbf16>, vector<1152x128xbf16>, vector<16x128xf32> -> vector<16x128xf32>
    %c0_3 = arith.constant 0 : index
    %c0_4 = arith.constant 0 : index
    %3 = vector.load %arg4[%c0_3, %c0_4] : memref<1x128xf32, #tpu.memory_space<vmem>>, vector<1x128xf32>
    %4 = vector.broadcast %3 : vector<1x128xf32> to vector<16x128xf32>
    %5 = arith.mulf %2, %4 : vector<16x128xf32>
    %c0_5 = arith.constant 0 : index
    %c0_6 = arith.constant 0 : index
    %6 = vector.load %arg5[%c0_5, %c0_6] : memref<1x128xf32, #tpu.memory_space<vmem>>, vector<1x128xf32>
    %7 = vector.broadcast %6 : vector<1x128xf32> to vector<16x128xf32>
    %8 = arith.addf %5, %7 : vector<16x128xf32>
    %cst_7 = arith.constant 0.000000e+00 : f32
    %9 = vector.broadcast %cst_7 : f32 to vector<16x128xf32>
    %10 = arith.maximumf %8, %9 : vector<16x128xf32>
    %11 = arith.truncf %10 : vector<16x128xf32> to vector<16x128xbf16>
    %c0_8 = arith.constant 0 : index
    %c0_9 = arith.constant 0 : index
    %12 = vector.load %arg6[%c0_8, %c0_9] : memref<16x128xbf16, #tpu.memory_space<vmem>>, vector<16x128xbf16>
    tpu.vector_store %arg6[%c0_8, %c0_9], %11 {strides = array<i32>} : memref<16x128xbf16, #tpu.memory_space<vmem>>, vector<16x128xbf16>,
    return
  }
  func.func @transform_0(%arg0: i32, %arg1: i32) -> (i32, i32) {
    %c0_i32 = arith.constant 0 : i32
    %c0_i32_0 = arith.constant 0 : i32
    return %arg0, %c0_i32 : i32, i32
  }
  func.func @transform_1(%arg0: i32, %arg1: i32) -> (i32, i32) {
    %c0_i32 = arith.constant 0 : i32
    %c0_i32_0 = arith.constant 0 : i32
    return %c0_i32, %arg1 : i32, i32
  }
  func.func @transform_2(%arg0: i32, %arg1: i32) -> (i32, i32) {
    %c0_i32 = arith.constant 0 : i32
    %c0_i32_0 = arith.constant 0 : i32
    return %c0_i32, %arg1 : i32, i32
  }
  func.func @transform_3(%arg0: i32, %arg1: i32) -> (i32, i32) {
    %c0_i32 = arith.constant 0 : i32
    %c0_i32_0 = arith.constant 0 : i32
    return %c0_i32, %arg1 : i32, i32
  }
  func.func @transform_4(%arg0: i32, %arg1: i32) -> (i32, i32) {
    %c0_i32 = arith.constant 0 : i32
    return %arg0, %arg1 : i32, i32
  }
}

module attributes {stable_mosaic.version = 11 : i64} {
  func.func @_fused_matmul_kernel(%arg0: i32, %arg1: i32, %arg2: memref<16x128xbf16, #tpu.memory_space<vmem>>, %arg3: memref<128x128xbf16, #tpu.memory_space<vmem>>, %arg4: memref<1x128xf32, #tpu.memory_space<vmem>>, %arg5: memref<1x128xf32, #tpu.memory_space<vmem>>, %arg6: memref<16x128xbf16, #tpu.memory_space<vmem>>) attributes {dimension_semantics = [#tpu.dimension_semantics<parallel>, #tpu.dimension_semantics<parallel>], iteration_bounds = array<i64: 2, 1>, scalar_prefetch = 0 : i64, scratch_operands = 0 : i64, tpu.core_type = #tpu.core_type<tc>, window_params = [{transform_indices = @transform_0, window_bounds = array<i64: 16, 128>}, {transform_indices = @transform_1, window_bounds = array<i64: 128, 128>}, {transform_indices = @transform_2, window_bounds = array<i64: 1, 128>}, {transform_indices = @transform_3, window_bounds = array<i64: 1, 128>}, {transform_indices = @transform_4, window_bounds = array<i64: 16, 128>}]} {
    %c0 = arith.constant 0 : index
    %c0_0 = arith.constant 0 : index
    %0 = vector.load %arg2[%c0, %c0_0] : memref<16x128xbf16, #tpu.memory_space<vmem>>, vector<16x128xbf16>
    %c0_1 = arith.constant 0 : index
    %c0_2 = arith.constant 0 : index
    %1 = vector.load %arg3[%c0_1, %c0_2] : memref<128x128xbf16, #tpu.memory_space<vmem>>, vector<128x128xbf16>
    %cst = arith.constant dense<0.000000e+00> : vector<16x128xf32>
    %2 = tpu.matmul %0, %1, %cst {dimension_numbers = #tpu.dot_dimension_numbers<[1], [0], [0], [1], [0, 0, 1, 1], [], []>} : vector<16x128xbf16>, vector<128x128xbf16>, vector<16x128xf32> -> vector<16x128xf32>
    %c0_3 = arith.constant 0 : index
    %c0_4 = arith.constant 0 : index
    %3 = vector.load %arg4[%c0_3, %c0_4] : memref<1x128xf32, #tpu.memory_space<vmem>>, vector<1x128xf32>
    %4 = vector.broadcast %3 : vector<1x128xf32> to vector<16x128xf32>
    %5 = arith.mulf %2, %4 : vector<16x128xf32>
    %c0_5 = arith.constant 0 : index
    %c0_6 = arith.constant 0 : index
    %6 = vector.load %arg5[%c0_5, %c0_6] : memref<1x128xf32, #tpu.memory_space<vmem>>, vector<1x128xf32>
    %7 = vector.broadcast %6 : vector<1x128xf32> to vector<16x128xf32>
    %8 = arith.addf %5, %7 : vector<16x128xf32>
    %9 = arith.truncf %8 : vector<16x128xf32> to vector<16x128xbf16>
    %c0_7 = arith.constant 0 : index
    %c0_8 = arith.constant 0 : index
    %10 = vector.load %arg6[%c0_7, %c0_8] : memref<16x128xbf16, #tpu.memory_space<vmem>>, vector<16x128xbf16>
    tpu.vector_store %arg6[%c0_7, %c0_8], %9 {strides = array<i32>} : memref<16x128xbf16, #tpu.memory_space<vmem>>, vector<16x128xbf16>,
    return
  }
  func.func @transform_0(%arg0: i32, %arg1: i32) -> (i32, i32) {
    %c0_i32 = arith.constant 0 : i32
    %c0_i32_0 = arith.constant 0 : i32
    return %arg0, %c0_i32 : i32, i32
  }
  func.func @transform_1(%arg0: i32, %arg1: i32) -> (i32, i32) {
    %c0_i32 = arith.constant 0 : i32
    %c0_i32_0 = arith.constant 0 : i32
    return %c0_i32, %arg1 : i32, i32
  }
  func.func @transform_2(%arg0: i32, %arg1: i32) -> (i32, i32) {
    %c0_i32 = arith.constant 0 : i32
    %c0_i32_0 = arith.constant 0 : i32
    return %c0_i32, %arg1 : i32, i32
  }
  func.func @transform_3(%arg0: i32, %arg1: i32) -> (i32, i32) {
    %c0_i32 = arith.constant 0 : i32
    %c0_i32_0 = arith.constant 0 : i32
    return %c0_i32, %arg1 : i32, i32
  }
  func.func @transform_4(%arg0: i32, %arg1: i32) -> (i32, i32) {
    %c0_i32 = arith.constant 0 : i32
    return %arg0, %arg1 : i32, i32
  }
}

module attributes {stable_mosaic.version = 11 : i64} {
  func.func @_fused_matmul_kernel(%arg0: i32, %arg1: i32, %arg2: memref<16x1152xbf16, #tpu.memory_space<vmem>>, %arg3: memref<1152x128xbf16, #tpu.memory_space<vmem>>, %arg4: memref<1x128xf32, #tpu.memory_space<vmem>>, %arg5: memref<1x128xf32, #tpu.memory_space<vmem>>, %arg6: memref<16x128xbf16, #tpu.memory_space<vmem>>, %arg7: memref<16x128xbf16, #tpu.memory_space<vmem>>) attributes {dimension_semantics = [#tpu.dimension_semantics<parallel>, #tpu.dimension_semantics<parallel>], iteration_bounds = array<i64: 2, 1>, scalar_prefetch = 0 : i64, scratch_operands = 0 : i64, tpu.core_type = #tpu.core_type<tc>, window_params = [{transform_indices = @transform_0, window_bounds = array<i64: 16, 1152>}, {transform_indices = @transform_1, window_bounds = array<i64: 1152, 128>}, {transform_indices = @transform_2, window_bounds = array<i64: 1, 128>}, {transform_indices = @transform_3, window_bounds = array<i64: 1, 128>}, {transform_indices = @transform_4, window_bounds = array<i64: 16, 128>}, {transform_indices = @transform_5, window_bounds = array<i64: 16, 128>}]} {
    %c0 = arith.constant 0 : index
    %c0_0 = arith.constant 0 : index
    %0 = vector.load %arg2[%c0, %c0_0] : memref<16x1152xbf16, #tpu.memory_space<vmem>>, vector<16x1152xbf16>
    %c0_1 = arith.constant 0 : index
    %c0_2 = arith.constant 0 : index
    %1 = vector.load %arg3[%c0_1, %c0_2] : memref<1152x128xbf16, #tpu.memory_space<vmem>>, vector<1152x128xbf16>
    %cst = arith.constant dense<0.000000e+00> : vector<16x128xf32>
    %2 = tpu.matmul %0, %1, %cst {dimension_numbers = #tpu.dot_dimension_numbers<[1], [0], [0], [1], [0, 0, 1, 1], [], []>} : vector<16x1152xbf16>, vector<1152x128xbf16>, vector<16x128xf32> -> vector<16x128xf32>
    %c0_3 = arith.constant 0 : index
    %c0_4 = arith.constant 0 : index
    %3 = vector.load %arg4[%c0_3, %c0_4] : memref<1x128xf32, #tpu.memory_space<vmem>>, vector<1x128xf32>
    %4 = vector.broadcast %3 : vector<1x128xf32> to vector<16x128xf32>
    %5 = arith.mulf %2, %4 : vector<16x128xf32>
    %c0_5 = arith.constant 0 : index
    %c0_6 = arith.constant 0 : index
    %6 = vector.load %arg5[%c0_5, %c0_6] : memref<1x128xf32, #tpu.memory_space<vmem>>, vector<1x128xf32>
    %7 = vector.broadcast %6 : vector<1x128xf32> to vector<16x128xf32>
    %8 = arith.addf %5, %7 : vector<16x128xf32>
    %c0_7 = arith.constant 0 : index
    %c0_8 = arith.constant 0 : index
    %9 = vector.load %arg6[%c0_7, %c0_8] : memref<16x128xbf16, #tpu.memory_space<vmem>>, vector<16x128xbf16>
    %10 = arith.extf %9 : vector<16x128xbf16> to vector<16x128xf32>
    %11 = arith.addf %8, %10 : vector<16x128xf32>
    %cst_9 = arith.constant 0.000000e+00 : f32
    %12 = vector.broadcast %cst_9 : f32 to vector<16x128xf32>
    %13 = arith.maximumf %11, %12 : vector<16x128xf32>
    %14 = arith.truncf %13 : vector<16x128xf32> to vector<16x128xbf16>
    %c0_10 = arith.constant 0 : index
    %c0_11 = arith.constant 0 : index
    %15 = vector.load %arg7[%c0_10, %c0_11] : memref<16x128xbf16, #tpu.memory_space<vmem>>, vector<16x128xbf16>
    tpu.vector_store %arg7[%c0_10, %c0_11], %14 {strides = array<i32>} : memref<16x128xbf16, #tpu.memory_space<vmem>>, vector<16x128xbf16>,
    return
  }
  func.func @transform_0(%arg0: i32, %arg1: i32) -> (i32, i32) {
    %c0_i32 = arith.constant 0 : i32
    %c0_i32_0 = arith.constant 0 : i32
    return %arg0, %c0_i32 : i32, i32
  }
  func.func @transform_1(%arg0: i32, %arg1: i32) -> (i32, i32) {
    %c0_i32 = arith.constant 0 : i32
    %c0_i32_0 = arith.constant 0 : i32
    return %c0_i32, %arg1 : i32, i32
  }
  func.func @transform_2(%arg0: i32, %arg1: i32) -> (i32, i32) {
    %c0_i32 = arith.constant 0 : i32
    %c0_i32_0 = arith.constant 0 : i32
    return %c0_i32, %arg1 : i32, i32
  }
  func.func @transform_3(%arg0: i32, %arg1: i32) -> (i32, i32) {
    %c0_i32 = arith.constant 0 : i32
    %c0_i32_0 = arith.constant 0 : i32
    return %c0_i32, %arg1 : i32, i32
  }
  func.func @transform_4(%arg0: i32, %arg1: i32) -> (i32, i32) {
    %c0_i32 = arith.constant 0 : i32
    return %arg0, %arg1 : i32, i32
  }
  func.func @transform_5(%arg0: i32, %arg1: i32) -> (i32, i32) {
    %c0_i32 = arith.constant 0 : i32
    return %arg0, %arg1 : i32, i32
  }
}

module attributes {stable_mosaic.version = 11 : i64} {
  func.func @_fused_matmul_kernel(%arg0: i32, %arg1: i32, %arg2: memref<8x1152xbf16, #tpu.memory_space<vmem>>, %arg3: memref<1152x128xbf16, #tpu.memory_space<vmem>>, %arg4: memref<1x128xf32, #tpu.memory_space<vmem>>, %arg5: memref<1x128xf32, #tpu.memory_space<vmem>>, %arg6: memref<8x128xbf16, #tpu.memory_space<vmem>>) attributes {dimension_semantics = [#tpu.dimension_semantics<parallel>, #tpu.dimension_semantics<parallel>], iteration_bounds = array<i64: 1, 1>, scalar_prefetch = 0 : i64, scratch_operands = 0 : i64, tpu.core_type = #tpu.core_type<tc>, window_params = [{transform_indices = @transform_0, window_bounds = array<i64: 8, 1152>}, {transform_indices = @transform_1, window_bounds = array<i64: 1152, 128>}, {transform_indices = @transform_2, window_bounds = array<i64: 1, 128>}, {transform_indices = @transform_3, window_bounds = array<i64: 1, 128>}, {transform_indices = @transform_4, window_bounds = array<i64: 8, 128>}]} {
    %c0 = arith.constant 0 : index
    %c0_0 = arith.constant 0 : index
    %0 = vector.load %arg2[%c0, %c0_0] : memref<8x1152xbf16, #tpu.memory_space<vmem>>, vector<8x1152xbf16>
    %c0_1 = arith.constant 0 : index
    %c0_2 = arith.constant 0 : index
    %1 = vector.load %arg3[%c0_1, %c0_2] : memref<1152x128xbf16, #tpu.memory_space<vmem>>, vector<1152x128xbf16>
    %cst = arith.constant dense<0.000000e+00> : vector<8x128xf32>
    %2 = tpu.matmul %0, %1, %cst {dimension_numbers = #tpu.dot_dimension_numbers<[1], [0], [0], [1], [0, 0, 1, 1], [], []>} : vector<8x1152xbf16>, vector<1152x128xbf16>, vector<8x128xf32> -> vector<8x128xf32>
    %c0_3 = arith.constant 0 : index
    %c0_4 = arith.constant 0 : index
    %3 = vector.load %arg4[%c0_3, %c0_4] : memref<1x128xf32, #tpu.memory_space<vmem>>, vector<1x128xf32>
    %4 = vector.broadcast %3 : vector<1x128xf32> to vector<8x128xf32>
    %5 = arith.mulf %2, %4 : vector<8x128xf32>
    %c0_5 = arith.constant 0 : index
    %c0_6 = arith.constant 0 : index
    %6 = vector.load %arg5[%c0_5, %c0_6] : memref<1x128xf32, #tpu.memory_space<vmem>>, vector<1x128xf32>
    %7 = vector.broadcast %6 : vector<1x128xf32> to vector<8x128xf32>
    %8 = arith.addf %5, %7 : vector<8x128xf32>
    %cst_7 = arith.constant 0.000000e+00 : f32
    %9 = vector.broadcast %cst_7 : f32 to vector<8x128xf32>
    %10 = arith.maximumf %8, %9 : vector<8x128xf32>
    %11 = arith.truncf %10 : vector<8x128xf32> to vector<8x128xbf16>
    %c0_8 = arith.constant 0 : index
    %c0_9 = arith.constant 0 : index
    %12 = vector.load %arg6[%c0_8, %c0_9] : memref<8x128xbf16, #tpu.memory_space<vmem>>, vector<8x128xbf16>
    tpu.vector_store %arg6[%c0_8, %c0_9], %11 {strides = array<i32>} : memref<8x128xbf16, #tpu.memory_space<vmem>>, vector<8x128xbf16>,
    return
  }
  func.func @transform_0(%arg0: i32, %arg1: i32) -> (i32, i32) {
    %c0_i32 = arith.constant 0 : i32
    %c0_i32_0 = arith.constant 0 : i32
    return %arg0, %c0_i32 : i32, i32
  }
  func.func @transform_1(%arg0: i32, %arg1: i32) -> (i32, i32) {
    %c0_i32 = arith.constant 0 : i32
    %c0_i32_0 = arith.constant 0 : i32
    return %c0_i32, %arg1 : i32, i32
  }
  func.func @transform_2(%arg0: i32, %arg1: i32) -> (i32, i32) {
    %c0_i32 = arith.constant 0 : i32
    %c0_i32_0 = arith.constant 0 : i32
    return %c0_i32, %arg1 : i32, i32
  }
  func.func @transform_3(%arg0: i32, %arg1: i32) -> (i32, i32) {
    %c0_i32 = arith.constant 0 : i32
    %c0_i32_0 = arith.constant 0 : i32
    return %c0_i32, %arg1 : i32, i32
  }
  func.func @transform_4(%arg0: i32, %arg1: i32) -> (i32, i32) {
    %c0_i32 = arith.constant 0 : i32
    return %arg0, %arg1 : i32, i32
  }
}

module attributes {stable_mosaic.version = 11 : i64} {
  func.func @_fused_matmul_kernel(%arg0: i32, %arg1: i32, %arg2: memref<8x128xbf16, #tpu.memory_space<vmem>>, %arg3: memref<128x128xbf16, #tpu.memory_space<vmem>>, %arg4: memref<1x128xf32, #tpu.memory_space<vmem>>, %arg5: memref<1x128xf32, #tpu.memory_space<vmem>>, %arg6: memref<8x128xbf16, #tpu.memory_space<vmem>>) attributes {dimension_semantics = [#tpu.dimension_semantics<parallel>, #tpu.dimension_semantics<parallel>], iteration_bounds = array<i64: 1, 1>, scalar_prefetch = 0 : i64, scratch_operands = 0 : i64, tpu.core_type = #tpu.core_type<tc>, window_params = [{transform_indices = @transform_0, window_bounds = array<i64: 8, 128>}, {transform_indices = @transform_1, window_bounds = array<i64: 128, 128>}, {transform_indices = @transform_2, window_bounds = array<i64: 1, 128>}, {transform_indices = @transform_3, window_bounds = array<i64: 1, 128>}, {transform_indices = @transform_4, window_bounds = array<i64: 8, 128>}]} {
    %c0 = arith.constant 0 : index
    %c0_0 = arith.constant 0 : index
    %0 = vector.load %arg2[%c0, %c0_0] : memref<8x128xbf16, #tpu.memory_space<vmem>>, vector<8x128xbf16>
    %c0_1 = arith.constant 0 : index
    %c0_2 = arith.constant 0 : index
    %1 = vector.load %arg3[%c0_1, %c0_2] : memref<128x128xbf16, #tpu.memory_space<vmem>>, vector<128x128xbf16>
    %cst = arith.constant dense<0.000000e+00> : vector<8x128xf32>
    %2 = tpu.matmul %0, %1, %cst {dimension_numbers = #tpu.dot_dimension_numbers<[1], [0], [0], [1], [0, 0, 1, 1], [], []>} : vector<8x128xbf16>, vector<128x128xbf16>, vector<8x128xf32> -> vector<8x128xf32>
    %c0_3 = arith.constant 0 : index
    %c0_4 = arith.constant 0 : index
    %3 = vector.load %arg4[%c0_3, %c0_4] : memref<1x128xf32, #tpu.memory_space<vmem>>, vector<1x128xf32>
    %4 = vector.broadcast %3 : vector<1x128xf32> to vector<8x128xf32>
    %5 = arith.mulf %2, %4 : vector<8x128xf32>
    %c0_5 = arith.constant 0 : index
    %c0_6 = arith.constant 0 : index
    %6 = vector.load %arg5[%c0_5, %c0_6] : memref<1x128xf32, #tpu.memory_space<vmem>>, vector<1x128xf32>
    %7 = vector.broadcast %6 : vector<1x128xf32> to vector<8x128xf32>
    %8 = arith.addf %5, %7 : vector<8x128xf32>
    %9 = arith.truncf %8 : vector<8x128xf32> to vector<8x128xbf16>
    %c0_7 = arith.constant 0 : index
    %c0_8 = arith.constant 0 : index
    %10 = vector.load %arg6[%c0_7, %c0_8] : memref<8x128xbf16, #tpu.memory_space<vmem>>, vector<8x128xbf16>
    tpu.vector_store %arg6[%c0_7, %c0_8], %9 {strides = array<i32>} : memref<8x128xbf16, #tpu.memory_space<vmem>>, vector<8x128xbf16>,
    return
  }
  func.func @transform_0(%arg0: i32, %arg1: i32) -> (i32, i32) {
    %c0_i32 = arith.constant 0 : i32
    %c0_i32_0 = arith.constant 0 : i32
    return %arg0, %c0_i32 : i32, i32
  }
  func.func @transform_1(%arg0: i32, %arg1: i32) -> (i32, i32) {
    %c0_i32 = arith.constant 0 : i32
    %c0_i32_0 = arith.constant 0 : i32
    return %c0_i32, %arg1 : i32, i32
  }
  func.func @transform_2(%arg0: i32, %arg1: i32) -> (i32, i32) {
    %c0_i32 = arith.constant 0 : i32
    %c0_i32_0 = arith.constant 0 : i32
    return %c0_i32, %arg1 : i32, i32
  }
  func.func @transform_3(%arg0: i32, %arg1: i32) -> (i32, i32) {
    %c0_i32 = arith.constant 0 : i32
    %c0_i32_0 = arith.constant 0 : i32
    return %c0_i32, %arg1 : i32, i32
  }
  func.func @transform_4(%arg0: i32, %arg1: i32) -> (i32, i32) {
    %c0_i32 = arith.constant 0 : i32
    return %arg0, %arg1 : i32, i32
  }
}

module attributes {stable_mosaic.version = 11 : i64} {
  func.func @_fused_matmul_kernel(%arg0: i32, %arg1: i32, %arg2: memref<8x1152xbf16, #tpu.memory_space<vmem>>, %arg3: memref<1152x128xbf16, #tpu.memory_space<vmem>>, %arg4: memref<1x128xf32, #tpu.memory_space<vmem>>, %arg5: memref<1x128xf32, #tpu.memory_space<vmem>>, %arg6: memref<8x128xbf16, #tpu.memory_space<vmem>>, %arg7: memref<8x128xbf16, #tpu.memory_space<vmem>>) attributes {dimension_semantics = [#tpu.dimension_semantics<parallel>, #tpu.dimension_semantics<parallel>], iteration_bounds = array<i64: 1, 1>, scalar_prefetch = 0 : i64, scratch_operands = 0 : i64, tpu.core_type = #tpu.core_type<tc>, window_params = [{transform_indices = @transform_0, window_bounds = array<i64: 8, 1152>}, {transform_indices = @transform_1, window_bounds = array<i64: 1152, 128>}, {transform_indices = @transform_2, window_bounds = array<i64: 1, 128>}, {transform_indices = @transform_3, window_bounds = array<i64: 1, 128>}, {transform_indices = @transform_4, window_bounds = array<i64: 8, 128>}, {transform_indices = @transform_5, window_bounds = array<i64: 8, 128>}]} {
    %c0 = arith.constant 0 : index
    %c0_0 = arith.constant 0 : index
    %0 = vector.load %arg2[%c0, %c0_0] : memref<8x1152xbf16, #tpu.memory_space<vmem>>, vector<8x1152xbf16>
    %c0_1 = arith.constant 0 : index
    %c0_2 = arith.constant 0 : index
    %1 = vector.load %arg3[%c0_1, %c0_2] : memref<1152x128xbf16, #tpu.memory_space<vmem>>, vector<1152x128xbf16>
    %cst = arith.constant dense<0.000000e+00> : vector<8x128xf32>
    %2 = tpu.matmul %0, %1, %cst {dimension_numbers = #tpu.dot_dimension_numbers<[1], [0], [0], [1], [0, 0, 1, 1], [], []>} : vector<8x1152xbf16>, vector<1152x128xbf16>, vector<8x128xf32> -> vector<8x128xf32>
    %c0_3 = arith.constant 0 : index
    %c0_4 = arith.constant 0 : index
    %3 = vector.load %arg4[%c0_3, %c0_4] : memref<1x128xf32, #tpu.memory_space<vmem>>, vector<1x128xf32>
    %4 = vector.broadcast %3 : vector<1x128xf32> to vector<8x128xf32>
    %5 = arith.mulf %2, %4 : vector<8x128xf32>
    %c0_5 = arith.constant 0 : index
    %c0_6 = arith.constant 0 : index
    %6 = vector.load %arg5[%c0_5, %c0_6] : memref<1x128xf32, #tpu.memory_space<vmem>>, vector<1x128xf32>
    %7 = vector.broadcast %6 : vector<1x128xf32> to vector<8x128xf32>
    %8 = arith.addf %5, %7 : vector<8x128xf32>
    %c0_7 = arith.constant 0 : index
    %c0_8 = arith.constant 0 : index
    %9 = vector.load %arg6[%c0_7, %c0_8] : memref<8x128xbf16, #tpu.memory_space<vmem>>, vector<8x128xbf16>
    %10 = arith.extf %9 : vector<8x128xbf16> to vector<8x128xf32>
    %11 = arith.addf %8, %10 : vector<8x128xf32>
    %cst_9 = arith.constant 0.000000e+00 : f32
    %12 = vector.broadcast %cst_9 : f32 to vector<8x128xf32>
    %13 = arith.maximumf %11, %12 : vector<8x128xf32>
    %14 = arith.truncf %13 : vector<8x128xf32> to vector<8x128xbf16>
    %c0_10 = arith.constant 0 : index
    %c0_11 = arith.constant 0 : index
    %15 = vector.load %arg7[%c0_10, %c0_11] : memref<8x128xbf16, #tpu.memory_space<vmem>>, vector<8x128xbf16>
    tpu.vector_store %arg7[%c0_10, %c0_11], %14 {strides = array<i32>} : memref<8x128xbf16, #tpu.memory_space<vmem>>, vector<8x128xbf16>,
    return
  }
  func.func @transform_0(%arg0: i32, %arg1: i32) -> (i32, i32) {
    %c0_i32 = arith.constant 0 : i32
    %c0_i32_0 = arith.constant 0 : i32
    return %arg0, %c0_i32 : i32, i32
  }
  func.func @transform_1(%arg0: i32, %arg1: i32) -> (i32, i32) {
    %c0_i32 = arith.constant 0 : i32
    %c0_i32_0 = arith.constant 0 : i32
    return %c0_i32, %arg1 : i32, i32
  }
  func.func @transform_2(%arg0: i32, %arg1: i32) -> (i32, i32) {
    %c0_i32 = arith.constant 0 : i32
    %c0_i32_0 = arith.constant 0 : i32
    return %c0_i32, %arg1 : i32, i32
  }
  func.func @transform_3(%arg0: i32, %arg1: i32) -> (i32, i32) {
    %c0_i32 = arith.constant 0 : i32
    %c0_i32_0 = arith.constant 0 : i32
    return %c0_i32, %arg1 : i32, i32
  }
  func.func @transform_4(%arg0: i32, %arg1: i32) -> (i32, i32) {
    %c0_i32 = arith.constant 0 : i32
    return %arg0, %arg1 : i32, i32
  }
  func.func @transform_5(%arg0: i32, %arg1: i32) -> (i32, i32) {
    %c0_i32 = arith.constant 0 : i32
    return %arg0, %arg1 : i32, i32
  }
}

module attributes {stable_mosaic.version = 11 : i64} {
  func.func @_head_kernel(%arg0: i32, %arg1: memref<2x1x128xbf16, #tpu.memory_space<vmem>>, %arg2: memref<128x128xf32, #tpu.memory_space<vmem>>, %arg3: memref<1x128xf32, #tpu.memory_space<vmem>>, %arg4: memref<2x128xf32, #tpu.memory_space<vmem>>) attributes {dimension_semantics = [#tpu.dimension_semantics<arbitrary>], iteration_bounds = array<i64: 1>, scalar_prefetch = 0 : i64, scratch_operands = 0 : i64, tpu.core_type = #tpu.core_type<tc>, window_params = [{pipeline_mode = #tpu.pipeline_mode<synchronous>, transform_indices = @transform_0, window_bounds = array<i64: 2, 1, 128>}, {pipeline_mode = #tpu.pipeline_mode<synchronous>, transform_indices = @transform_1, window_bounds = array<i64: 128, 128>}, {pipeline_mode = #tpu.pipeline_mode<synchronous>, transform_indices = @transform_2, window_bounds = array<i64: 1, 128>}, {pipeline_mode = #tpu.pipeline_mode<synchronous>, transform_indices = @transform_3, window_bounds = array<i64: 2, 128>}]} {
    %c0 = arith.constant 0 : index
    %c0_0 = arith.constant 0 : index
    %c0_1 = arith.constant 0 : index
    %0 = vector.load %arg1[%c0, %c0_0, %c0_1] : memref<2x1x128xbf16, #tpu.memory_space<vmem>>, vector<2x1x128xbf16>
    %1 = arith.extf %0 : vector<2x1x128xbf16> to vector<2x1x128xf32>
    %cst = arith.constant dense<0.000000e+00> : vector<2x128xf32>
    %2 = vector.multi_reduction <add>, %1, %cst [1] : vector<2x1x128xf32> to vector<2x128xf32>
    %cst_2 = arith.constant 1.000000e+00 : f32
    %3 = vector.broadcast %cst_2 : f32 to vector<2x128xf32>
    %4 = arith.divf %2, %3 : vector<2x128xf32>
    %c0_3 = arith.constant 0 : index
    %c0_4 = arith.constant 0 : index
    %5 = vector.load %arg2[%c0_3, %c0_4] : memref<128x128xf32, #tpu.memory_space<vmem>>, vector<128x128xf32>
    %cst_5 = arith.constant dense<0.000000e+00> : vector<2x128xf32>
    %6 = tpu.matmul %4, %5, %cst_5 {dimension_numbers = #tpu.dot_dimension_numbers<[1], [0], [0], [1], [0, 0, 1, 1], [], []>} : vector<2x128xf32>, vector<128x128xf32>, vector<2x128xf32> -> vector<2x128xf32>
    %c0_6 = arith.constant 0 : index
    %c0_7 = arith.constant 0 : index
    %7 = vector.load %arg3[%c0_6, %c0_7] : memref<1x128xf32, #tpu.memory_space<vmem>>, vector<1x128xf32>
    %8 = vector.broadcast %7 : vector<1x128xf32> to vector<2x128xf32>
    %9 = arith.addf %6, %8 : vector<2x128xf32>
    %c0_8 = arith.constant 0 : index
    %c0_9 = arith.constant 0 : index
    %10 = vector.load %arg4[%c0_8, %c0_9] : memref<2x128xf32, #tpu.memory_space<vmem>>, vector<2x128xf32>
    tpu.vector_store %arg4[%c0_8, %c0_9], %9 {strides = array<i32>} : memref<2x128xf32, #tpu.memory_space<vmem>>, vector<2x128xf32>,
    return
  }
  func.func @transform_0(%arg0: i32) -> (i32, i32, i32) {
    %c0_i32 = arith.constant 0 : i32
    %c0_i32_0 = arith.constant 0 : i32
    %c0_i32_1 = arith.constant 0 : i32
    %c0_i32_2 = arith.constant 0 : i32
    return %c0_i32, %c0_i32_0, %c0_i32_1 : i32, i32, i32
  }
  func.func @transform_1(%arg0: i32) -> (i32, i32) {
    %c0_i32 = arith.constant 0 : i32
    %c0_i32_0 = arith.constant 0 : i32
    %c0_i32_1 = arith.constant 0 : i32
    return %c0_i32, %c0_i32_0 : i32, i32
  }
  func.func @transform_2(%arg0: i32) -> (i32, i32) {
    %c0_i32 = arith.constant 0 : i32
    %c0_i32_0 = arith.constant 0 : i32
    %c0_i32_1 = arith.constant 0 : i32
    return %c0_i32, %c0_i32_0 : i32, i32
  }
  func.func @transform_3(%arg0: i32) -> (i32, i32) {
    %c0_i32 = arith.constant 0 : i32
    %c0_i32_0 = arith.constant 0 : i32
    %c0_i32_1 = arith.constant 0 : i32
    return %c0_i32, %c0_i32_0 : i32, i32
  }
}

</mosaic_0001>

<bundles_post_ra>
// kernel: resnet_forward.21
= control target key start
LH: loop header
LB: loop body
LE: loop exit
PB: predicated region body
PF: predicated region fallthrough
CT: control target
= control target key end

     0   :  { %s1388_s15 = smov 0   ;;  %s1390_s16 = smov 0   ;;  %s1562_s0 = inlined_call_operand.vmem [shape: bf16[512,128], index: 0, kind: input, shape index: {}]   ;;  %s1563_s1 = inlined_call_operand.vmem [shape: bf16[128,128], index: 1, kind: input, shape index: {}]   ;;  %s1564_s2 = inlined_call_operand.vmem [shape: f32[1,128], index: 2, kind: input, shape index: {}]   ;;  %s1565_s3 = inlined_call_operand.vmem [shape: f32[1,128], index: 3, kind: input, shape index: {}]   ;;  %s1566_s4 = inlined_call_operand.vmem [shape: bf16[512,128], index: 4, kind: output, shape index: {}]  }
   0x1   :  { %s1392_s17 = smov 0  }
   0x2 LB: > { %s26_s18 = sadd.s32 1, %s1357_s16  ;;  %p1011_p0 = scmp.ge.s32.totalorder %s1361_s17, 1  ;;  %s1361_s17 = sphi %s1392_s17, %s14_s17   ;;  %s1357_s16 = sphi %s1390_s16, %s1568_s16   ;;  %s1353_s15 = sphi %s1388_s15, %s1567_s15  }
   0x3   : > { %p28_p1 = scmp.ge.s32.totalorder %s26_s18, 2  ;;  %p202_p2 = scmp.lt.s32.totalorder %s1361_s17, 3 }
   0x5   : > { %s1570_s18 = smov (%p28_p1, %s26_s18), 0  ;;  %p203_p3 = pnand %p1011_p0, %p202_p2 }
   0x6   : > { %v1315_v0 = vld [vmem:[%s1563_s1] sm:$0xff] (!%p203_p3)   ;;  %s1012_s21 = sshll.u32 (!%p203_p3), %s1353_s15, 5  ;;  %v1316_v1 = vld [vmem:[%s1563_s1 + $0x8] sm:$0xff] (!%p203_p3)   ;;  %v1317_v2 = vld [vmem:[%s1563_s1 + $0x10] sm:$0xff] (!%p203_p3)  }
   0x7   : > { %206 = sbr.rel (%p203_p3) target bundleno = 288 (0x120), region = 36  ;;  %p242_p4 = scmp.lt.s32.totalorder (!%p203_p3), %s1012_s21, 63  ;;  %1227 = vmatprep.subr.bf16.mxu0 (!%p203_p3), %v1315_v0  ;;  %1275 = vmatprep.subr.bf16.mxu1 (!%p203_p3), %v1315_v0  ;;  %v1318_v3 = vld [vmem:[%s1563_s1 + $0x18] sm:$0xff] (!%p203_p3)   ;;  %v1319_v6 = vld [vmem:[%s1563_s1 + $0x20] sm:$0xff] (!%p203_p3)   ;;  %v1320_v7 = vld [vmem:[%s1563_s1 + $0x28] sm:$0xff] (!%p203_p3)  }
   0x8   : > { %1228 = vmatpush3.bf16.msra.mxu0 (!%p203_p3), %v1315_v0  ;;  %1283 = vmatpush3.bf16.msra.mxu1 (!%p203_p3), %v1315_v0  ;;  %v1321_v8 = vld [vmem:[%s1563_s1 + $0x30] sm:$0xff] (!%p203_p3)   ;;  %v1322_v9 = vld [vmem:[%s1563_s1 + $0x38] sm:$0xff] (!%p203_p3)   ;;  %v1459_v24 = vld [vmem:[%s1564_s2] ss:$0 sm:$0xff] (!%p203_p3) }
   0x9   : > { %1229 = vmatprep.subr.bf16.mxu0 (!%p203_p3), %v1316_v1  ;;  %1276 = vmatprep.subr.bf16.mxu1 (!%p203_p3), %v1316_v1  ;;  %v1464_v26 = vld [vmem:[%s1565_s3] ss:$0 sm:$0xff] (!%p203_p3) }
   0xc   : > { %1230 = vmatpush3.bf16.msra.mxu0 (!%p203_p3), %v1316_v1  ;;  %1284 = vmatpush3.bf16.msra.mxu1 (!%p203_p3), %v1316_v1 }
   0xd   : > { %1231 = vmatprep.subr.bf16.mxu0 (!%p203_p3), %v1317_v2  ;;  %1277 = vmatprep.subr.bf16.mxu1 (!%p203_p3), %v1317_v2 }
   0xe   : > { %s1572_s21 = smov (!%p242_p4, %s1012_s21), 63 }
   0xf   : > { %s1013_s26 = sshll.u32 %s1572_s21, 2 }
  0x10   : > { %s1423_s29 = scalar_lea.vmem %s1562_s0, %s1013_s26  ;;  %1232 = vmatpush3.bf16.msra.mxu0 %v1317_v2  ;;  %1285 = vmatpush3.bf16.msra.mxu1 %v1317_v2  ;;  %s1487_s24 = scalar_lea.vmem %s1566_s4, %s1013_s26 }
  0x11   : > { %v1323_v4 = vld [vmem:[%s1423_s29] sm:$0xff]   ;;  %1233 = vmatprep.subr.bf16.mxu0 %v1318_v3  ;;  %1278 = vmatprep.subr.bf16.mxu1 %v1318_v3  ;;  %v1325_v10 = vld [vmem:[%s1423_s29 + $0x8] sm:$0xff]   ;;  %v1327_v12 = vld [vmem:[%s1423_s29 + $0x10] sm:$0xff]  }
  0x12   : > { %v1324_v5 = vld [vmem:[%s1423_s29 + $0x40] sm:$0xff]   ;;  %1243 = vmatprep.mubr.bf16.mxu0 %v1323_v4  ;;  %v1326_v11 = vld [vmem:[%s1423_s29 + $0x48] sm:$0xff]   ;;  %v1328_v13 = vld [vmem:[%s1423_s29 + $0x50] sm:$0xff]  }
  0x13   : > { %1259 = vmatprep.mubr.bf16.mxu1 %v1324_v5  ;;  %v1329_v14 = vld [vmem:[%s1423_s29 + $0x18] sm:$0xff]   ;;  %v1331_v16 = vld [vmem:[%s1423_s29 + $0x20] sm:$0xff]   ;;  %v1333_v18 = vld [vmem:[%s1423_s29 + $0x28] sm:$0xff]  }
  0x14   : > { %1234 = vmatpush3.bf16.msra.mxu0 %v1318_v3  ;;  %1286 = vmatpush3.bf16.msra.mxu1 %v1318_v3  ;;  %v1330_v15 = vld [vmem:[%s1423_s29 + $0x58] sm:$0xff]   ;;  %v1332_v17 = vld [vmem:[%s1423_s29 + $0x60] sm:$0xff]   ;;  %v1334_v19 = vld [vmem:[%s1423_s29 + $0x68] sm:$0xff]  }
  0x15   : > { %1235 = vmatprep.subr.bf16.mxu0 %v1319_v6  ;;  %1279 = vmatprep.subr.bf16.mxu1 %v1319_v6  ;;  %v1335_v20 = vld [vmem:[%s1423_s29 + $0x30] sm:$0xff]   ;;  %v1337_v22 = vld [vmem:[%s1423_s29 + $0x38] sm:$0xff]  }
  0x16   : > { %v1336_v21 = vld [vmem:[%s1423_s29 + $0x70] sm:$0xff]   ;;  %v1338_v23 = vld [vmem:[%s1423_s29 + $0x78] sm:$0xff]  }
  0x18   : > { %1236 = vmatpush3.bf16.msra.mxu0 %v1319_v6  ;;  %1287 = vmatpush3.bf16.msra.mxu1 %v1319_v6 }
  0x19   : > { %1237 = vmatprep.subr.bf16.mxu0 %v1320_v7  ;;  %1280 = vmatprep.subr.bf16.mxu1 %v1320_v7 }
  0x1c   : > { %1238 = vmatpush3.bf16.msra.mxu0 %v1320_v7  ;;  %1288 = vmatpush3.bf16.msra.mxu1 %v1320_v7 }
  0x1d   : > { %1239 = vmatprep.subr.bf16.mxu0 %v1321_v8  ;;  %1281 = vmatprep.subr.bf16.mxu1 %v1321_v8 }
  0x20   : > { %1240 = vmatpush3.bf16.msra.mxu0 %v1321_v8  ;;  %1289 = vmatpush3.bf16.msra.mxu1 %v1321_v8 }
  0x21   : > { %1241 = vmatprep.subr.bf16.mxu0 %v1322_v9  ;;  %1282 = vmatprep.subr.bf16.mxu1 %v1322_v9 }
  0x24   : > { %1242 = vmatpush3.bf16.msra.mxu0 %v1322_v9  ;;  %1290 = vmatpush3.bf16.msra.mxu1 %v1322_v9 }
  0x27   : > { %1244 = vmatmul.mubr.bf16.vlgmr.msra.gmra.mrb[0].mxu0 %v1325_v10  ;;  %1260 = vmatmul.mubr.bf16.vlgmr.msra.gmra.mrb[0].mxu1 %v1326_v11 }
  0x28   : > { %1247 = vmatprep.mubr.bf16.mxu0 %v1327_v12  ;;  %1263 = vmatprep.mubr.bf16.mxu1 %v1328_v13 }
  0x2f   : > { %1248 = vmatmul.mubr.bf16.gmra.mrb[4].mxu0 %v1329_v14  ;;  %1264 = vmatmul.mubr.bf16.gmra.mrb[4].mxu1 %v1330_v15 }
  0x30   : > { %1251 = vmatprep.mubr.bf16.mxu0 %v1331_v16  ;;  %1267 = vmatprep.mubr.bf16.mxu1 %v1332_v17 }
  0x37   : > { %1252 = vmatmul.mubr.bf16.gmra.mrb[8].mxu0 %v1333_v18  ;;  %1268 = vmatmul.mubr.bf16.gmra.mrb[8].mxu1 %v1334_v19 }
  0x38   : > { %1255 = vmatprep.mubr.bf16.mxu0 %v1335_v20  ;;  %1271 = vmatprep.mubr.bf16.mxu1 %v1336_v21 }
  0x3f   : > { %1256 = vmatmul.mubr.bf16.gmra.mrb[12].mxu0 %v1337_v22  ;;  %1272 = vmatmul.mubr.bf16.gmra.mrb[12].mxu1 %v1338_v23 }
  0xfa   : > { %v1245_v25 = vpop.f32.mrb[0].mxu0  ;;  %v1261_v27 = vpop.f32.mrb[0].mxu1 }
  0xfb   : > { %v629_v28 = vmul.f32 %v1245_v25, %v1459_v24  ;;  %v645_v29 = vmul.f32 %v1261_v27, %v1459_v24  ;;  %v493_v30 = vpop.f32.mrb[1].mxu0  ;;  %v557_v31 = vpop.f32.mrb[1].mxu1 }
  0xfc   : > { %v627_v32 = vmul.f32 %v1459_v24, %v493_v30  ;;  %v643_v33 = vmul.f32 %v1459_v24, %v557_v31  ;;  %v1246_v34 = vpop.f32.mrb[2].mxu0  ;;  %v1262_v35 = vpop.f32.mrb[2].mxu1 }
  0xfd   : > { %v668_v36 = vadd.f32 %v1464_v26, %v629_v28  ;;  %v684_v37 = vadd.f32 %v1464_v26, %v645_v29  ;;  %v630_v38 = vmul.f32 %v1246_v34, %v1459_v24  ;;  %v646_v39 = vmul.f32 %v1262_v35, %v1459_v24  ;;  %v496_v40 = vpop.f32.mrb[3].mxu0  ;;  %v560_v41 = vpop.f32.mrb[3].mxu1 }
  0xfe   : > { %v666_v42 = vadd.f32 %v1464_v26, %v627_v32  ;;  %v682_v43 = vadd.f32 %v1464_v26, %v643_v33  ;;  %v628_v44 = vmul.f32 %v1459_v24, %v496_v40  ;;  %v644_v45 = vmul.f32 %v1459_v24, %v560_v41 }
  0xff   : > { %v669_v46 = vadd.f32 %v1464_v26, %v630_v38  ;;  %v685_v47 = vadd.f32 %v1464_v26, %v646_v39  ;;  %v700_v50 = vmax.f32 %v668_v36, 0.0  ;;  %v716_v51 = vmax.f32 %v684_v37, 0.0 }
 0x100   : > { %v667_v48 = vadd.f32 %v1464_v26, %v628_v44  ;;  %v683_v49 = vadd.f32 %v1464_v26, %v644_v45  ;;  %v698_v54 = vmax.f32 %v666_v42, 0.0  ;;  %v714_v55 = vmax.f32 %v682_v43, 0.0 }
 0x101   : > { %v701_v52 = vmax.f32 %v669_v46, 0.0  ;;  %v717_v53 = vmax.f32 %v685_v47, 0.0 }
 0x102   : > { %v699_v56 = vmax.f32 %v667_v48, 0.0  ;;  %v715_v57 = vmax.f32 %v683_v49, 0.0  ;;  %v1249_v58 = vpop.f32.mrb[4].mxu0  ;;  %v1265_v59 = vpop.f32.mrb[4].mxu1 }
 0x103   : > { %v1116_v60 = vpack.c.bf16 %v701_v52, %v700_v50  ;;  %v1156_v61 = vpack.c.bf16 %v717_v53, %v716_v51  ;;  %v633_v62 = vmul.f32 %v1249_v58, %v1459_v24  ;;  %v649_v63 = vmul.f32 %v1265_v59, %v1459_v24  ;;  %v509_v0 = vpop.f32.mrb[5].mxu0  ;;  %v573_v1 = vpop.f32.mrb[5].mxu1 }
 0x104   : > { %v1111_v2 = vpack.c.bf16 %v699_v56, %v698_v54  ;;  %v1151_v3 = vpack.c.bf16 %v715_v57, %v714_v55  ;;  %v631_v4 = vmul.f32 %v1459_v24, %v509_v0  ;;  %v647_v5 = vmul.f32 %v1459_v24, %v573_v1  ;;  %v1250_v6 = vpop.f32.mrb[6].mxu0  ;;  %v1266_v7 = vpop.f32.mrb[6].mxu1 }
 0x105   : > { %1188 = vst [vmem:[%s1487_s24 + $0x8] sm:$0xff] %v1116_v60   ;;  %1196 = vst [vmem:[%s1487_s24 + $0x48] sm:$0xff] %v1156_v61   ;;  %v672_v8 = vadd.f32 %v1464_v26, %v633_v62  ;;  %v688_v9 = vadd.f32 %v1464_v26, %v649_v63  ;;  %v634_v10 = vmul.f32 %v1250_v6, %v1459_v24  ;;  %v512_v12 = vpop.f32.mrb[7].mxu0  ;;  %v576_v13 = vpop.f32.mrb[7].mxu1 }
 0x106   : > { %v650_v11 = vmul.f32 %v1266_v7, %v1459_v24  ;;  %1112 = vst [vmem:[%s1487_s24] sm:$0xff] %v1111_v2   ;;  %1195 = vst [vmem:[%s1487_s24 + $0x40] sm:$0xff] %v1151_v3   ;;  %v670_v14 = vadd.f32 %v1464_v26, %v631_v4  ;;  %v686_v15 = vadd.f32 %v1464_v26, %v647_v5 }
 0x107   : > { %v632_v16 = vmul.f32 %v1459_v24, %v512_v12  ;;  %v648_v17 = vmul.f32 %v1459_v24, %v576_v13  ;;  %v673_v18 = vadd.f32 %v1464_v26, %v634_v10  ;;  %v704_v22 = vmax.f32 %v672_v8, 0.0 }
 0x108   : > { %v689_v19 = vadd.f32 %v1464_v26, %v650_v11  ;;  %v720_v23 = vmax.f32 %v688_v9, 0.0  ;;  %v702_v28 = vmax.f32 %v670_v14, 0.0  ;;  %v718_v29 = vmax.f32 %v686_v15, 0.0 }
 0x109   : > { %v671_v20 = vadd.f32 %v1464_v26, %v632_v16  ;;  %v687_v21 = vadd.f32 %v1464_v26, %v648_v17  ;;  %v705_v25 = vmax.f32 %v673_v18, 0.0 }
 0x10a   : > { %v721_v27 = vmax.f32 %v689_v19, 0.0  ;;  %v1253_v32 = vpop.f32.mrb[8].mxu0  ;;  %v1269_v33 = vpop.f32.mrb[8].mxu1 }
 0x10b   : > { %v703_v30 = vmax.f32 %v671_v20, 0.0  ;;  %v719_v31 = vmax.f32 %v687_v21, 0.0  ;;  %v1126_v34 = vpack.c.bf16 %v705_v25, %v704_v22  ;;  %v637_v36 = vmul.f32 %v1253_v32, %v1459_v24  ;;  %v525_v38 = vpop.f32.mrb[9].mxu0  ;;  %v589_v39 = vpop.f32.mrb[9].mxu1 }
 0x10c   : > { %v1166_v35 = vpack.c.bf16 %v721_v27, %v720_v23  ;;  %v653_v37 = vmul.f32 %v1269_v33, %v1459_v24  ;;  %v635_v42 = vmul.f32 %v1459_v24, %v525_v38  ;;  %v651_v43 = vmul.f32 %v1459_v24, %v589_v39  ;;  %v1254_v44 = vpop.f32.mrb[10].mxu0  ;;  %v1270_v45 = vpop.f32.mrb[10].mxu1 }
 0x10d   : > { %v1121_v40 = vpack.c.bf16 %v703_v30, %v702_v28  ;;  %v1161_v41 = vpack.c.bf16 %v719_v31, %v718_v29  ;;  %1190 = vst [vmem:[%s1487_s24 + $0x18] sm:$0xff] %v1126_v34   ;;  %v676_v46 = vadd.f32 %v1464_v26, %v637_v36  ;;  %v638_v48 = vmul.f32 %v1254_v44, %v1459_v24  ;;  %v528_v50 = vpop.f32.mrb[11].mxu0  ;;  %v592_v51 = vpop.f32.mrb[11].mxu1 }
 0x10e   : > { %1198 = vst [vmem:[%s1487_s24 + $0x58] sm:$0xff] %v1166_v35   ;;  %v692_v47 = vadd.f32 %v1464_v26, %v653_v37  ;;  %v654_v49 = vmul.f32 %v1270_v45, %v1459_v24  ;;  %v674_v52 = vadd.f32 %v1464_v26, %v635_v42  ;;  %v690_v53 = vadd.f32 %v1464_v26, %v651_v43 }
 0x10f   : > { %1189 = vst [vmem:[%s1487_s24 + $0x10] sm:$0xff] %v1121_v40   ;;  %1197 = vst [vmem:[%s1487_s24 + $0x50] sm:$0xff] %v1161_v41   ;;  %v636_v54 = vmul.f32 %v1459_v24, %v528_v50  ;;  %v652_v55 = vmul.f32 %v1459_v24, %v592_v51  ;;  %v677_v56 = vadd.f32 %v1464_v26, %v638_v48  ;;  %v708_v60 = vmax.f32 %v676_v46, 0.0 }
 0x110   : > { %v693_v57 = vadd.f32 %v1464_v26, %v654_v49  ;;  %v724_v61 = vmax.f32 %v692_v47, 0.0  ;;  %v706_v0 = vmax.f32 %v674_v52, 0.0  ;;  %v722_v1 = vmax.f32 %v690_v53, 0.0 }
 0x111   : > { %v675_v58 = vadd.f32 %v1464_v26, %v636_v54  ;;  %v691_v59 = vadd.f32 %v1464_v26, %v652_v55  ;;  %v709_v62 = vmax.f32 %v677_v56, 0.0 }
 0x112   : > { %v725_v63 = vmax.f32 %v693_v57, 0.0  ;;  %v1257_v4 = vpop.f32.mrb[12].mxu0  ;;  %v1273_v5 = vpop.f32.mrb[12].mxu1 }
 0x113   : > { %v707_v2 = vmax.f32 %v675_v58, 0.0  ;;  %v723_v3 = vmax.f32 %v691_v59, 0.0  ;;  %v1136_v6 = vpack.c.bf16 %v709_v62, %v708_v60  ;;  %v641_v8 = vmul.f32 %v1257_v4, %v1459_v24  ;;  %v541_v10 = vpop.f32.mrb[13].mxu0  ;;  %v605_v11 = vpop.f32.mrb[13].mxu1 }
 0x114   : > { %v1176_v7 = vpack.c.bf16 %v725_v63, %v724_v61  ;;  %v657_v9 = vmul.f32 %v1273_v5, %v1459_v24  ;;  %v639_v14 = vmul.f32 %v1459_v24, %v541_v10  ;;  %v655_v15 = vmul.f32 %v1459_v24, %v605_v11  ;;  %v1258_v16 = vpop.f32.mrb[14].mxu0  ;;  %v1274_v17 = vpop.f32.mrb[14].mxu1 }
 0x115   : > { %v1131_v12 = vpack.c.bf16 %v707_v2, %v706_v0  ;;  %v1171_v13 = vpack.c.bf16 %v723_v3, %v722_v1  ;;  %1192 = vst [vmem:[%s1487_s24 + $0x28] sm:$0xff] %v1136_v6   ;;  %v680_v18 = vadd.f32 %v1464_v26, %v641_v8  ;;  %v642_v20 = vmul.f32 %v1258_v16, %v1459_v24  ;;  %v544_v22 = vpop.f32.mrb[15].mxu0  ;;  %v608_v23 = vpop.f32.mrb[15].mxu1 }
 0x116   : > { %1200 = vst [vmem:[%s1487_s24 + $0x68] sm:$0xff] %v1176_v7   ;;  %v696_v19 = vadd.f32 %v1464_v26, %v657_v9  ;;  %v658_v21 = vmul.f32 %v1274_v17, %v1459_v24  ;;  %v678_v25 = vadd.f32 %v1464_v26, %v639_v14  ;;  %v694_v27 = vadd.f32 %v1464_v26, %v655_v15 }
 0x117   : > { %1191 = vst [vmem:[%s1487_s24 + $0x20] sm:$0xff] %v1131_v12   ;;  %1199 = vst [vmem:[%s1487_s24 + $0x60] sm:$0xff] %v1171_v13   ;;  %v640_v28 = vmul.f32 %v1459_v24, %v544_v22  ;;  %v656_v29 = vmul.f32 %v1459_v24, %v608_v23  ;;  %v681_v30 = vadd.f32 %v1464_v26, %v642_v20  ;;  %v712_v34 = vmax.f32 %v680_v18, 0.0 }
 0x118   : > { %v697_v31 = vadd.f32 %v1464_v26, %v658_v21  ;;  %v728_v35 = vmax.f32 %v696_v19, 0.0  ;;  %v710_v38 = vmax.f32 %v678_v25, 0.0  ;;  %v726_v39 = vmax.f32 %v694_v27, 0.0 }
 0x119   : > { %v679_v32 = vadd.f32 %v1464_v26, %v640_v28  ;;  %v695_v33 = vadd.f32 %v1464_v26, %v656_v29  ;;  %v713_v36 = vmax.f32 %v681_v30, 0.0 }
 0x11a   : > { %v729_v37 = vmax.f32 %v697_v31, 0.0 }
 0x11b   : > { %v711_v40 = vmax.f32 %v679_v32, 0.0  ;;  %v727_v24 = vmax.f32 %v695_v33, 0.0  ;;  %v1146_v41 = vpack.c.bf16 %v713_v36, %v712_v34 }
 0x11c   : > { %v1186_v42 = vpack.c.bf16 %v729_v37, %v728_v35 }
 0x11d   : > { %v1141_v43 = vpack.c.bf16 %v711_v40, %v710_v38  ;;  %v1181_v44 = vpack.c.bf16 %v727_v24, %v726_v39  ;;  %1194 = vst [vmem:[%s1487_s24 + $0x38] sm:$0xff] %v1146_v41  }
 0x11e   : > { %1202 = vst [vmem:[%s1487_s24 + $0x78] sm:$0xff] %v1186_v42  }
 0x11f   : > { %1193 = vst [vmem:[%s1487_s24 + $0x30] sm:$0xff] %v1141_v43   ;;  %1201 = vst [vmem:[%s1487_s24 + $0x70] sm:$0xff] %v1181_v44  }
 0x120 PF: > { %s14_s17 = sadd.s32 1, %s1361_s17   ;;  %s1567_s15 = smov %s1357_s16 }
 0x121   : > { %p11_p5 = scmp.ge.s32.totalorder %s14_s17, 4   ;;  %s1568_s16 = smov %s1570_s18 }
 0x123   :  { %13 = sbr.rel (!%p11_p5) target bundleno = 2 (0x2), region = 75 }

// kernel: resnet_forward.22
= control target key start
LH: loop header
LB: loop body
LE: loop exit
PB: predicated region body
PF: predicated region fallthrough
CT: control target
= control target key end

     0   :  { %s2160_s15 = smov 0   ;;  %s2162_s16 = smov 0   ;;  %s2463_s0 = inlined_call_operand.vmem [shape: bf16[128,1152], index: 0, kind: input, shape index: {}]   ;;  %s2464_s1 = inlined_call_operand.vmem [shape: bf16[1152,128], index: 1, kind: input, shape index: {}]   ;;  %s2465_s2 = inlined_call_operand.vmem [shape: f32[1,128], index: 2, kind: input, shape index: {}]   ;;  %s2466_s3 = inlined_call_operand.vmem [shape: f32[1,128], index: 3, kind: input, shape index: {}]   ;;  %s2467_s4 = inlined_call_operand.vmem [shape: bf16[128,128], index: 4, kind: output, shape index: {}]  }
   0x1   :  { %s2164_s17 = smov 0  }
   0x2 LB: > { %s26_s18 = sadd.s32 1, %s2129_s16  ;;  %p1594_p0 = scmp.ge.s32.totalorder %s2133_s17, 1  ;;  %s2133_s17 = sphi %s2164_s17, %s14_s17   ;;  %s2129_s16 = sphi %s2162_s16, %s2469_s16   ;;  %s2125_s15 = sphi %s2160_s15, %s2468_s15  }
   0x3   : > { %p28_p1 = scmp.ge.s32.totalorder %s26_s18, 2  ;;  %p203_p2 = scmp.lt.s32.totalorder %s2133_s17, 3 }
   0x5   : > { %s2471_s18 = smov (%p28_p1, %s26_s18), 0  ;;  %p204_p3 = pnand %p1594_p0, %p203_p2 }
   0x6   : > { %v1987_v0 = vld [vmem:[%s2464_s1 + $0x40] sm:$0xff] (!%p204_p3)   ;;  %v1991_v4 = vld [vmem:[%s2464_s1 + $0x48] sm:$0xff] (!%p204_p3)   ;;  %v1995_v8 = vld [vmem:[%s2464_s1 + $0x50] sm:$0xff] (!%p204_p3)   ;;  %s1595_s27 = sshll.u32 (!%p204_p3), %s2125_s15, 3 }
   0x7   : > { %207 = sbr.rel (%p204_p3) target bundleno = 332 (0x14c), region = 36  ;;  %v1988_v1 = vld [vmem:[%s2464_s1 + $0xc0] sm:$0xff] (!%p204_p3)   ;;  %1750 = vmatprep.subr.bf16.mxu0 (!%p204_p3), %v1987_v0  ;;  %v1992_v5 = vld [vmem:[%s2464_s1 + $0xc8] sm:$0xff] (!%p204_p3)   ;;  %v1996_v9 = vld [vmem:[%s2464_s1 + $0xd0] sm:$0xff] (!%p204_p3)   ;;  %p244_p4 = scmp.lt.s32.totalorder (!%p204_p3), %s1595_s27, 15 }
   0x8   : > { %v1989_v2 = vld [vmem:[%s2464_s1] sm:$0xff] (!%p204_p3)   ;;  %1790 = vmatprep.subr.bf16.mxu1 (!%p204_p3), %v1988_v1  ;;  %v1993_v6 = vld [vmem:[%s2464_s1 + $0x8] sm:$0xff] (!%p204_p3)   ;;  %v1997_v10 = vld [vmem:[%s2464_s1 + $0x10] sm:$0xff] (!%p204_p3)  }
   0x9   : > { %v1990_v3 = vld [vmem:[%s2464_s1 + $0x80] sm:$0xff] (!%p204_p3)   ;;  %1751 = vmatpush3.bf16.msra.mxu0 (!%p204_p3), %v1989_v2  ;;  %v1994_v7 = vld [vmem:[%s2464_s1 + $0x88] sm:$0xff] (!%p204_p3)   ;;  %v1998_v11 = vld [vmem:[%s2464_s1 + $0x90] sm:$0xff] (!%p204_p3)  }
   0xa   : > { %1791 = vmatpush3.bf16.msra.mxu1 (!%p204_p3), %v1990_v3  ;;  %1752 = vmatprep.subr.bf16.mxu0 (!%p204_p3), %v1991_v4  ;;  %v1999_v12 = vld [vmem:[%s2464_s1 + $0x58] sm:$0xff] (!%p204_p3)   ;;  %v2003_v16 = vld [vmem:[%s2464_s1 + $0x60] sm:$0xff] (!%p204_p3)   ;;  %v2007_v20 = vld [vmem:[%s2464_s1 + $0x68] sm:$0xff] (!%p204_p3)  }
   0xb   : > { %1792 = vmatprep.subr.bf16.mxu1 (!%p204_p3), %v1992_v5  ;;  %v2000_v13 = vld [vmem:[%s2464_s1 + $0xd8] sm:$0xff] (!%p204_p3)   ;;  %v2004_v17 = vld [vmem:[%s2464_s1 + $0xe0] sm:$0xff] (!%p204_p3)   ;;  %v2008_v21 = vld [vmem:[%s2464_s1 + $0xe8] sm:$0xff] (!%p204_p3)  }
   0xc   : > { %v2001_v14 = vld [vmem:[%s2464_s1 + $0x18] sm:$0xff] (!%p204_p3)   ;;  %v2005_v18 = vld [vmem:[%s2464_s1 + $0x20] sm:$0xff] (!%p204_p3)   ;;  %v2009_v22 = vld [vmem:[%s2464_s1 + $0x28] sm:$0xff] (!%p204_p3)  }
   0xd   : > { %1753 = vmatpush3.bf16.msra.mxu0 (!%p204_p3), %v1993_v6  ;;  %v2002_v15 = vld [vmem:[%s2464_s1 + $0x98] sm:$0xff] (!%p204_p3)   ;;  %v2006_v19 = vld [vmem:[%s2464_s1 + $0xa0] sm:$0xff] (!%p204_p3)   ;;  %v2010_v23 = vld [vmem:[%s2464_s1 + $0xa8] sm:$0xff] (!%p204_p3)  }
   0xe   : > { %1793 = vmatpush3.bf16.msra.mxu1 %v1994_v7  ;;  %1754 = vmatprep.subr.bf16.mxu0 %v1995_v8  ;;  %s2473_s27 = smov (!%p244_p4, %s1595_s27), 15  ;;  %v2011_v24 = vld [vmem:[%s2464_s1 + $0x70] sm:$0xff]   ;;  %v2015_v28 = vld [vmem:[%s2464_s1 + $0x78] sm:$0xff]   ;;  %v2025_v36 = vld [vmem:[%s2464_s1 + $0x140] sm:$0xff]  }
   0xf   : > { %1794 = vmatprep.subr.bf16.mxu1 %v1996_v9  ;;  %v2012_v25 = vld [vmem:[%s2464_s1 + $0xf0] sm:$0xff]   ;;  %s1962_s28 = smul.u32 36, %s2473_s27  ;;  %v2016_v29 = vld [vmem:[%s2464_s1 + $0xf8] sm:$0xff]   ;;  %v2026_v37 = vld [vmem:[%s2464_s1 + $0x1c0] sm:$0xff]   ;;  %s1598_s20 = sshll.u32 %s2473_s27, 2 }
  0x10   : > { %v2013_v26 = vld [vmem:[%s2464_s1 + $0x30] sm:$0xff]   ;;  %v2017_v30 = vld [vmem:[%s2464_s1 + $0x38] sm:$0xff]   ;;  %v2027_v38 = vld [vmem:[%s2464_s1 + $0x100] sm:$0xff]   ;;  %s267_s23 = scalar_lea.vmem %s2467_s4, %s1598_s20 }
  0x11   : > { %1755 = vmatpush3.bf16.msra.mxu0 %v1997_v10  ;;  %v2014_v27 = vld [vmem:[%s2464_s1 + $0xb0] sm:$0xff]   ;;  %s2277_s12 = scalar_lea.vmem %s2463_s0, %s1962_s28  ;;  %v2018_v31 = vld [vmem:[%s2464_s1 + $0xb8] sm:$0xff]   ;;  %v2028_v39 = vld [vmem:[%s2464_s1 + $0x180] sm:$0xff]  }
  0x12   : > { %1795 = vmatpush3.bf16.msra.mxu1 %v1998_v11  ;;  %1756 = vmatprep.subr.bf16.mxu0 %v1999_v12  ;;  %v2019_v32 = vld [vmem:[%s2277_s12] ss:$36 sps:$4 sm:$0xff]   ;;  %v2022_v34 = vld [vmem:[%s2277_s12 + $0x8] ss:$36 sps:$4 sm:$0xff]   ;;  %v2035_v45 = vld [vmem:[%s2277_s12 + $0x54] ss:$36 sps:$4 sm:$0xff]  }
  0x13   : > { %1796 = vmatprep.subr.bf16.mxu1 %v2000_v13  ;;  %v2021_v33 = vld [vmem:[%s2277_s12 + $0x4] ss:$36 sps:$4 sm:$0xff]   ;;  %v2024_v35 = vld [vmem:[%s2277_s12 + $0xc] ss:$36 sps:$4 sm:$0xff]   ;;  %v2043_v52 = vld [vmem:[%s2464_s1 + $0x158] sm:$0xff]  }
  0x14   : > { %1102 = vmatprep.mubr.bf16.mxu0 %v2021_v33  ;;  %1167 = vmatprep.mubr.bf16.mxu1 %v2024_v35  ;;  %v2029_v40 = vld [vmem:[%s2464_s1 + $0x148] sm:$0xff]   ;;  %v2038_v47 = vld [vmem:[%s2277_s12 + $0x50] ss:$36 sps:$4 sm:$0xff]   ;;  %v2044_v53 = vld [vmem:[%s2464_s1 + $0x1d8] sm:$0xff]  }
  0x15   : > { %1757 = vmatpush3.bf16.msra.mxu0 %v2001_v14  ;;  %v2030_v41 = vld [vmem:[%s2464_s1 + $0x1c8] sm:$0xff]   ;;  %v2039_v48 = vld [vmem:[%s2464_s1 + $0x150] sm:$0xff]   ;;  %v2045_v54 = vld [vmem:[%s2464_s1 + $0x118] sm:$0xff]  }
  0x16   : > { %1797 = vmatpush3.bf16.msra.mxu1 %v2002_v15  ;;  %1758 = vmatprep.subr.bf16.mxu0 %v2003_v16  ;;  %v2031_v42 = vld [vmem:[%s2464_s1 + $0x108] sm:$0xff]   ;;  %v2040_v49 = vld [vmem:[%s2464_s1 + $0x1d0] sm:$0xff]   ;;  %v2046_v55 = vld [vmem:[%s2464_s1 + $0x198] sm:$0xff]  }
  0x17   : > { %1798 = vmatprep.subr.bf16.mxu1 %v2004_v17  ;;  %v2032_v43 = vld [vmem:[%s2464_s1 + $0x188] sm:$0xff]   ;;  %v2041_v50 = vld [vmem:[%s2464_s1 + $0x110] sm:$0xff]   ;;  %v2049_v57 = vld [vmem:[%s2277_s12 + $0x9c] ss:$36 sps:$4 sm:$0xff]  }
  0x18   : > { %v2033_v44 = vld [vmem:[%s2277_s12 + $0x4c] ss:$36 sps:$4 sm:$0xff]   ;;  %v2047_v56 = vld [vmem:[%s2277_s12 + $0x94] ss:$36 sps:$4 sm:$0xff]   ;;  %v2053_v60 = vld [vmem:[%s2464_s1 + $0x160] sm:$0xff]  }
  0x19   : > { %1759 = vmatpush3.bf16.msra.mxu0 %v2005_v18  ;;  %v2037_v46 = vld [vmem:[%s2277_s12 + $0x48] ss:$36 sps:$4 sm:$0xff]   ;;  %v2042_v51 = vld [vmem:[%s2464_s1 + $0x190] sm:$0xff]   ;;  %v2052_v59 = vld [vmem:[%s2277_s12 + $0x98] ss:$36 sps:$4 sm:$0xff]  }
  0x1a   : > { %1799 = vmatpush3.bf16.msra.mxu1 %v2006_v19  ;;  %1760 = vmatprep.subr.bf16.mxu0 %v2007_v20  ;;  %v2051_v58 = vld [vmem:[%s2277_s12 + $0x90] ss:$36 sps:$4 sm:$0xff]   ;;  %v2054_v61 = vld [vmem:[%s2464_s1 + $0x1e0] sm:$0xff]   ;;  %v2057_v0 = vld [vmem:[%s2464_s1 + $0x168] sm:$0xff]  }
  0x1b   : > { %1800 = vmatprep.subr.bf16.mxu1 %v2008_v21  ;;  %v2055_v62 = vld [vmem:[%s2464_s1 + $0x120] sm:$0xff]   ;;  %v2058_v1 = vld [vmem:[%s2464_s1 + $0x1e8] sm:$0xff]   ;;  %v2065_v6 = vld [vmem:[%s2277_s12 + $0xd8] ss:$36 sps:$4 sm:$0xff]  }
  0x1c   : > { %v2056_v63 = vld [vmem:[%s2464_s1 + $0x1a0] sm:$0xff]   ;;  %v2059_v2 = vld [vmem:[%s2464_s1 + $0x128] sm:$0xff]   ;;  %v2067_v8 = vld [vmem:[%s2464_s1 + $0x170] sm:$0xff]  }
  0x1d   : > { %1761 = vmatpush3.bf16.msra.mxu0 %v2009_v22  ;;  %v2060_v3 = vld [vmem:[%s2464_s1 + $0x1a8] sm:$0xff]   ;;  %v2061_v4 = vld [vmem:[%s2277_s12 + $0xdc] ss:$36 sps:$4 sm:$0xff]   ;;  %v2068_v9 = vld [vmem:[%s2464_s1 + $0x1f0] sm:$0xff]  }
  0x1e   : > { %1801 = vmatpush3.bf16.msra.mxu1 %v2010_v23  ;;  %1762 = vmatprep.subr.bf16.mxu0 %v2011_v24  ;;  %v2063_v5 = vld [vmem:[%s2277_s12 + $0xe4] ss:$36 sps:$4 sm:$0xff]   ;;  %v2069_v10 = vld [vmem:[%s2464_s1 + $0x130] sm:$0xff]   ;;  %v2071_v12 = vld [vmem:[%s2464_s1 + $0x178] sm:$0xff]  }
  0x1f   : > { %1802 = vmatprep.subr.bf16.mxu1 %v2012_v25  ;;  %v2066_v7 = vld [vmem:[%s2277_s12 + $0xe0] ss:$36 sps:$4 sm:$0xff]   ;;  %v2070_v11 = vld [vmem:[%s2464_s1 + $0x1b0] sm:$0xff]   ;;  %v2072_v13 = vld [vmem:[%s2464_s1 + $0x1f8] sm:$0xff]  }
  0x20   : > { %v2073_v14 = vld [vmem:[%s2464_s1 + $0x138] sm:$0xff]   ;;  %v2075_v16 = vld [vmem:[%s2277_s12 + $0x10] ss:$36 sps:$4 sm:$0xff]   ;;  %v2081_v20 = vld [vmem:[%s2464_s1 + $0x200] sm:$0xff]  }
  0x21   : > { %1763 = vmatpush3.bf16.msra.mxu0 %v2013_v26  ;;  %v2074_v15 = vld [vmem:[%s2464_s1 + $0x1b8] sm:$0xff]   ;;  %v2082_v21 = vld [vmem:[%s2464_s1 + $0x208] sm:$0xff]   ;;  %v2088_v25 = vld [vmem:[%s2277_s12 + $0x60] ss:$36 sps:$4 sm:$0xff]  }
  0x22   : > { %1803 = vmatpush3.bf16.msra.mxu1 %v2014_v27  ;;  %1764 = vmatprep.subr.bf16.mxu0 %v2015_v28  ;;  %v2077_v17 = vld [vmem:[%s2277_s12 + $0x14] ss:$36 sps:$4 sm:$0xff]   ;;  %v2080_v19 = vld [vmem:[%s2277_s12 + $0x1c] ss:$36 sps:$4 sm:$0xff]   ;;  %v2085_v23 = vld [vmem:[%s2277_s12 + $0x64] ss:$36 sps:$4 sm:$0xff]  }
  0x23   : > { %1804 = vmatprep.subr.bf16.mxu1 %v2016_v29  ;;  %v2078_v18 = vld [vmem:[%s2277_s12 + $0x18] ss:$36 sps:$4 sm:$0xff]   ;;  %v2089_v26 = vld [vmem:[%s2464_s1 + $0x210] sm:$0xff]   ;;  %v2091_v27 = vld [vmem:[%s2277_s12 + $0xa4] ss:$36 sps:$4 sm:$0xff]  }
  0x24   : > { %v2083_v22 = vld [vmem:[%s2277_s12 + $0x5c] ss:$36 sps:$4 sm:$0xff]   ;;  %v2093_v28 = vld [vmem:[%s2277_s12 + $0xac] ss:$36 sps:$4 sm:$0xff]  }
  0x25   : > { %1765 = vmatpush3.bf16.msra.mxu0 %v2017_v30  ;;  %v2087_v24 = vld [vmem:[%s2277_s12 + $0x58] ss:$36 sps:$4 sm:$0xff]   ;;  %v2095_v30 = vld [vmem:[%s2277_s12 + $0xa0] ss:$36 sps:$4 sm:$0xff]   ;;  %v2099_v33 = vld [vmem:[%s2277_s12 + $0xec] ss:$36 sps:$4 sm:$0xff]  }
  0x26   : > { %1805 = vmatpush3.bf16.msra.mxu1 %v2018_v31  ;;  %1830 = vmatprep.subr.bf16.mxu0 %v2025_v36  ;;  %v2090_v29 = vld [vmem:[%s2464_s1 + $0x218] sm:$0xff]   ;;  %v2096_v31 = vld [vmem:[%s2277_s12 + $0xa8] ss:$36 sps:$4 sm:$0xff]  }
  0x27   : > { %1870 = vmatprep.subr.bf16.mxu1 %v2026_v37  ;;  %v2098_v35 = vld [vmem:[%s2464_s1 + $0x228] sm:$0xff]   ;;  %v2105_v37 = vld [vmem:[%s2464_s1 + $0x230] sm:$0xff]  }
  0x28   : > { %1103 = vmatmul.mubr.bf16.vlgmr.msra.gmra.mrb[0].mxu0 %v2019_v32  ;;  %v2097_v32 = vld [vmem:[%s2464_s1 + $0x220] sm:$0xff]   ;;  %v2103_v36 = vld [vmem:[%s2277_s12 + $0xe8] ss:$36 sps:$4 sm:$0xff]  }
  0x29   : > { %1168 = vmatmul.mubr.bf16.vlgmr.msra.gmra.mrb[0].mxu1 %v2022_v34  ;;  %1831 = vmatpush3.bf16.msra.mxu0 %v2027_v38  ;;  %v2101_v34 = vld [vmem:[%s2277_s12 + $0xf4] ss:$36 sps:$4 sm:$0xff]  }
  0x2a   : > { %1871 = vmatpush3.bf16.msra.mxu1 %v2028_v39  ;;  %1832 = vmatprep.subr.bf16.mxu0 %v2029_v40  ;;  %v2104_v38 = vld [vmem:[%s2277_s12 + $0xf0] ss:$36 sps:$4 sm:$0xff]   ;;  %v2107_v39 = vld [vmem:[%s2277_s12 + $0x20] ss:$36 sps:$4 sm:$0xff]  }
  0x2b   : > { %1872 = vmatprep.subr.bf16.mxu1 %v2030_v41  ;;  %1110 = vmatprep.mubr.bf16.mxu0 %v2033_v44  ;;  %v2108_v40 = vld [vmem:[%s2277_s12 + $0xb0] ss:$36 sps:$4 sm:$0xff]   ;;  %v2106_v41 = vld [vmem:[%s2464_s1 + $0x238] sm:$0xff]  }
  0x2c   : > { %1175 = vmatprep.mubr.bf16.mxu1 %v2035_v45 }
  0x2d   : > { %1833 = vmatpush3.bf16.msra.mxu0 %v2031_v42  ;;  %v2109_v42 = vld [vmem:[%s2277_s12 + $0x68] ss:$36 sps:$4 sm:$0xff]  }
  0x2e   : > { %1873 = vmatpush3.bf16.msra.mxu1 %v2032_v43  ;;  %1834 = vmatprep.subr.bf16.mxu0 %v2039_v48  ;;  %v2110_v43 = vld [vmem:[%s2277_s12 + $0xf8] ss:$36 sps:$4 sm:$0xff]  }
  0x2f   : > { %1874 = vmatprep.subr.bf16.mxu1 %v2040_v49 }
  0x30   : > { %1111 = vmatmul.mubr.bf16.gmra.mrb[4].mxu0 %v2037_v46 }
  0x31   : > { %1176 = vmatmul.mubr.bf16.gmra.mrb[4].mxu1 %v2038_v47  ;;  %1835 = vmatpush3.bf16.msra.mxu0 %v2041_v50 }
  0x32   : > { %1875 = vmatpush3.bf16.msra.mxu1 %v2042_v51  ;;  %1836 = vmatprep.subr.bf16.mxu0 %v2043_v52 }
  0x33   : > { %1876 = vmatprep.subr.bf16.mxu1 %v2044_v53  ;;  %1118 = vmatprep.mubr.bf16.mxu0 %v2047_v56 }
  0x34   : > { %1183 = vmatprep.mubr.bf16.mxu1 %v2049_v57 }
  0x35   : > { %1837 = vmatpush3.bf16.msra.mxu0 %v2045_v54 }
  0x36   : > { %1877 = vmatpush3.bf16.msra.mxu1 %v2046_v55  ;;  %1838 = vmatprep.subr.bf16.mxu0 %v2053_v60 }
  0x37   : > { %1878 = vmatprep.subr.bf16.mxu1 %v2054_v61 }
  0x38   : > { %1119 = vmatmul.mubr.bf16.gmra.mrb[8].mxu0 %v2051_v58 }
  0x39   : > { %1184 = vmatmul.mubr.bf16.gmra.mrb[8].mxu1 %v2052_v59  ;;  %1839 = vmatpush3.bf16.msra.mxu0 %v2055_v62 }
  0x3a   : > { %1879 = vmatpush3.bf16.msra.mxu1 %v2056_v63  ;;  %1840 = vmatprep.subr.bf16.mxu0 %v2057_v0 }
  0x3b   : > { %1880 = vmatprep.subr.bf16.mxu1 %v2058_v1  ;;  %1126 = vmatprep.mubr.bf16.mxu0 %v2061_v4 }
  0x3c   : > { %1191 = vmatprep.mubr.bf16.mxu1 %v2063_v5 }
  0x3d   : > { %1841 = vmatpush3.bf16.msra.mxu0 %v2059_v2 }
  0x3e   : > { %1881 = vmatpush3.bf16.msra.mxu1 %v2060_v3  ;;  %1842 = vmatprep.subr.bf16.mxu0 %v2067_v8 }
  0x3f   : > { %1882 = vmatprep.subr.bf16.mxu1 %v2068_v9 }
  0x40   : > { %1127 = vmatmul.mubr.bf16.gmra.mrb[12].mxu0 %v2065_v6 }
  0x41   : > { %1192 = vmatmul.mubr.bf16.gmra.mrb[12].mxu1 %v2066_v7  ;;  %1843 = vmatpush3.bf16.msra.mxu0 %v2069_v10 }
  0x42   : > { %1883 = vmatpush3.bf16.msra.mxu1 %v2070_v11  ;;  %1844 = vmatprep.subr.bf16.mxu0 %v2071_v12 }
  0x43   : > { %1884 = vmatprep.subr.bf16.mxu1 %v2072_v13  ;;  %1232 = vmatprep.mubr.bf16.mxu0 %v2077_v17 }
  0x44   : > { %1297 = vmatprep.mubr.bf16.mxu1 %v2080_v19 }
  0x45   : > { %1845 = vmatpush3.bf16.msra.mxu0 %v2073_v14 }
  0x46   : > { %1885 = vmatpush3.bf16.msra.mxu1 %v2074_v15  ;;  %1922 = vmatprep.subr.bf16.mxu0 %v2081_v20 }
  0x47   : > { %1946 = vmatprep.subr.bf16.mxu1 %v2081_v20 }
  0x48   : > { %1233 = vmatmul.mubr.bf16.vlgmr.msra.gmra.mrb[16].mxu0 %v2075_v16 }
  0x49   : > { %1298 = vmatmul.mubr.bf16.vlgmr.msra.gmra.mrb[16].mxu1 %v2078_v18  ;;  %1923 = vmatpush3.bf16.msra.mxu0 %v2081_v20 }
  0x4a   : > { %1954 = vmatpush3.bf16.msra.mxu1 %v2081_v20  ;;  %1924 = vmatprep.subr.bf16.mxu0 %v2082_v21 }
  0x4b   : > { %1947 = vmatprep.subr.bf16.mxu1 %v2082_v21  ;;  %1240 = vmatprep.mubr.bf16.mxu0 %v2083_v22 }
  0x4c   : > { %1305 = vmatprep.mubr.bf16.mxu1 %v2085_v23 }
  0x4d   : > { %1925 = vmatpush3.bf16.msra.mxu0 %v2082_v21 }
  0x4e   : > { %1955 = vmatpush3.bf16.msra.mxu1 %v2082_v21  ;;  %1926 = vmatprep.subr.bf16.mxu0 %v2089_v26 }
  0x4f   : > { %1948 = vmatprep.subr.bf16.mxu1 %v2089_v26 }
  0x50   : > { %1241 = vmatmul.mubr.bf16.gmra.mrb[20].mxu0 %v2087_v24 }
  0x51   : > { %1306 = vmatmul.mubr.bf16.gmra.mrb[20].mxu1 %v2088_v25  ;;  %1248 = vmatprep.mubr.bf16.mxu0 %v2091_v27 }
  0x52   : > { %1927 = vmatpush3.bf16.msra.mxu0 %v2089_v26  ;;  %1313 = vmatprep.mubr.bf16.mxu1 %v2093_v28 }
  0x53   : > { %1956 = vmatpush3.bf16.msra.mxu1 %v2089_v26  ;;  %1928 = vmatprep.subr.bf16.mxu0 %v2090_v29 }
  0x54   : > { %1949 = vmatprep.subr.bf16.mxu1 %v2090_v29 }
  0x56   : > { %1929 = vmatpush3.bf16.msra.mxu0 %v2090_v29 }
  0x57   : > { %1957 = vmatpush3.bf16.msra.mxu1 %v2090_v29  ;;  %1930 = vmatprep.subr.bf16.mxu0 %v2097_v32 }
  0x58   : > { %1249 = vmatmul.mubr.bf16.gmra.mrb[24].mxu0 %v2095_v30  ;;  %1950 = vmatprep.subr.bf16.mxu1 %v2097_v32 }
  0x59   : > { %1314 = vmatmul.mubr.bf16.gmra.mrb[24].mxu1 %v2096_v31  ;;  %1256 = vmatprep.mubr.bf16.mxu0 %v2099_v33 }
  0x5a   : > { %1931 = vmatpush3.bf16.msra.mxu0 %v2097_v32  ;;  %1321 = vmatprep.mubr.bf16.mxu1 %v2101_v34 }
  0x5b   : > { %1958 = vmatpush3.bf16.msra.mxu1 %v2097_v32  ;;  %1932 = vmatprep.subr.bf16.mxu0 %v2098_v35 }
  0x5c   : > { %1951 = vmatprep.subr.bf16.mxu1 %v2098_v35 }
  0x5e   : > { %1933 = vmatpush3.bf16.msra.mxu0 %v2098_v35 }
  0x5f   : > { %1959 = vmatpush3.bf16.msra.mxu1 %v2098_v35  ;;  %1934 = vmatprep.subr.bf16.mxu0 %v2105_v37 }
  0x60   : > { %1257 = vmatmul.mubr.bf16.gmra.mrb[28].mxu0 %v2103_v36  ;;  %1952 = vmatprep.subr.bf16.mxu1 %v2105_v37 }
  0x61   : > { %1322 = vmatmul.mubr.bf16.gmra.mrb[28].mxu1 %v2104_v38  ;;  %1938 = vmatprep.mubr.bf16.mxu0 %v2107_v39 }
  0x62   : > { %1935 = vmatpush3.bf16.msra.mxu0 %v2105_v37  ;;  %1942 = vmatprep.mubr.bf16.mxu1 %v2108_v40 }
  0x63   : > { %1960 = vmatpush3.bf16.msra.mxu1 %v2105_v37  ;;  %1936 = vmatprep.subr.bf16.mxu0 %v2106_v41 }
  0x64   : > { %1953 = vmatprep.subr.bf16.mxu1 %v2106_v41 }
  0x66   : > { %1937 = vmatpush3.bf16.msra.mxu0 %v2106_v41 }
  0x67   : > { %1961 = vmatpush3.bf16.msra.mxu1 %v2106_v41 }
  0x69   : > { %1939 = vmatmul.mubr.bf16.vlgmr.msra.gmra.mrb[32].mxu0 %v2109_v42 }
  0x6a   : > { %1943 = vmatmul.mubr.bf16.vlgmr.msra.gmra.mrb[32].mxu1 %v2110_v43 }
  0xfb   : > { %v1766_v44 = vpop.f32.mrb[0].mxu0 }
  0xfc   : > { %v1806_v45 = vpop.f32.mrb[0].mxu1  ;;  %v1767_v46 = vpop.f32.mrb[1].mxu0 }
  0xfd   : > { %v1768_v47 = vadd.f32 %v1767_v46, %v1766_v44  ;;  %v1807_v48 = vpop.f32.mrb[1].mxu1  ;;  %v1769_v49 = vpop.f32.mrb[2].mxu0 }
  0xfe   : > { %v1808_v50 = vadd.f32 %v1807_v48, %v1806_v45  ;;  %v1809_v51 = vpop.f32.mrb[2].mxu1  ;;  %v1770_v52 = vpop.f32.mrb[3].mxu0 }
  0xff   : > { %v1771_v53 = vadd.f32 %v1770_v52, %v1769_v49  ;;  %v1810_v54 = vpop.f32.mrb[3].mxu1 }
 0x100   : > { %v1170_v55 = vadd.f32 %v1808_v50, %v1768_v47  ;;  %v1811_v56 = vadd.f32 %v1810_v54, %v1809_v51 }
 0x102   : > { %v1173_v57 = vadd.f32 %v1811_v56, %v1771_v53 }
 0x103   : > { %v1772_v58 = vpop.f32.mrb[4].mxu0 }
 0x104   : > { %v1812_v59 = vpop.f32.mrb[4].mxu1  ;;  %v1773_v60 = vpop.f32.mrb[5].mxu0 }
 0x105   : > { %v1774_v61 = vadd.f32 %v1773_v60, %v1772_v58  ;;  %v1813_v62 = vpop.f32.mrb[5].mxu1  ;;  %v1775_v63 = vpop.f32.mrb[6].mxu0 }
 0x106   : > { %v1814_v0 = vadd.f32 %v1813_v62, %v1812_v59  ;;  %v1815_v1 = vpop.f32.mrb[6].mxu1  ;;  %v1776_v2 = vpop.f32.mrb[7].mxu0 }
 0x107   : > { %v1777_v3 = vadd.f32 %v1776_v2, %v1775_v63  ;;  %v1816_v4 = vpop.f32.mrb[7].mxu1 }
 0x108   : > { %v1178_v5 = vadd.f32 %v1814_v0, %v1774_v61  ;;  %v1817_v6 = vadd.f32 %v1816_v4, %v1815_v1 }
 0x10a   : > { %v1181_v7 = vadd.f32 %v1817_v6, %v1777_v3 }
 0x10b   : > { %v1778_v8 = vpop.f32.mrb[8].mxu0 }
 0x10c   : > { %v1818_v9 = vpop.f32.mrb[8].mxu1  ;;  %v1779_v10 = vpop.f32.mrb[9].mxu0 }
 0x10d   : > { %v1780_v11 = vadd.f32 %v1779_v10, %v1778_v8  ;;  %v1819_v12 = vpop.f32.mrb[9].mxu1  ;;  %v1781_v13 = vpop.f32.mrb[10].mxu0 }
 0x10e   : > { %v1820_v14 = vadd.f32 %v1819_v12, %v1818_v9  ;;  %v1821_v15 = vpop.f32.mrb[10].mxu1  ;;  %v1782_v16 = vpop.f32.mrb[11].mxu0 }
 0x10f   : > { %v1783_v17 = vadd.f32 %v1782_v16, %v1781_v13  ;;  %v1822_v18 = vpop.f32.mrb[11].mxu1 }
 0x110   : > { %v1186_v19 = vadd.f32 %v1820_v14, %v1780_v11  ;;  %v1823_v20 = vadd.f32 %v1822_v18, %v1821_v15 }
 0x112   : > { %v1189_v21 = vadd.f32 %v1823_v20, %v1783_v17 }
 0x113   : > { %v1784_v22 = vpop.f32.mrb[12].mxu0 }
 0x114   : > { %v1824_v23 = vpop.f32.mrb[12].mxu1  ;;  %v1785_v24 = vpop.f32.mrb[13].mxu0 }
 0x115   : > { %v1825_v25 = vpop.f32.mrb[13].mxu1  ;;  %v1786_v26 = vadd.f32 %v1785_v24, %v1784_v22  ;;  %v1787_v28 = vpop.f32.mrb[14].mxu0 }
 0x116   : > { %v1826_v27 = vadd.f32 %v1825_v25, %v1824_v23  ;;  %v1827_v29 = vpop.f32.mrb[14].mxu1  ;;  %v1788_v30 = vpop.f32.mrb[15].mxu0 }
 0x117   : > { %v1828_v31 = vpop.f32.mrb[15].mxu1  ;;  %v1789_v33 = vadd.f32 %v1788_v30, %v1787_v28 }
 0x118   : > { %v1194_v32 = vadd.f32 %v1826_v27, %v1786_v26  ;;  %v1829_v34 = vadd.f32 %v1828_v31, %v1827_v29 }
 0x11a   : > { %v1197_v35 = vadd.f32 %v1829_v34, %v1789_v33 }
 0x11b   : > { %v1846_v36 = vpop.f32.mrb[16].mxu0 }
 0x11c   : > { %v1847_v37 = vpop.f32.mrb[17].mxu0  ;;  %v1886_v38 = vpop.f32.mrb[16].mxu1 }
 0x11d   : > { %v1848_v39 = vadd.f32 %v1847_v37, %v1846_v36  ;;  %v1849_v40 = vpop.f32.mrb[18].mxu0  ;;  %v1887_v41 = vpop.f32.mrb[17].mxu1 }
 0x11e   : > { %v1850_v42 = vpop.f32.mrb[19].mxu0  ;;  %v1888_v44 = vadd.f32 %v1887_v41, %v1886_v38  ;;  %v1889_v45 = vpop.f32.mrb[18].mxu1 }
 0x11f   : > { %v1235_v43 = vadd.f32 %v1848_v39, %v1170_v55  ;;  %v1851_v46 = vadd.f32 %v1850_v42, %v1849_v40  ;;  %v1890_v47 = vpop.f32.mrb[19].mxu1  ;;  %v1707_v39 = vld [vmem:[%s2465_s2] ss:$0 sm:$0xff] }
 0x120   : > { %v1891_v49 = vadd.f32 %v1890_v47, %v1889_v45 }
 0x121   : > { %v1238_v48 = vadd.f32 %v1851_v46, %v1173_v57  ;;  %v1300_v50 = vadd.f32 %v1888_v44, %v1235_v43 }
 0x123   : > { %v1852_v51 = vpop.f32.mrb[20].mxu0  ;;  %v2441_v52 = vadd.f32 %v1891_v49, %v1238_v48 }
 0x124   : > { %v1853_v53 = vpop.f32.mrb[21].mxu0  ;;  %v1892_v54 = vpop.f32.mrb[20].mxu1 }
 0x125   : > { %v1854_v56 = vadd.f32 %v1853_v53, %v1852_v51  ;;  %v1855_v58 = vpop.f32.mrb[22].mxu0  ;;  %v1893_v59 = vpop.f32.mrb[21].mxu1 }
 0x126   : > { %v1856_v60 = vpop.f32.mrb[23].mxu0  ;;  %v1894_v62 = vadd.f32 %v1893_v59, %v1892_v54  ;;  %v1895_v63 = vpop.f32.mrb[22].mxu1 }
 0x127   : > { %v1243_v61 = vadd.f32 %v1854_v56, %v1178_v5  ;;  %v1857_v55 = vadd.f32 %v1856_v60, %v1855_v58  ;;  %v1896_v0 = vpop.f32.mrb[23].mxu1 }
 0x128   : > { %v1897_v2 = vadd.f32 %v1896_v0, %v1895_v63 }
 0x129   : > { %v1246_v1 = vadd.f32 %v1857_v55, %v1181_v7  ;;  %v1308_v3 = vadd.f32 %v1894_v62, %v1243_v61 }
 0x12b   : > { %v1858_v57 = vpop.f32.mrb[24].mxu0  ;;  %v1311_v4 = vadd.f32 %v1897_v2, %v1246_v1 }
 0x12c   : > { %v1859_v6 = vpop.f32.mrb[25].mxu0  ;;  %v1898_v8 = vpop.f32.mrb[24].mxu1 }
 0x12d   : > { %v1860_v9 = vadd.f32 %v1859_v6, %v1858_v57  ;;  %v1861_v10 = vpop.f32.mrb[26].mxu0  ;;  %v1899_v11 = vpop.f32.mrb[25].mxu1 }
 0x12e   : > { %v1862_v12 = vpop.f32.mrb[27].mxu0  ;;  %v1900_v14 = vadd.f32 %v1899_v11, %v1898_v8  ;;  %v1901_v15 = vpop.f32.mrb[26].mxu1 }
 0x12f   : > { %v1251_v13 = vadd.f32 %v1860_v9, %v1186_v19  ;;  %v1863_v16 = vadd.f32 %v1862_v12, %v1861_v10  ;;  %v1902_v5 = vpop.f32.mrb[27].mxu1 }
 0x130   : > { %v1903_v18 = vadd.f32 %v1902_v5, %v1901_v15 }
 0x131   : > { %v1254_v17 = vadd.f32 %v1863_v16, %v1189_v21  ;;  %v1316_v20 = vadd.f32 %v1900_v14, %v1251_v13 }
 0x133   : > { %v1864_v22 = vpop.f32.mrb[28].mxu0  ;;  %v1319_v7 = vadd.f32 %v1903_v18, %v1254_v17 }
 0x134   : > { %v1865_v23 = vpop.f32.mrb[29].mxu0  ;;  %v1904_v24 = vpop.f32.mrb[28].mxu1 }
 0x135   : > { %v1866_v25 = vadd.f32 %v1865_v23, %v1864_v22  ;;  %v1867_v26 = vpop.f32.mrb[30].mxu0  ;;  %v1905_v27 = vpop.f32.mrb[29].mxu1 }
 0x136   : > { %v1868_v28 = vpop.f32.mrb[31].mxu0  ;;  %v1906_v30 = vadd.f32 %v1905_v27, %v1904_v24  ;;  %v1907_v31 = vpop.f32.mrb[30].mxu1 }
 0x137   : > { %v1259_v29 = vadd.f32 %v1866_v25, %v1194_v32  ;;  %v1869_v33 = vadd.f32 %v1868_v28, %v1867_v26  ;;  %v1908_v19 = vpop.f32.mrb[31].mxu1  ;;  %v1708_v32 = vld [vmem:[%s2466_s3] ss:$0 sm:$0xff] }
 0x138   : > { %v1909_v36 = vadd.f32 %v1908_v19, %v1907_v31 }
 0x139   : > { %v1262_v34 = vadd.f32 %v1869_v33, %v1197_v35  ;;  %v1324_v37 = vadd.f32 %v1906_v30, %v1259_v29 }
 0x13b   : > { %v1327_v38 = vadd.f32 %v1909_v36, %v1262_v34 }
 0x13c   : > { %v1940_v21 = vpop.f32.mrb[32].mxu0 }
 0x13d   : > { %v1373_v40 = vadd.f32 %v1940_v21, %v1308_v3  ;;  %v1944_v41 = vpop.f32.mrb[32].mxu1  ;;  %v1364_v42 = vpop.f32.mrb[33].mxu0 }
 0x13e   : > { %v1389_v43 = vadd.f32 %v1944_v41, %v1324_v37  ;;  %v1365_v44 = vadd.f32 %v1364_v42, %v1300_v50  ;;  %v1380_v45 = vpop.f32.mrb[33].mxu1  ;;  %v1941_v46 = vpop.f32.mrb[34].mxu0 }
 0x13f   : > { %v1404_v35 = vmul.f32 %v1707_v39, %v1373_v40  ;;  %v1381_v47 = vadd.f32 %v1380_v45, %v1316_v20  ;;  %v1376_v48 = vadd.f32 %v1941_v46, %v1311_v4  ;;  %v1945_v49 = vpop.f32.mrb[34].mxu1  ;;  %v1367_v51 = vpop.f32.mrb[35].mxu0 }
 0x140   : > { %v1408_v53 = vmul.f32 %v1707_v39, %v1389_v43  ;;  %v1402_v54 = vmul.f32 %v1707_v39, %v1365_v44  ;;  %v1392_v56 = vadd.f32 %v1945_v49, %v1327_v38  ;;  %v1368_v58 = vadd.f32 %v1367_v51, %v2441_v52  ;;  %v1383_v59 = vpop.f32.mrb[35].mxu1 }
 0x141   : > { %v1419_v60 = vadd.f32 %v1708_v32, %v1404_v35  ;;  %v1406_v61 = vmul.f32 %v1707_v39, %v1381_v47  ;;  %v1405_v62 = vmul.f32 %v1707_v39, %v1376_v48  ;;  %v1384_v63 = vadd.f32 %v1383_v59, %v1319_v7 }
 0x142   : > { %v1423_v55 = vadd.f32 %v1708_v32, %v1408_v53  ;;  %v1417_v50 = vadd.f32 %v1708_v32, %v1402_v54  ;;  %v1409_v0 = vmul.f32 %v1707_v39, %v1392_v56  ;;  %v1403_v1 = vmul.f32 %v1707_v39, %v1368_v58 }
 0x143   : > { %v1421_v2 = vadd.f32 %v1708_v32, %v1406_v61  ;;  %v1420_v3 = vadd.f32 %v1708_v32, %v1405_v62  ;;  %v1407_v57 = vmul.f32 %v1707_v39, %v1384_v63  ;;  %v1427_v8 = vmax.f32 %v1419_v60, 0.0 }
 0x144   : > { %v1424_v4 = vadd.f32 %v1708_v32, %v1409_v0  ;;  %v1418_v6 = vadd.f32 %v1708_v32, %v1403_v1  ;;  %v1431_v11 = vmax.f32 %v1423_v55, 0.0  ;;  %v1425_v52 = vmax.f32 %v1417_v50, 0.0 }
 0x145   : > { %v1428_v9 = vmax.f32 %v1420_v3, 0.0  ;;  %v1422_v10 = vadd.f32 %v1708_v32, %v1407_v57  ;;  %v1429_v14 = vmax.f32 %v1421_v2, 0.0 }
 0x146   : > { %v1432_v12 = vmax.f32 %v1424_v4, 0.0  ;;  %v1426_v13 = vmax.f32 %v1418_v6, 0.0 }
 0x147   : > { %v1735_v15 = vpack.c.bf16 %v1428_v9, %v1427_v8  ;;  %v1430_v16 = vmax.f32 %v1422_v10, 0.0 }
 0x148   : > { %v1745_v5 = vpack.c.bf16 %v1432_v12, %v1431_v11  ;;  %v1730_v17 = vpack.c.bf16 %v1426_v13, %v1425_v52 }
 0x149   : > { %1747 = vst [vmem:[%s267_s23 + $0x8] sm:$0xff] %v1735_v15   ;;  %v1740_v18 = vpack.c.bf16 %v1430_v16, %v1429_v14 }
 0x14a   : > { %1749 = vst [vmem:[%s267_s23 + $0x18] sm:$0xff] %v1745_v5   ;;  %1731 = vst [vmem:[%s267_s23] sm:$0xff] %v1730_v17  }
 0x14b   : > { %1748 = vst [vmem:[%s267_s23 + $0x10] sm:$0xff] %v1740_v18  }
 0x14c PF: > { %s14_s17 = sadd.s32 1, %s2133_s17   ;;  %s2468_s15 = smov %s2129_s16 }
 0x14d   : > { %p11_p5 = scmp.ge.s32.totalorder %s14_s17, 4   ;;  %s2469_s16 = smov %s2471_s18 }
 0x14f   :  { %13 = sbr.rel (!%p11_p5) target bundleno = 2 (0x2), region = 75 }

// kernel: resnet_forward.23
= control target key start
LH: loop header
LB: loop body
LE: loop exit
PB: predicated region body
PF: predicated region fallthrough
CT: control target
= control target key end

     0   :  { %s2285_s18 = smov 0   ;;  %s2287_s19 = smov 0   ;;  %s2601_s0 = inlined_call_operand.vmem [shape: bf16[128,1152], index: 0, kind: input, shape index: {}]   ;;  %s2602_s1 = inlined_call_operand.vmem [shape: bf16[1152,128], index: 1, kind: input, shape index: {}]   ;;  %s2603_s2 = inlined_call_operand.vmem [shape: f32[1,128], index: 2, kind: input, shape index: {}]   ;;  %s2604_s3 = inlined_call_operand.vmem [shape: f32[1,128], index: 3, kind: input, shape index: {}]   ;;  %s2605_s4 = inlined_call_operand.vmem [shape: bf16[128,128], index: 4, kind: input, shape index: {}]   ;;  %s2606_s5 = inlined_call_operand.vmem [shape: bf16[128,128], index: 5, kind: output, shape index: {}]  }
   0x1   :  { %s2289_s20 = smov 0  }
   0x2 LB: > { %s27_s21 = sadd.s32 1, %s2249_s19  ;;  %p1693_p0 = scmp.ge.s32.totalorder %s2253_s20, 1  ;;  %s2253_s20 = sphi %s2289_s20, %s15_s20   ;;  %s2249_s19 = sphi %s2287_s19, %s2608_s19   ;;  %s2245_s18 = sphi %s2285_s18, %s2607_s18  }
   0x3   : > { %p29_p1 = scmp.ge.s32.totalorder %s27_s21, 2  ;;  %p244_p2 = scmp.lt.s32.totalorder %s2253_s20, 3 }
   0x5   : > { %s2610_s21 = smov (%p29_p1, %s27_s21), 0  ;;  %p245_p3 = pnand %p1693_p0, %p244_p2 }
   0x6   : > { %v2107_v0 = vld [vmem:[%s2602_s1 + $0x40] sm:$0xff] (!%p245_p3)   ;;  %v2111_v4 = vld [vmem:[%s2602_s1 + $0x48] sm:$0xff] (!%p245_p3)   ;;  %v2115_v8 = vld [vmem:[%s2602_s1 + $0x50] sm:$0xff] (!%p245_p3)   ;;  %s1694_s6 = sshll.u32 (!%p245_p3), %s2245_s18, 3 }
   0x7   : > { %248 = sbr.rel (%p245_p3) target bundleno = 334 (0x14e), region = 40  ;;  %v2108_v1 = vld [vmem:[%s2602_s1 + $0xc0] sm:$0xff] (!%p245_p3)   ;;  %1870 = vmatprep.subr.bf16.mxu0 (!%p245_p3), %v2107_v0  ;;  %v2112_v5 = vld [vmem:[%s2602_s1 + $0xc8] sm:$0xff] (!%p245_p3)   ;;  %v2116_v9 = vld [vmem:[%s2602_s1 + $0xd0] sm:$0xff] (!%p245_p3)   ;;  %p295_p4 = scmp.lt.s32.totalorder (!%p245_p3), %s1694_s6, 15 }
   0x8   : > { %v2109_v2 = vld [vmem:[%s2602_s1] sm:$0xff] (!%p245_p3)   ;;  %1910 = vmatprep.subr.bf16.mxu1 (!%p245_p3), %v2108_v1  ;;  %v2113_v6 = vld [vmem:[%s2602_s1 + $0x8] sm:$0xff] (!%p245_p3)   ;;  %v2117_v10 = vld [vmem:[%s2602_s1 + $0x10] sm:$0xff] (!%p245_p3)  }
   0x9   : > { %v2110_v3 = vld [vmem:[%s2602_s1 + $0x80] sm:$0xff] (!%p245_p3)   ;;  %1871 = vmatpush3.bf16.msra.mxu0 (!%p245_p3), %v2109_v2  ;;  %v2114_v7 = vld [vmem:[%s2602_s1 + $0x88] sm:$0xff] (!%p245_p3)   ;;  %v2118_v11 = vld [vmem:[%s2602_s1 + $0x90] sm:$0xff] (!%p245_p3)  }
   0xa   : > { %1911 = vmatpush3.bf16.msra.mxu1 (!%p245_p3), %v2110_v3  ;;  %1872 = vmatprep.subr.bf16.mxu0 (!%p245_p3), %v2111_v4  ;;  %v2119_v12 = vld [vmem:[%s2602_s1 + $0x58] sm:$0xff] (!%p245_p3)   ;;  %v2123_v16 = vld [vmem:[%s2602_s1 + $0x60] sm:$0xff] (!%p245_p3)   ;;  %v2127_v20 = vld [vmem:[%s2602_s1 + $0x68] sm:$0xff] (!%p245_p3)  }
   0xb   : > { %1912 = vmatprep.subr.bf16.mxu1 (!%p245_p3), %v2112_v5  ;;  %v2120_v13 = vld [vmem:[%s2602_s1 + $0xd8] sm:$0xff] (!%p245_p3)   ;;  %v2124_v17 = vld [vmem:[%s2602_s1 + $0xe0] sm:$0xff] (!%p245_p3)   ;;  %v2128_v21 = vld [vmem:[%s2602_s1 + $0xe8] sm:$0xff] (!%p245_p3)  }
   0xc   : > { %v2121_v14 = vld [vmem:[%s2602_s1 + $0x18] sm:$0xff] (!%p245_p3)   ;;  %v2125_v18 = vld [vmem:[%s2602_s1 + $0x20] sm:$0xff] (!%p245_p3)   ;;  %v2129_v22 = vld [vmem:[%s2602_s1 + $0x28] sm:$0xff] (!%p245_p3)  }
   0xd   : > { %1873 = vmatpush3.bf16.msra.mxu0 (!%p245_p3), %v2113_v6  ;;  %v2122_v15 = vld [vmem:[%s2602_s1 + $0x98] sm:$0xff] (!%p245_p3)   ;;  %v2126_v19 = vld [vmem:[%s2602_s1 + $0xa0] sm:$0xff] (!%p245_p3)   ;;  %v2130_v23 = vld [vmem:[%s2602_s1 + $0xa8] sm:$0xff] (!%p245_p3)  }
   0xe   : > { %1913 = vmatpush3.bf16.msra.mxu1 %v2114_v7  ;;  %1874 = vmatprep.subr.bf16.mxu0 %v2115_v8  ;;  %s2612_s6 = smov (!%p295_p4, %s1694_s6), 15  ;;  %v2131_v24 = vld [vmem:[%s2602_s1 + $0x70] sm:$0xff]   ;;  %v2135_v28 = vld [vmem:[%s2602_s1 + $0x78] sm:$0xff]   ;;  %v2145_v36 = vld [vmem:[%s2602_s1 + $0x140] sm:$0xff]  }
   0xf   : > { %1914 = vmatprep.subr.bf16.mxu1 %v2116_v9  ;;  %v2132_v25 = vld [vmem:[%s2602_s1 + $0xf0] sm:$0xff]   ;;  %s2082_s8 = smul.u32 36, %s2612_s6  ;;  %v2136_v29 = vld [vmem:[%s2602_s1 + $0xf8] sm:$0xff]   ;;  %v2146_v37 = vld [vmem:[%s2602_s1 + $0x1c0] sm:$0xff]  }
  0x10   : > { %v2133_v26 = vld [vmem:[%s2602_s1 + $0x30] sm:$0xff]   ;;  %v2137_v30 = vld [vmem:[%s2602_s1 + $0x38] sm:$0xff]   ;;  %v2147_v38 = vld [vmem:[%s2602_s1 + $0x100] sm:$0xff]  }
  0x11   : > { %1875 = vmatpush3.bf16.msra.mxu0 %v2117_v10  ;;  %v2134_v27 = vld [vmem:[%s2602_s1 + $0xb0] sm:$0xff]   ;;  %s2402_s22 = scalar_lea.vmem %s2601_s0, %s2082_s8  ;;  %v2138_v31 = vld [vmem:[%s2602_s1 + $0xb8] sm:$0xff]   ;;  %v2148_v39 = vld [vmem:[%s2602_s1 + $0x180] sm:$0xff]  }
  0x12   : > { %1915 = vmatpush3.bf16.msra.mxu1 %v2118_v11  ;;  %1876 = vmatprep.subr.bf16.mxu0 %v2119_v12  ;;  %v2139_v32 = vld [vmem:[%s2402_s22] ss:$36 sps:$4 sm:$0xff]   ;;  %v2142_v34 = vld [vmem:[%s2402_s22 + $0x8] ss:$36 sps:$4 sm:$0xff]   ;;  %v2155_v45 = vld [vmem:[%s2402_s22 + $0x54] ss:$36 sps:$4 sm:$0xff]  }
  0x13   : > { %1916 = vmatprep.subr.bf16.mxu1 %v2120_v13  ;;  %v2141_v33 = vld [vmem:[%s2402_s22 + $0x4] ss:$36 sps:$4 sm:$0xff]   ;;  %v2144_v35 = vld [vmem:[%s2402_s22 + $0xc] ss:$36 sps:$4 sm:$0xff]   ;;  %v2163_v52 = vld [vmem:[%s2602_s1 + $0x158] sm:$0xff]  }
  0x14   : > { %1162 = vmatprep.mubr.bf16.mxu0 %v2141_v33  ;;  %1227 = vmatprep.mubr.bf16.mxu1 %v2144_v35  ;;  %v2149_v40 = vld [vmem:[%s2602_s1 + $0x148] sm:$0xff]   ;;  %v2158_v47 = vld [vmem:[%s2402_s22 + $0x50] ss:$36 sps:$4 sm:$0xff]   ;;  %v2164_v53 = vld [vmem:[%s2602_s1 + $0x1d8] sm:$0xff]  }
  0x15   : > { %1877 = vmatpush3.bf16.msra.mxu0 %v2121_v14  ;;  %v2150_v41 = vld [vmem:[%s2602_s1 + $0x1c8] sm:$0xff]   ;;  %v2159_v48 = vld [vmem:[%s2602_s1 + $0x150] sm:$0xff]   ;;  %v2165_v54 = vld [vmem:[%s2602_s1 + $0x118] sm:$0xff]  }
  0x16   : > { %1917 = vmatpush3.bf16.msra.mxu1 %v2122_v15  ;;  %1878 = vmatprep.subr.bf16.mxu0 %v2123_v16  ;;  %v2151_v42 = vld [vmem:[%s2602_s1 + $0x108] sm:$0xff]   ;;  %v2160_v49 = vld [vmem:[%s2602_s1 + $0x1d0] sm:$0xff]   ;;  %v2166_v55 = vld [vmem:[%s2602_s1 + $0x198] sm:$0xff]  }
  0x17   : > { %1918 = vmatprep.subr.bf16.mxu1 %v2124_v17  ;;  %v2152_v43 = vld [vmem:[%s2602_s1 + $0x188] sm:$0xff]   ;;  %v2161_v50 = vld [vmem:[%s2602_s1 + $0x110] sm:$0xff]   ;;  %v2169_v57 = vld [vmem:[%s2402_s22 + $0x9c] ss:$36 sps:$4 sm:$0xff]  }
  0x18   : > { %v2153_v44 = vld [vmem:[%s2402_s22 + $0x4c] ss:$36 sps:$4 sm:$0xff]   ;;  %v2167_v56 = vld [vmem:[%s2402_s22 + $0x94] ss:$36 sps:$4 sm:$0xff]   ;;  %v2173_v60 = vld [vmem:[%s2602_s1 + $0x160] sm:$0xff]  }
  0x19   : > { %1879 = vmatpush3.bf16.msra.mxu0 %v2125_v18  ;;  %v2157_v46 = vld [vmem:[%s2402_s22 + $0x48] ss:$36 sps:$4 sm:$0xff]   ;;  %v2162_v51 = vld [vmem:[%s2602_s1 + $0x190] sm:$0xff]   ;;  %v2172_v59 = vld [vmem:[%s2402_s22 + $0x98] ss:$36 sps:$4 sm:$0xff]  }
  0x1a   : > { %1919 = vmatpush3.bf16.msra.mxu1 %v2126_v19  ;;  %1880 = vmatprep.subr.bf16.mxu0 %v2127_v20  ;;  %v2171_v58 = vld [vmem:[%s2402_s22 + $0x90] ss:$36 sps:$4 sm:$0xff]   ;;  %v2174_v61 = vld [vmem:[%s2602_s1 + $0x1e0] sm:$0xff]   ;;  %v2177_v0 = vld [vmem:[%s2602_s1 + $0x168] sm:$0xff]  }
  0x1b   : > { %1920 = vmatprep.subr.bf16.mxu1 %v2128_v21  ;;  %v2175_v62 = vld [vmem:[%s2602_s1 + $0x120] sm:$0xff]   ;;  %v2178_v1 = vld [vmem:[%s2602_s1 + $0x1e8] sm:$0xff]   ;;  %v2185_v6 = vld [vmem:[%s2402_s22 + $0xd8] ss:$36 sps:$4 sm:$0xff]  }
  0x1c   : > { %v2176_v63 = vld [vmem:[%s2602_s1 + $0x1a0] sm:$0xff]   ;;  %v2179_v2 = vld [vmem:[%s2602_s1 + $0x128] sm:$0xff]   ;;  %v2187_v8 = vld [vmem:[%s2602_s1 + $0x170] sm:$0xff]  }
  0x1d   : > { %1881 = vmatpush3.bf16.msra.mxu0 %v2129_v22  ;;  %v2180_v3 = vld [vmem:[%s2602_s1 + $0x1a8] sm:$0xff]   ;;  %v2181_v4 = vld [vmem:[%s2402_s22 + $0xdc] ss:$36 sps:$4 sm:$0xff]   ;;  %v2188_v9 = vld [vmem:[%s2602_s1 + $0x1f0] sm:$0xff]  }
  0x1e   : > { %1921 = vmatpush3.bf16.msra.mxu1 %v2130_v23  ;;  %1882 = vmatprep.subr.bf16.mxu0 %v2131_v24  ;;  %v2183_v5 = vld [vmem:[%s2402_s22 + $0xe4] ss:$36 sps:$4 sm:$0xff]   ;;  %v2189_v10 = vld [vmem:[%s2602_s1 + $0x130] sm:$0xff]   ;;  %v2191_v12 = vld [vmem:[%s2602_s1 + $0x178] sm:$0xff]  }
  0x1f   : > { %1922 = vmatprep.subr.bf16.mxu1 %v2132_v25  ;;  %v2186_v7 = vld [vmem:[%s2402_s22 + $0xe0] ss:$36 sps:$4 sm:$0xff]   ;;  %v2190_v11 = vld [vmem:[%s2602_s1 + $0x1b0] sm:$0xff]   ;;  %v2192_v13 = vld [vmem:[%s2602_s1 + $0x1f8] sm:$0xff]  }
  0x20   : > { %v2193_v14 = vld [vmem:[%s2602_s1 + $0x138] sm:$0xff]   ;;  %v2195_v16 = vld [vmem:[%s2402_s22 + $0x10] ss:$36 sps:$4 sm:$0xff]   ;;  %v2201_v20 = vld [vmem:[%s2602_s1 + $0x200] sm:$0xff]  }
  0x21   : > { %1883 = vmatpush3.bf16.msra.mxu0 %v2133_v26  ;;  %v2194_v15 = vld [vmem:[%s2602_s1 + $0x1b8] sm:$0xff]   ;;  %v2202_v21 = vld [vmem:[%s2602_s1 + $0x208] sm:$0xff]   ;;  %v2208_v25 = vld [vmem:[%s2402_s22 + $0x60] ss:$36 sps:$4 sm:$0xff]  }
  0x22   : > { %1923 = vmatpush3.bf16.msra.mxu1 %v2134_v27  ;;  %1884 = vmatprep.subr.bf16.mxu0 %v2135_v28  ;;  %v2197_v17 = vld [vmem:[%s2402_s22 + $0x14] ss:$36 sps:$4 sm:$0xff]   ;;  %v2200_v19 = vld [vmem:[%s2402_s22 + $0x1c] ss:$36 sps:$4 sm:$0xff]   ;;  %v2205_v23 = vld [vmem:[%s2402_s22 + $0x64] ss:$36 sps:$4 sm:$0xff]  }
  0x23   : > { %1924 = vmatprep.subr.bf16.mxu1 %v2136_v29  ;;  %v2198_v18 = vld [vmem:[%s2402_s22 + $0x18] ss:$36 sps:$4 sm:$0xff]   ;;  %v2209_v26 = vld [vmem:[%s2602_s1 + $0x210] sm:$0xff]   ;;  %v2211_v27 = vld [vmem:[%s2402_s22 + $0xa4] ss:$36 sps:$4 sm:$0xff]  }
  0x24   : > { %v2203_v22 = vld [vmem:[%s2402_s22 + $0x5c] ss:$36 sps:$4 sm:$0xff]   ;;  %v2213_v28 = vld [vmem:[%s2402_s22 + $0xac] ss:$36 sps:$4 sm:$0xff]  }
  0x25   : > { %1885 = vmatpush3.bf16.msra.mxu0 %v2137_v30  ;;  %v2207_v24 = vld [vmem:[%s2402_s22 + $0x58] ss:$36 sps:$4 sm:$0xff]   ;;  %v2215_v30 = vld [vmem:[%s2402_s22 + $0xa0] ss:$36 sps:$4 sm:$0xff]   ;;  %v2219_v33 = vld [vmem:[%s2402_s22 + $0xec] ss:$36 sps:$4 sm:$0xff]  }
  0x26   : > { %1925 = vmatpush3.bf16.msra.mxu1 %v2138_v31  ;;  %1950 = vmatprep.subr.bf16.mxu0 %v2145_v36  ;;  %v2210_v29 = vld [vmem:[%s2602_s1 + $0x218] sm:$0xff]   ;;  %v2216_v31 = vld [vmem:[%s2402_s22 + $0xa8] ss:$36 sps:$4 sm:$0xff]  }
  0x27   : > { %1990 = vmatprep.subr.bf16.mxu1 %v2146_v37  ;;  %v2218_v35 = vld [vmem:[%s2602_s1 + $0x228] sm:$0xff]   ;;  %v2225_v37 = vld [vmem:[%s2602_s1 + $0x230] sm:$0xff]  }
  0x28   : > { %1163 = vmatmul.mubr.bf16.vlgmr.msra.gmra.mrb[0].mxu0 %v2139_v32  ;;  %v2217_v32 = vld [vmem:[%s2602_s1 + $0x220] sm:$0xff]   ;;  %v2223_v36 = vld [vmem:[%s2402_s22 + $0xe8] ss:$36 sps:$4 sm:$0xff]  }
  0x29   : > { %1228 = vmatmul.mubr.bf16.vlgmr.msra.gmra.mrb[0].mxu1 %v2142_v34  ;;  %1951 = vmatpush3.bf16.msra.mxu0 %v2147_v38  ;;  %v2221_v34 = vld [vmem:[%s2402_s22 + $0xf4] ss:$36 sps:$4 sm:$0xff]  }
  0x2a   : > { %1991 = vmatpush3.bf16.msra.mxu1 %v2148_v39  ;;  %1952 = vmatprep.subr.bf16.mxu0 %v2149_v40  ;;  %v2224_v38 = vld [vmem:[%s2402_s22 + $0xf0] ss:$36 sps:$4 sm:$0xff]   ;;  %v2227_v39 = vld [vmem:[%s2402_s22 + $0x20] ss:$36 sps:$4 sm:$0xff]  }
  0x2b   : > { %1992 = vmatprep.subr.bf16.mxu1 %v2150_v41  ;;  %1170 = vmatprep.mubr.bf16.mxu0 %v2153_v44  ;;  %v2228_v40 = vld [vmem:[%s2402_s22 + $0xb0] ss:$36 sps:$4 sm:$0xff]   ;;  %v2226_v41 = vld [vmem:[%s2602_s1 + $0x238] sm:$0xff]  }
  0x2c   : > { %1235 = vmatprep.mubr.bf16.mxu1 %v2155_v45 }
  0x2d   : > { %1953 = vmatpush3.bf16.msra.mxu0 %v2151_v42  ;;  %v2229_v42 = vld [vmem:[%s2402_s22 + $0x68] ss:$36 sps:$4 sm:$0xff]  }
  0x2e   : > { %1993 = vmatpush3.bf16.msra.mxu1 %v2152_v43  ;;  %1954 = vmatprep.subr.bf16.mxu0 %v2159_v48  ;;  %v2230_v43 = vld [vmem:[%s2402_s22 + $0xf8] ss:$36 sps:$4 sm:$0xff]   ;;  %s1697_s22 = sshll.u32 %s2612_s6, 2 }
  0x2f   : > { %1994 = vmatprep.subr.bf16.mxu1 %v2160_v49  ;;  %s318_s29 = scalar_lea.vmem %s2605_s4, %s1697_s22  ;;  %s327_s12 = scalar_lea.vmem %s2606_s5, %s1697_s22 }
  0x30   : > { %1171 = vmatmul.mubr.bf16.gmra.mrb[4].mxu0 %v2157_v46 }
  0x31   : > { %1236 = vmatmul.mubr.bf16.gmra.mrb[4].mxu1 %v2158_v47  ;;  %1955 = vmatpush3.bf16.msra.mxu0 %v2161_v50 }
  0x32   : > { %1995 = vmatpush3.bf16.msra.mxu1 %v2162_v51  ;;  %1956 = vmatprep.subr.bf16.mxu0 %v2163_v52 }
  0x33   : > { %1996 = vmatprep.subr.bf16.mxu1 %v2164_v53  ;;  %1178 = vmatprep.mubr.bf16.mxu0 %v2167_v56 }
  0x34   : > { %1243 = vmatprep.mubr.bf16.mxu1 %v2169_v57 }
  0x35   : > { %1957 = vmatpush3.bf16.msra.mxu0 %v2165_v54 }
  0x36   : > { %1997 = vmatpush3.bf16.msra.mxu1 %v2166_v55  ;;  %1958 = vmatprep.subr.bf16.mxu0 %v2173_v60 }
  0x37   : > { %1998 = vmatprep.subr.bf16.mxu1 %v2174_v61 }
  0x38   : > { %1179 = vmatmul.mubr.bf16.gmra.mrb[8].mxu0 %v2171_v58 }
  0x39   : > { %1244 = vmatmul.mubr.bf16.gmra.mrb[8].mxu1 %v2172_v59  ;;  %1959 = vmatpush3.bf16.msra.mxu0 %v2175_v62 }
  0x3a   : > { %1999 = vmatpush3.bf16.msra.mxu1 %v2176_v63  ;;  %1960 = vmatprep.subr.bf16.mxu0 %v2177_v0 }
  0x3b   : > { %2000 = vmatprep.subr.bf16.mxu1 %v2178_v1  ;;  %1186 = vmatprep.mubr.bf16.mxu0 %v2181_v4 }
  0x3c   : > { %1251 = vmatprep.mubr.bf16.mxu1 %v2183_v5 }
  0x3d   : > { %1961 = vmatpush3.bf16.msra.mxu0 %v2179_v2 }
  0x3e   : > { %2001 = vmatpush3.bf16.msra.mxu1 %v2180_v3  ;;  %1962 = vmatprep.subr.bf16.mxu0 %v2187_v8 }
  0x3f   : > { %2002 = vmatprep.subr.bf16.mxu1 %v2188_v9 }
  0x40   : > { %1187 = vmatmul.mubr.bf16.gmra.mrb[12].mxu0 %v2185_v6 }
  0x41   : > { %1252 = vmatmul.mubr.bf16.gmra.mrb[12].mxu1 %v2186_v7  ;;  %1963 = vmatpush3.bf16.msra.mxu0 %v2189_v10 }
  0x42   : > { %2003 = vmatpush3.bf16.msra.mxu1 %v2190_v11  ;;  %1964 = vmatprep.subr.bf16.mxu0 %v2191_v12 }
  0x43   : > { %2004 = vmatprep.subr.bf16.mxu1 %v2192_v13  ;;  %1292 = vmatprep.mubr.bf16.mxu0 %v2197_v17 }
  0x44   : > { %1357 = vmatprep.mubr.bf16.mxu1 %v2200_v19 }
  0x45   : > { %1965 = vmatpush3.bf16.msra.mxu0 %v2193_v14 }
  0x46   : > { %2005 = vmatpush3.bf16.msra.mxu1 %v2194_v15  ;;  %2042 = vmatprep.subr.bf16.mxu0 %v2201_v20 }
  0x47   : > { %2066 = vmatprep.subr.bf16.mxu1 %v2201_v20 }
  0x48   : > { %1293 = vmatmul.mubr.bf16.vlgmr.msra.gmra.mrb[16].mxu0 %v2195_v16 }
  0x49   : > { %1358 = vmatmul.mubr.bf16.vlgmr.msra.gmra.mrb[16].mxu1 %v2198_v18  ;;  %2043 = vmatpush3.bf16.msra.mxu0 %v2201_v20 }
  0x4a   : > { %2074 = vmatpush3.bf16.msra.mxu1 %v2201_v20  ;;  %2044 = vmatprep.subr.bf16.mxu0 %v2202_v21 }
  0x4b   : > { %2067 = vmatprep.subr.bf16.mxu1 %v2202_v21  ;;  %1300 = vmatprep.mubr.bf16.mxu0 %v2203_v22 }
  0x4c   : > { %1365 = vmatprep.mubr.bf16.mxu1 %v2205_v23 }
  0x4d   : > { %2045 = vmatpush3.bf16.msra.mxu0 %v2202_v21 }
  0x4e   : > { %2075 = vmatpush3.bf16.msra.mxu1 %v2202_v21  ;;  %2046 = vmatprep.subr.bf16.mxu0 %v2209_v26 }
  0x4f   : > { %2068 = vmatprep.subr.bf16.mxu1 %v2209_v26 }
  0x50   : > { %1301 = vmatmul.mubr.bf16.gmra.mrb[20].mxu0 %v2207_v24 }
  0x51   : > { %1366 = vmatmul.mubr.bf16.gmra.mrb[20].mxu1 %v2208_v25  ;;  %1308 = vmatprep.mubr.bf16.mxu0 %v2211_v27 }
  0x52   : > { %2047 = vmatpush3.bf16.msra.mxu0 %v2209_v26  ;;  %1373 = vmatprep.mubr.bf16.mxu1 %v2213_v28 }
  0x53   : > { %2076 = vmatpush3.bf16.msra.mxu1 %v2209_v26  ;;  %2048 = vmatprep.subr.bf16.mxu0 %v2210_v29 }
  0x54   : > { %2069 = vmatprep.subr.bf16.mxu1 %v2210_v29 }
  0x56   : > { %2049 = vmatpush3.bf16.msra.mxu0 %v2210_v29 }
  0x57   : > { %2077 = vmatpush3.bf16.msra.mxu1 %v2210_v29  ;;  %2050 = vmatprep.subr.bf16.mxu0 %v2217_v32 }
  0x58   : > { %1309 = vmatmul.mubr.bf16.gmra.mrb[24].mxu0 %v2215_v30  ;;  %2070 = vmatprep.subr.bf16.mxu1 %v2217_v32 }
  0x59   : > { %1374 = vmatmul.mubr.bf16.gmra.mrb[24].mxu1 %v2216_v31  ;;  %1316 = vmatprep.mubr.bf16.mxu0 %v2219_v33 }
  0x5a   : > { %2051 = vmatpush3.bf16.msra.mxu0 %v2217_v32  ;;  %1381 = vmatprep.mubr.bf16.mxu1 %v2221_v34 }
  0x5b   : > { %2078 = vmatpush3.bf16.msra.mxu1 %v2217_v32  ;;  %2052 = vmatprep.subr.bf16.mxu0 %v2218_v35 }
  0x5c   : > { %2071 = vmatprep.subr.bf16.mxu1 %v2218_v35 }
  0x5e   : > { %2053 = vmatpush3.bf16.msra.mxu0 %v2218_v35 }
  0x5f   : > { %2079 = vmatpush3.bf16.msra.mxu1 %v2218_v35  ;;  %2054 = vmatprep.subr.bf16.mxu0 %v2225_v37 }
  0x60   : > { %1317 = vmatmul.mubr.bf16.gmra.mrb[28].mxu0 %v2223_v36  ;;  %2072 = vmatprep.subr.bf16.mxu1 %v2225_v37 }
  0x61   : > { %1382 = vmatmul.mubr.bf16.gmra.mrb[28].mxu1 %v2224_v38  ;;  %2058 = vmatprep.mubr.bf16.mxu0 %v2227_v39 }
  0x62   : > { %2055 = vmatpush3.bf16.msra.mxu0 %v2225_v37  ;;  %2062 = vmatprep.mubr.bf16.mxu1 %v2228_v40 }
  0x63   : > { %2080 = vmatpush3.bf16.msra.mxu1 %v2225_v37  ;;  %2056 = vmatprep.subr.bf16.mxu0 %v2226_v41 }
  0x64   : > { %2073 = vmatprep.subr.bf16.mxu1 %v2226_v41 }
  0x66   : > { %2057 = vmatpush3.bf16.msra.mxu0 %v2226_v41 }
  0x67   : > { %2081 = vmatpush3.bf16.msra.mxu1 %v2226_v41 }
  0x69   : > { %2059 = vmatmul.mubr.bf16.vlgmr.msra.gmra.mrb[32].mxu0 %v2229_v42 }
  0x6a   : > { %2063 = vmatmul.mubr.bf16.vlgmr.msra.gmra.mrb[32].mxu1 %v2230_v43 }
  0xfb   : > { %v1886_v44 = vpop.f32.mrb[0].mxu0 }
  0xfc   : > { %v1926_v45 = vpop.f32.mrb[0].mxu1  ;;  %v1887_v46 = vpop.f32.mrb[1].mxu0 }
  0xfd   : > { %v1888_v47 = vadd.f32 %v1887_v46, %v1886_v44  ;;  %v1927_v48 = vpop.f32.mrb[1].mxu1  ;;  %v1889_v49 = vpop.f32.mrb[2].mxu0 }
  0xfe   : > { %v1928_v50 = vadd.f32 %v1927_v48, %v1926_v45  ;;  %v1929_v51 = vpop.f32.mrb[2].mxu1  ;;  %v1890_v52 = vpop.f32.mrb[3].mxu0 }
  0xff   : > { %v1891_v53 = vadd.f32 %v1890_v52, %v1889_v49  ;;  %v1930_v54 = vpop.f32.mrb[3].mxu1 }
 0x100   : > { %v1230_v55 = vadd.f32 %v1928_v50, %v1888_v47  ;;  %v1931_v56 = vadd.f32 %v1930_v54, %v1929_v51 }
 0x102   : > { %v1233_v57 = vadd.f32 %v1931_v56, %v1891_v53 }
 0x103   : > { %v1892_v58 = vpop.f32.mrb[4].mxu0 }
 0x104   : > { %v1932_v59 = vpop.f32.mrb[4].mxu1  ;;  %v1893_v60 = vpop.f32.mrb[5].mxu0 }
 0x105   : > { %v1894_v61 = vadd.f32 %v1893_v60, %v1892_v58  ;;  %v1933_v62 = vpop.f32.mrb[5].mxu1  ;;  %v1895_v63 = vpop.f32.mrb[6].mxu0 }
 0x106   : > { %v1934_v0 = vadd.f32 %v1933_v62, %v1932_v59  ;;  %v1935_v1 = vpop.f32.mrb[6].mxu1  ;;  %v1896_v2 = vpop.f32.mrb[7].mxu0 }
 0x107   : > { %v1897_v3 = vadd.f32 %v1896_v2, %v1895_v63  ;;  %v1936_v4 = vpop.f32.mrb[7].mxu1 }
 0x108   : > { %v1238_v5 = vadd.f32 %v1934_v0, %v1894_v61  ;;  %v1937_v6 = vadd.f32 %v1936_v4, %v1935_v1 }
 0x10a   : > { %v1241_v7 = vadd.f32 %v1937_v6, %v1897_v3 }
 0x10b   : > { %v1898_v8 = vpop.f32.mrb[8].mxu0 }
 0x10c   : > { %v1938_v9 = vpop.f32.mrb[8].mxu1  ;;  %v1899_v10 = vpop.f32.mrb[9].mxu0 }
 0x10d   : > { %v1900_v11 = vadd.f32 %v1899_v10, %v1898_v8  ;;  %v1939_v12 = vpop.f32.mrb[9].mxu1  ;;  %v1901_v13 = vpop.f32.mrb[10].mxu0 }
 0x10e   : > { %v1940_v14 = vadd.f32 %v1939_v12, %v1938_v9  ;;  %v1941_v15 = vpop.f32.mrb[10].mxu1  ;;  %v1902_v16 = vpop.f32.mrb[11].mxu0 }
 0x10f   : > { %v1903_v17 = vadd.f32 %v1902_v16, %v1901_v13  ;;  %v1942_v18 = vpop.f32.mrb[11].mxu1 }
 0x110   : > { %v1246_v19 = vadd.f32 %v1940_v14, %v1900_v11  ;;  %v1943_v20 = vadd.f32 %v1942_v18, %v1941_v15 }
 0x112   : > { %v1249_v21 = vadd.f32 %v1943_v20, %v1903_v17 }
 0x113   : > { %v1904_v22 = vpop.f32.mrb[12].mxu0 }
 0x114   : > { %v1944_v23 = vpop.f32.mrb[12].mxu1  ;;  %v1905_v24 = vpop.f32.mrb[13].mxu0 }
 0x115   : > { %v1945_v25 = vpop.f32.mrb[13].mxu1  ;;  %v1906_v26 = vadd.f32 %v1905_v24, %v1904_v22  ;;  %v1907_v28 = vpop.f32.mrb[14].mxu0 }
 0x116   : > { %v1946_v27 = vadd.f32 %v1945_v25, %v1944_v23  ;;  %v1947_v29 = vpop.f32.mrb[14].mxu1  ;;  %v1908_v30 = vpop.f32.mrb[15].mxu0 }
 0x117   : > { %v1948_v31 = vpop.f32.mrb[15].mxu1  ;;  %v1909_v33 = vadd.f32 %v1908_v30, %v1907_v28 }
 0x118   : > { %v1254_v32 = vadd.f32 %v1946_v27, %v1906_v26  ;;  %v1949_v34 = vadd.f32 %v1948_v31, %v1947_v29 }
 0x11a   : > { %v2566_v35 = vadd.f32 %v1949_v34, %v1909_v33 }
 0x11b   : > { %v1966_v36 = vpop.f32.mrb[16].mxu0 }
 0x11c   : > { %v1967_v37 = vpop.f32.mrb[17].mxu0  ;;  %v2006_v38 = vpop.f32.mrb[16].mxu1 }
 0x11d   : > { %v1968_v39 = vadd.f32 %v1967_v37, %v1966_v36  ;;  %v1969_v40 = vpop.f32.mrb[18].mxu0  ;;  %v2007_v41 = vpop.f32.mrb[17].mxu1  ;;  %v1864_v37 = vld [vmem:[%s318_s29 + $0x8] sm:$0xff]  }
 0x11e   : > { %v1970_v42 = vpop.f32.mrb[19].mxu0  ;;  %v2008_v44 = vadd.f32 %v2007_v41, %v2006_v38  ;;  %v2009_v45 = vpop.f32.mrb[18].mxu1  ;;  %v1866_v38 = vld [vmem:[%s318_s29 + $0x18] sm:$0xff]  }
 0x11f   : > { %v1295_v43 = vadd.f32 %v1968_v39, %v1230_v55  ;;  %v1971_v46 = vadd.f32 %v1970_v42, %v1969_v40  ;;  %v2010_v47 = vpop.f32.mrb[19].mxu1  ;;  %v1829_v39 = vld [vmem:[%s318_s29] sm:$0xff]   ;;  %v1865_v40 = vld [vmem:[%s318_s29 + $0x10] sm:$0xff]  }
 0x120   : > { %v2011_v49 = vadd.f32 %v2010_v47, %v2009_v45 }
 0x121   : > { %v1298_v48 = vadd.f32 %v1971_v46, %v1233_v57  ;;  %v2568_v50 = vadd.f32 %v2008_v44, %v1295_v43  ;;  %v1834_v43 = vunpack.c.l.bf16 %v1864_v37  ;;  %v1842_v44 = vunpack.c.l.bf16 %v1866_v38 }
 0x123   : > { %v1972_v51 = vpop.f32.mrb[20].mxu0  ;;  %v2570_v52 = vadd.f32 %v2011_v49, %v1298_v48  ;;  %v1830_v48 = vunpack.c.l.bf16 %v1829_v39  ;;  %v1838_v49 = vunpack.c.l.bf16 %v1865_v40 }
 0x124   : > { %v1973_v53 = vpop.f32.mrb[21].mxu0  ;;  %v2012_v54 = vpop.f32.mrb[20].mxu1 }
 0x125   : > { %v1974_v56 = vadd.f32 %v1973_v53, %v1972_v51  ;;  %v1975_v58 = vpop.f32.mrb[22].mxu0  ;;  %v2013_v59 = vpop.f32.mrb[21].mxu1  ;;  %v1809_v51 = vld [vmem:[%s2604_s3] ss:$0 sm:$0xff] }
 0x126   : > { %v1976_v60 = vpop.f32.mrb[23].mxu0  ;;  %v2014_v62 = vadd.f32 %v2013_v59, %v2012_v54  ;;  %v2015_v55 = vpop.f32.mrb[22].mxu1  ;;  %v1843_v59 = vunpack.c.h.bf16 %v1866_v38 }
 0x127   : > { %v1303_v61 = vadd.f32 %v1974_v56, %v1238_v5  ;;  %v1977_v63 = vadd.f32 %v1976_v60, %v1975_v58  ;;  %v2016_v0 = vpop.f32.mrb[23].mxu1  ;;  %v1831_v60 = vunpack.c.h.bf16 %v1829_v39 }
 0x128   : > { %v2017_v2 = vadd.f32 %v2016_v0, %v2015_v55 }
 0x129   : > { %v1306_v1 = vadd.f32 %v1977_v63, %v1241_v7  ;;  %v1368_v57 = vadd.f32 %v2014_v62, %v1303_v61 }
 0x12b   : > { %v1978_v3 = vpop.f32.mrb[24].mxu0  ;;  %v1371_v4 = vadd.f32 %v2017_v2, %v1306_v1  ;;  %v1839_v1 = vunpack.c.h.bf16 %v1865_v40 }
 0x12c   : > { %v1979_v6 = vpop.f32.mrb[25].mxu0  ;;  %v2018_v8 = vpop.f32.mrb[24].mxu1 }
 0x12d   : > { %v1980_v9 = vadd.f32 %v1979_v6, %v1978_v3  ;;  %v1981_v10 = vpop.f32.mrb[26].mxu0  ;;  %v2019_v11 = vpop.f32.mrb[25].mxu1 }
 0x12e   : > { %v1982_v12 = vpop.f32.mrb[27].mxu0  ;;  %v2020_v14 = vadd.f32 %v2019_v11, %v2018_v8  ;;  %v2021_v15 = vpop.f32.mrb[26].mxu1 }
 0x12f   : > { %v1311_v13 = vadd.f32 %v1980_v9, %v1246_v19  ;;  %v1983_v5 = vadd.f32 %v1982_v12, %v1981_v10  ;;  %v2022_v16 = vpop.f32.mrb[27].mxu1 }
 0x130   : > { %v2023_v18 = vadd.f32 %v2022_v16, %v2021_v15 }
 0x131   : > { %v1314_v17 = vadd.f32 %v1983_v5, %v1249_v21  ;;  %v1376_v7 = vadd.f32 %v2020_v14, %v1311_v13 }
 0x133   : > { %v1984_v20 = vpop.f32.mrb[28].mxu0  ;;  %v1379_v22 = vadd.f32 %v2023_v18, %v1314_v17 }
 0x134   : > { %v1985_v23 = vpop.f32.mrb[29].mxu0  ;;  %v2024_v24 = vpop.f32.mrb[28].mxu1 }
 0x135   : > { %v1986_v25 = vadd.f32 %v1985_v23, %v1984_v20  ;;  %v1987_v26 = vpop.f32.mrb[30].mxu0  ;;  %v2025_v27 = vpop.f32.mrb[29].mxu1 }
 0x136   : > { %v1988_v28 = vpop.f32.mrb[31].mxu0  ;;  %v2026_v30 = vadd.f32 %v2025_v27, %v2024_v24  ;;  %v2027_v19 = vpop.f32.mrb[30].mxu1 }
 0x137   : > { %v1319_v29 = vadd.f32 %v1986_v25, %v1254_v32  ;;  %v1989_v31 = vadd.f32 %v1988_v28, %v1987_v26  ;;  %v2028_v21 = vpop.f32.mrb[31].mxu1  ;;  %v1808_v32 = vld [vmem:[%s2603_s2] ss:$0 sm:$0xff] }
 0x138   : > { %v2029_v34 = vadd.f32 %v2028_v21, %v2027_v19 }
 0x139   : > { %v1322_v33 = vadd.f32 %v1989_v31, %v2566_v35  ;;  %v1384_v36 = vadd.f32 %v2026_v30, %v1319_v29  ;;  %v1835_v35 = vunpack.c.h.bf16 %v1864_v37 }
 0x13b   : > { %v1387_v41 = vadd.f32 %v2029_v34, %v1322_v33 }
 0x13c   : > { %v2060_v42 = vpop.f32.mrb[32].mxu0 }
 0x13d   : > { %v1433_v45 = vadd.f32 %v2060_v42, %v1368_v57  ;;  %v2064_v46 = vpop.f32.mrb[32].mxu1  ;;  %v1424_v47 = vpop.f32.mrb[33].mxu0 }
 0x13e   : > { %v1449_v53 = vadd.f32 %v2064_v46, %v1384_v36  ;;  %v1425_v54 = vadd.f32 %v1424_v47, %v2568_v50  ;;  %v1440_v56 = vpop.f32.mrb[33].mxu1  ;;  %v2061_v58 = vpop.f32.mrb[34].mxu0 }
 0x13f   : > { %v1464_v61 = vmul.f32 %v1808_v32, %v1433_v45  ;;  %v1441_v62 = vadd.f32 %v1440_v56, %v1376_v7  ;;  %v1436_v55 = vadd.f32 %v2061_v58, %v1371_v4  ;;  %v2065_v63 = vpop.f32.mrb[34].mxu1  ;;  %v1427_v0 = vpop.f32.mrb[35].mxu0 }
 0x140   : > { %v1468_v2 = vmul.f32 %v1808_v32, %v1449_v53  ;;  %v1462_v57 = vmul.f32 %v1808_v32, %v1425_v54  ;;  %v1452_v3 = vadd.f32 %v2065_v63, %v1387_v41  ;;  %v1428_v6 = vadd.f32 %v1427_v0, %v2570_v52  ;;  %v1443_v8 = vpop.f32.mrb[35].mxu1 }
 0x141   : > { %v1479_v9 = vadd.f32 %v1809_v51, %v1464_v61  ;;  %v1466_v10 = vmul.f32 %v1808_v32, %v1441_v62  ;;  %v1465_v11 = vmul.f32 %v1808_v32, %v1436_v55  ;;  %v1444_v50 = vadd.f32 %v1443_v8, %v1379_v22 }
 0x142   : > { %v1483_v12 = vadd.f32 %v1809_v51, %v1468_v2  ;;  %v1477_v13 = vadd.f32 %v1809_v51, %v1462_v57  ;;  %v1469_v14 = vmul.f32 %v1808_v32, %v1452_v3  ;;  %v1463_v15 = vmul.f32 %v1808_v32, %v1428_v6 }
 0x143   : > { %v1503_v5 = vadd.f32 %v1834_v43, %v1479_v9  ;;  %v1481_v16 = vadd.f32 %v1809_v51, %v1466_v10  ;;  %v1480_v4 = vadd.f32 %v1809_v51, %v1465_v11  ;;  %v1467_v17 = vmul.f32 %v1808_v32, %v1444_v50 }
 0x144   : > { %v1507_v18 = vadd.f32 %v1842_v44, %v1483_v12  ;;  %v1501_v7 = vadd.f32 %v1830_v48, %v1477_v13  ;;  %v1484_v20 = vadd.f32 %v1809_v51, %v1469_v14  ;;  %v1478_v23 = vadd.f32 %v1809_v51, %v1463_v15 }
 0x145   : > { %v1505_v24 = vadd.f32 %v1838_v49, %v1481_v16  ;;  %v1504_v52 = vadd.f32 %v1835_v35, %v1480_v4  ;;  %v1482_v25 = vadd.f32 %v1809_v51, %v1467_v17  ;;  %v1511_v28 = vmax.f32 %v1503_v5, 0.0 }
 0x146   : > { %v1508_v26 = vadd.f32 %v1843_v59, %v1484_v20  ;;  %v1502_v27 = vadd.f32 %v1831_v60, %v1478_v23  ;;  %v1515_v30 = vmax.f32 %v1507_v18, 0.0  ;;  %v1509_v19 = vmax.f32 %v1501_v7, 0.0 }
 0x147   : > { %v1512_v22 = vmax.f32 %v1504_v52, 0.0  ;;  %v1506_v29 = vadd.f32 %v1839_v1, %v1482_v25  ;;  %v1513_v33 = vmax.f32 %v1505_v24, 0.0 }
 0x148   : > { %v1516_v31 = vmax.f32 %v1508_v26, 0.0  ;;  %v1510_v21 = vmax.f32 %v1502_v27, 0.0 }
 0x149   : > { %v1852_v34 = vpack.c.bf16 %v1512_v22, %v1511_v28  ;;  %v1514_v36 = vmax.f32 %v1506_v29, 0.0 }
 0x14a   : > { %v1862_v37 = vpack.c.bf16 %v1516_v31, %v1515_v30  ;;  %v1847_v38 = vpack.c.bf16 %v1510_v21, %v1509_v19 }
 0x14b   : > { %1867 = vst [vmem:[%s327_s12 + $0x8] sm:$0xff] %v1852_v34   ;;  %v1857_v39 = vpack.c.bf16 %v1514_v36, %v1513_v33 }
 0x14c   : > { %1869 = vst [vmem:[%s327_s12 + $0x18] sm:$0xff] %v1862_v37   ;;  %1848 = vst [vmem:[%s327_s12] sm:$0xff] %v1847_v38  }
 0x14d   : > { %1868 = vst [vmem:[%s327_s12 + $0x10] sm:$0xff] %v1857_v39  }
 0x14e PF: > { %s15_s20 = sadd.s32 1, %s2253_s20   ;;  %s2607_s18 = smov %s2249_s19 }
 0x14f   : > { %p12_p5 = scmp.ge.s32.totalorder %s15_s20, 4   ;;  %s2608_s19 = smov %s2610_s21 }
 0x151   :  { %14 = sbr.rel (!%p12_p5) target bundleno = 2 (0x2), region = 82 }

// kernel: resnet_forward.27
= control target key start
LH: loop header
LB: loop body
LE: loop exit
PB: predicated region body
PF: predicated region fallthrough
CT: control target
= control target key end

     0   :  { %s671_s15 = smov 0   ;;  %s673_s16 = smov 0   ;;  %s741_s0 = inlined_call_operand.vmem [shape: bf16[32,128], index: 0, kind: input, shape index: {}]   ;;  %s742_s1 = inlined_call_operand.vmem [shape: bf16[128,128], index: 1, kind: input, shape index: {}]   ;;  %s743_s2 = inlined_call_operand.vmem [shape: f32[1,128], index: 2, kind: input, shape index: {}]   ;;  %s744_s3 = inlined_call_operand.vmem [shape: f32[1,128], index: 3, kind: input, shape index: {}]   ;;  %s745_s4 = inlined_call_operand.vmem [shape: bf16[32,128], index: 4, kind: output, shape index: {}]  }
   0x1   :  { %s675_s17 = smov 0  }
   0x2 LB: > { %s26_s18 = sadd.s32 1, %s638_s16  ;;  %p529_p0 = scmp.ge.s32.totalorder %s642_s17, 1  ;;  %s642_s17 = sphi %s675_s17, %s14_s17   ;;  %s638_s16 = sphi %s673_s16, %s747_s16   ;;  %s634_s15 = sphi %s671_s15, %s746_s15  }
   0x3   : > { %p28_p1 = scmp.ge.s32.totalorder %s26_s18, 2  ;;  %p202_p2 = scmp.lt.s32.totalorder %s642_s17, 3 }
   0x5   : > { %s749_s18 = smov (%p28_p1, %s26_s18), 0  ;;  %p203_p3 = pnand %p529_p0, %p202_p2 }
   0x6   : > { %v611_v0 = vld [vmem:[%s742_s1] sm:$0xff] (!%p203_p3)   ;;  %v644_v1 = vmov (!%p203_p3), 0.0   ;;  %v612_v2 = vld [vmem:[%s742_s1 + $0x8] sm:$0xff] (!%p203_p3)   ;;  %vm645_vm0 = vmmov (!%p203_p3), 0   ;;  %s530_s23 = sshll.u32 (!%p203_p3), %s634_s15, 1  ;;  %v613_v3 = vld [vmem:[%s742_s1 + $0x10] sm:$0xff] (!%p203_p3)  }
   0x7   : > { %206 = sbr.rel (%p203_p3) target bundleno = 260 (0x104), region = 36  ;;  %565 = vmatprep.subr.bf16.mxu0 (!%p203_p3), %v644_v1  ;;  %581 = vmatprep.mubr.msk.bf16.mxu0 (!%p203_p3), %vm645_vm0, %v644_v1  ;;  %p242_p4 = scmp.lt.s32.totalorder (!%p203_p3), %s530_s23, 3  ;;  %v614_v4 = vld [vmem:[%s742_s1 + $0x18] sm:$0xff] (!%p203_p3)   ;;  %v615_v5 = vld [vmem:[%s742_s1 + $0x20] sm:$0xff] (!%p203_p3)   ;;  %v616_v6 = vld [vmem:[%s742_s1 + $0x28] sm:$0xff] (!%p203_p3)  }
   0x8   : > { %566 = vmatpush3.bf16.msra.mxu0 (!%p203_p3), %v611_v0  ;;  %v617_v7 = vld [vmem:[%s742_s1 + $0x30] sm:$0xff] (!%p203_p3)   ;;  %v618_v8 = vld [vmem:[%s742_s1 + $0x38] sm:$0xff] (!%p203_p3)   ;;  %v543_v10 = vld [vmem:[%s743_s2] ss:$0 sm:$0xff] (!%p203_p3) }
   0x9   : > { %567 = vmatprep.subr.bf16.mxu0 (!%p203_p3), %v644_v1  ;;  %v544_v14 = vld [vmem:[%s744_s3] ss:$0 sm:$0xff] (!%p203_p3) }
   0xc   : > { %568 = vmatpush3.bf16.msra.mxu0 (!%p203_p3), %v612_v2 }
   0xd   : > { %569 = vmatprep.subr.bf16.mxu0 (!%p203_p3), %v644_v1 }
   0xe   : > { %s751_s23 = smov (!%p242_p4, %s530_s23), 3 }
   0xf   : > { %s531_s26 = sshll.u32 %s751_s23, 2 }
  0x10   : > { %s245_s29 = scalar_lea.vmem %s741_s0, %s531_s26  ;;  %570 = vmatpush3.bf16.msra.mxu0 %v613_v3  ;;  %s264_s24 = scalar_lea.vmem %s745_s4, %s531_s26 }
  0x11   : > { %571 = vmatprep.subr.bf16.mxu0 %v644_v1  ;;  %v619_v9 = vld [vmem:[%s245_s29] sm:$0xff]  }
  0x14   : > { %572 = vmatpush3.bf16.msra.mxu0 %v614_v4 }
  0x15   : > { %573 = vmatprep.subr.bf16.mxu0 %v644_v1 }
  0x18   : > { %574 = vmatpush3.bf16.msra.mxu0 %v615_v5 }
  0x19   : > { %575 = vmatprep.subr.bf16.mxu0 %v644_v1 }
  0x1c   : > { %576 = vmatpush3.bf16.msra.mxu0 %v616_v6 }
  0x1d   : > { %577 = vmatprep.subr.bf16.mxu0 %v644_v1 }
  0x20   : > { %578 = vmatpush3.bf16.msra.mxu0 %v617_v7 }
  0x21   : > { %579 = vmatprep.subr.bf16.mxu0 %v644_v1 }
  0x24   : > { %580 = vmatpush3.bf16.msra.mxu0 %v618_v8 }
  0x27   : > { %582 = vmatmul.mubr.bf16.vlgmr.msra.gmra.mrb[0].mxu0 %v619_v9 }
  0xfa   : > { %v373_v11 = vpop.f32.mrb[0].mxu0 }
  0xfb   : > { %v387_v12 = vmul.f32 %v543_v10, %v373_v11  ;;  %v583_v13 = vpop.f32.mrb[1].mxu0 }
  0xfc   : > { %v376_v15 = vpop.f32.mrb[2].mxu0 }
  0xfd   : > { %v388_v16 = vmul.f32 %v543_v10, %v376_v15  ;;  %v584_v17 = vpop.f32.mrb[3].mxu0  ;;  %v396_v18 = vadd.f32 %v544_v14, %v387_v12 }
  0xff   : > { %v397_v19 = vadd.f32 %v544_v14, %v388_v16 }
 0x101   : > { %v554_v20 = vpack.c.bf16 %v397_v19, %v396_v18 }
 0x103   : > { %555 = vst [vmem:[%s264_s24] sm:$0xff] %v554_v20  }
 0x104 PF: > { %s14_s17 = sadd.s32 1, %s642_s17   ;;  %s746_s15 = smov %s638_s16 }
 0x105   : > { %p11_p5 = scmp.ge.s32.totalorder %s14_s17, 4   ;;  %s747_s16 = smov %s749_s18 }
 0x107   :  { %13 = sbr.rel (!%p11_p5) target bundleno = 2 (0x2), region = 75 }

// kernel: resnet_forward.26
= control target key start
LH: loop header
LB: loop body
LE: loop exit
PB: predicated region body
PF: predicated region fallthrough
CT: control target
= control target key end

     0   :  { %s1637_s15 = smov 0   ;;  %s1639_s16 = smov 0   ;;  %s1910_s0 = inlined_call_operand.vmem [shape: bf16[32,1152], index: 0, kind: input, shape index: {}]   ;;  %s1911_s1 = inlined_call_operand.vmem [shape: bf16[1152,128], index: 1, kind: input, shape index: {}]   ;;  %s1912_s2 = inlined_call_operand.vmem [shape: f32[1,128], index: 2, kind: input, shape index: {}]   ;;  %s1913_s3 = inlined_call_operand.vmem [shape: f32[1,128], index: 3, kind: input, shape index: {}]   ;;  %s1914_s4 = inlined_call_operand.vmem [shape: bf16[32,128], index: 4, kind: output, shape index: {}]  }
   0x1   :  { %s1641_s17 = smov 0  }
   0x2 LB: > { %s26_s18 = sadd.s32 1, %s1604_s16  ;;  %p1258_p0 = scmp.ge.s32.totalorder %s1608_s17, 1  ;;  %s1608_s17 = sphi %s1641_s17, %s14_s17   ;;  %s1604_s16 = sphi %s1639_s16, %s1916_s16   ;;  %s1600_s15 = sphi %s1637_s15, %s1915_s15  }
   0x3   : > { %p28_p1 = scmp.ge.s32.totalorder %s26_s18, 2  ;;  %p203_p2 = scmp.lt.s32.totalorder %s1608_s17, 3 }
   0x5   : > { %s1918_s18 = smov (%p28_p1, %s26_s18), 0  ;;  %p204_p3 = pnand %p1258_p0, %p203_p2 }
   0x6   : > { %v1501_v0 = vld [vmem:[%s1911_s1 + $0x40] sm:$0xff] (!%p204_p3)   ;;  %v1505_v4 = vld [vmem:[%s1911_s1 + $0x48] sm:$0xff] (!%p204_p3)   ;;  %v1509_v8 = vld [vmem:[%s1911_s1 + $0x50] sm:$0xff] (!%p204_p3)   ;;  %s1259_s27 = sshll.u32 (!%p204_p3), %s1600_s15, 1  ;;  %vm1611_vm0 = vmmov (!%p204_p3), 0  }
   0x7   : > { %207 = sbr.rel (%p204_p3) target bundleno = 329 (0x149), region = 36  ;;  %v1502_v1 = vld [vmem:[%s1911_s1 + $0xc0] sm:$0xff] (!%p204_p3)   ;;  %1357 = vmatprep.subr.bf16.mxu0 (!%p204_p3), %v1501_v0  ;;  %v1506_v5 = vld [vmem:[%s1911_s1 + $0xc8] sm:$0xff] (!%p204_p3)   ;;  %v1510_v9 = vld [vmem:[%s1911_s1 + $0xd0] sm:$0xff] (!%p204_p3)   ;;  %p244_p4 = scmp.lt.s32.totalorder (!%p204_p3), %s1259_s27, 3 }
   0x8   : > { %v1503_v2 = vld [vmem:[%s1911_s1] sm:$0xff] (!%p204_p3)   ;;  %1379 = vmatprep.subr.bf16.mxu1 (!%p204_p3), %v1502_v1  ;;  %v1507_v6 = vld [vmem:[%s1911_s1 + $0x8] sm:$0xff] (!%p204_p3)   ;;  %v1511_v10 = vld [vmem:[%s1911_s1 + $0x10] sm:$0xff] (!%p204_p3)  }
   0x9   : > { %v1504_v3 = vld [vmem:[%s1911_s1 + $0x80] sm:$0xff] (!%p204_p3)   ;;  %1358 = vmatpush3.bf16.msra.mxu0 (!%p204_p3), %v1503_v2  ;;  %v1508_v7 = vld [vmem:[%s1911_s1 + $0x88] sm:$0xff] (!%p204_p3)   ;;  %v1512_v11 = vld [vmem:[%s1911_s1 + $0x90] sm:$0xff] (!%p204_p3)  }
   0xa   : > { %1380 = vmatpush3.bf16.msra.mxu1 (!%p204_p3), %v1504_v3  ;;  %1359 = vmatprep.subr.bf16.mxu0 (!%p204_p3), %v1505_v4  ;;  %v1513_v12 = vld [vmem:[%s1911_s1 + $0x58] sm:$0xff] (!%p204_p3)   ;;  %v1517_v16 = vld [vmem:[%s1911_s1 + $0x60] sm:$0xff] (!%p204_p3)   ;;  %v1521_v20 = vld [vmem:[%s1911_s1 + $0x68] sm:$0xff] (!%p204_p3)  }
   0xb   : > { %1381 = vmatprep.subr.bf16.mxu1 (!%p204_p3), %v1506_v5  ;;  %v1514_v13 = vld [vmem:[%s1911_s1 + $0xd8] sm:$0xff] (!%p204_p3)   ;;  %v1518_v17 = vld [vmem:[%s1911_s1 + $0xe0] sm:$0xff] (!%p204_p3)   ;;  %v1522_v21 = vld [vmem:[%s1911_s1 + $0xe8] sm:$0xff] (!%p204_p3)  }
   0xc   : > { %v1515_v14 = vld [vmem:[%s1911_s1 + $0x18] sm:$0xff] (!%p204_p3)   ;;  %v1519_v18 = vld [vmem:[%s1911_s1 + $0x20] sm:$0xff] (!%p204_p3)   ;;  %v1523_v22 = vld [vmem:[%s1911_s1 + $0x28] sm:$0xff] (!%p204_p3)  }
   0xd   : > { %1360 = vmatpush3.bf16.msra.mxu0 (!%p204_p3), %v1507_v6  ;;  %v1516_v15 = vld [vmem:[%s1911_s1 + $0x98] sm:$0xff] (!%p204_p3)   ;;  %v1520_v19 = vld [vmem:[%s1911_s1 + $0xa0] sm:$0xff] (!%p204_p3)   ;;  %v1524_v23 = vld [vmem:[%s1911_s1 + $0xa8] sm:$0xff] (!%p204_p3)   ;;  %v1610_v6 = vmov (!%p204_p3), 0.0  }
   0xe   : > { %1382 = vmatpush3.bf16.msra.mxu1 %v1508_v7  ;;  %1361 = vmatprep.subr.bf16.mxu0 %v1509_v8  ;;  %s1920_s27 = smov (!%p244_p4, %s1259_s27), 3  ;;  %v1525_v24 = vld [vmem:[%s1911_s1 + $0x70] sm:$0xff]   ;;  %v1529_v28 = vld [vmem:[%s1911_s1 + $0x78] sm:$0xff]   ;;  %v1539_v36 = vld [vmem:[%s1911_s1 + $0x140] sm:$0xff]  }
   0xf   : > { %1383 = vmatprep.subr.bf16.mxu1 %v1510_v9  ;;  %v1526_v25 = vld [vmem:[%s1911_s1 + $0xf0] sm:$0xff]   ;;  %s1474_s28 = smul.u32 36, %s1920_s27  ;;  %v1530_v29 = vld [vmem:[%s1911_s1 + $0xf8] sm:$0xff]   ;;  %v1540_v37 = vld [vmem:[%s1911_s1 + $0x100] sm:$0xff]   ;;  %s1262_s20 = sshll.u32 %s1920_s27, 2 }
  0x10   : > { %v1527_v26 = vld [vmem:[%s1911_s1 + $0x30] sm:$0xff]   ;;  %v1531_v30 = vld [vmem:[%s1911_s1 + $0x38] sm:$0xff]   ;;  %v1541_v38 = vld [vmem:[%s1911_s1 + $0x1c0] sm:$0xff]   ;;  %s267_s23 = scalar_lea.vmem %s1914_s4, %s1262_s20 }
  0x11   : > { %1362 = vmatpush3.bf16.msra.mxu0 %v1511_v10  ;;  %v1528_v27 = vld [vmem:[%s1911_s1 + $0xb0] sm:$0xff]   ;;  %s1754_s12 = scalar_lea.vmem %s1910_s0, %s1474_s28  ;;  %v1532_v31 = vld [vmem:[%s1911_s1 + $0xb8] sm:$0xff]   ;;  %v1542_v39 = vld [vmem:[%s1911_s1 + $0x180] sm:$0xff]  }
  0x12   : > { %1384 = vmatpush3.bf16.msra.mxu1 %v1512_v11  ;;  %1363 = vmatprep.subr.bf16.mxu0 %v1513_v12  ;;  %v1533_v32 = vld [vmem:[%s1754_s12] ss:$36 sps:$4 sm:$0xff]   ;;  %v1536_v34 = vld [vmem:[%s1754_s12 + $0x8] ss:$36 sps:$4 sm:$0xff]   ;;  %v1547_v44 = vld [vmem:[%s1911_s1 + $0x150] sm:$0xff]  }
  0x13   : > { %1385 = vmatprep.subr.bf16.mxu1 %v1514_v13  ;;  %v1535_v33 = vld [vmem:[%s1754_s12 + $0x4] ss:$36 sps:$4 sm:$0xff]   ;;  %v1538_v35 = vld [vmem:[%s1754_s12 + $0xc] ss:$36 sps:$4 sm:$0xff]   ;;  %v1551_v48 = vld [vmem:[%s1911_s1 + $0x158] sm:$0xff]  }
  0x14   : > { %934 = vmatprep.mubr.bf16.mxu0 %v1535_v33  ;;  %975 = vmatprep.mubr.bf16.mxu1 %v1538_v35  ;;  %v1543_v40 = vld [vmem:[%s1911_s1 + $0x148] sm:$0xff]   ;;  %v1548_v45 = vld [vmem:[%s1911_s1 + $0x110] sm:$0xff]   ;;  %v1552_v49 = vld [vmem:[%s1911_s1 + $0x118] sm:$0xff]  }
  0x15   : > { %1364 = vmatpush3.bf16.msra.mxu0 %v1515_v14  ;;  %v1544_v41 = vld [vmem:[%s1911_s1 + $0x108] sm:$0xff]   ;;  %v1549_v46 = vld [vmem:[%s1911_s1 + $0x1d0] sm:$0xff]   ;;  %v1553_v50 = vld [vmem:[%s1911_s1 + $0x1d8] sm:$0xff]  }
  0x16   : > { %1386 = vmatpush3.bf16.msra.mxu1 %v1516_v15  ;;  %1365 = vmatprep.subr.bf16.mxu0 %v1517_v16  ;;  %v1545_v42 = vld [vmem:[%s1911_s1 + $0x1c8] sm:$0xff]   ;;  %v1550_v47 = vld [vmem:[%s1911_s1 + $0x190] sm:$0xff]   ;;  %v1554_v51 = vld [vmem:[%s1911_s1 + $0x198] sm:$0xff]  }
  0x17   : > { %1387 = vmatprep.subr.bf16.mxu1 %v1518_v17  ;;  %v1546_v43 = vld [vmem:[%s1911_s1 + $0x188] sm:$0xff]   ;;  %v1555_v52 = vld [vmem:[%s1911_s1 + $0x160] sm:$0xff]   ;;  %v1563_v60 = vld [vmem:[%s1911_s1 + $0x170] sm:$0xff]  }
  0x18   : > { %v1556_v53 = vld [vmem:[%s1911_s1 + $0x120] sm:$0xff]   ;;  %v1559_v56 = vld [vmem:[%s1911_s1 + $0x168] sm:$0xff]   ;;  %v1564_v61 = vld [vmem:[%s1911_s1 + $0x130] sm:$0xff]  }
  0x19   : > { %1366 = vmatpush3.bf16.msra.mxu0 %v1519_v18  ;;  %v1557_v54 = vld [vmem:[%s1911_s1 + $0x1e0] sm:$0xff]   ;;  %v1560_v57 = vld [vmem:[%s1911_s1 + $0x128] sm:$0xff]   ;;  %v1565_v62 = vld [vmem:[%s1911_s1 + $0x1f0] sm:$0xff]  }
  0x1a   : > { %1388 = vmatpush3.bf16.msra.mxu1 %v1520_v19  ;;  %1367 = vmatprep.subr.bf16.mxu0 %v1521_v20  ;;  %v1558_v55 = vld [vmem:[%s1911_s1 + $0x1a0] sm:$0xff]   ;;  %v1561_v58 = vld [vmem:[%s1911_s1 + $0x1e8] sm:$0xff]   ;;  %v1566_v63 = vld [vmem:[%s1911_s1 + $0x1b0] sm:$0xff]  }
  0x1b   : > { %1389 = vmatprep.subr.bf16.mxu1 %v1522_v21  ;;  %v1562_v59 = vld [vmem:[%s1911_s1 + $0x1a8] sm:$0xff]   ;;  %v1567_v0 = vld [vmem:[%s1911_s1 + $0x178] sm:$0xff]   ;;  %v1570_v3 = vld [vmem:[%s1754_s12 + $0x10] ss:$36 sps:$4 sm:$0xff]  }
  0x1c   : > { %v1568_v1 = vld [vmem:[%s1911_s1 + $0x138] sm:$0xff]   ;;  %v1577_v9 = vld [vmem:[%s1911_s1 + $0x200] sm:$0xff]   ;;  %v1578_v10 = vld [vmem:[%s1911_s1 + $0x208] sm:$0xff]  }
  0x1d   : > { %1368 = vmatpush3.bf16.msra.mxu0 %v1523_v22  ;;  %v1569_v2 = vld [vmem:[%s1911_s1 + $0x1f8] sm:$0xff]   ;;  %v1579_v11 = vld [vmem:[%s1911_s1 + $0x210] sm:$0xff]   ;;  %v1581_v13 = vld [vmem:[%s1911_s1 + $0x220] sm:$0xff]  }
  0x1e   : > { %1390 = vmatpush3.bf16.msra.mxu1 %v1524_v23  ;;  %1369 = vmatprep.subr.bf16.mxu0 %v1525_v24  ;;  %v1572_v4 = vld [vmem:[%s1754_s12 + $0x14] ss:$36 sps:$4 sm:$0xff]   ;;  %v1576_v8 = vld [vmem:[%s1754_s12 + $0x1c] ss:$36 sps:$4 sm:$0xff]   ;;  %v1582_v14 = vld [vmem:[%s1911_s1 + $0x228] sm:$0xff]  }
  0x1f   : > { %1391 = vmatprep.subr.bf16.mxu1 %v1526_v25  ;;  %v1573_v5 = vld [vmem:[%s1911_s1 + $0x1b8] sm:$0xff]   ;;  %v1583_v15 = vld [vmem:[%s1911_s1 + $0x230] sm:$0xff]   ;;  %v1585_v17 = vld [vmem:[%s1754_s12 + $0x20] ss:$36 sps:$4 sm:$0xff]  }
  0x20   : > { %v1574_v7 = vld [vmem:[%s1754_s12 + $0x18] ss:$36 sps:$4 sm:$0xff]  }
  0x21   : > { %1370 = vmatpush3.bf16.msra.mxu0 %v1527_v26  ;;  %v1580_v12 = vld [vmem:[%s1911_s1 + $0x218] sm:$0xff]  }
  0x22   : > { %1392 = vmatpush3.bf16.msra.mxu1 %v1528_v27  ;;  %1371 = vmatprep.subr.bf16.mxu0 %v1529_v28  ;;  %v1584_v16 = vld [vmem:[%s1911_s1 + $0x238] sm:$0xff]  }
  0x23   : > { %1393 = vmatprep.subr.bf16.mxu1 %v1530_v29 }
  0x25   : > { %1372 = vmatpush3.bf16.msra.mxu0 %v1531_v30 }
  0x26   : > { %1394 = vmatpush3.bf16.msra.mxu1 %v1532_v31  ;;  %1401 = vmatprep.subr.bf16.mxu0 %v1539_v36 }
  0x27   : > { %1423 = vmatprep.subr.bf16.mxu1 %v1541_v38 }
  0x28   : > { %935 = vmatmul.mubr.bf16.vlgmr.msra.gmra.mrb[0].mxu0 %v1533_v32 }
  0x29   : > { %976 = vmatmul.mubr.bf16.vlgmr.msra.gmra.mrb[0].mxu1 %v1536_v34  ;;  %1402 = vmatpush3.bf16.msra.mxu0 %v1540_v37 }
  0x2a   : > { %1424 = vmatpush3.bf16.msra.mxu1 %v1542_v39  ;;  %1403 = vmatprep.subr.bf16.mxu0 %v1543_v40 }
  0x2b   : > { %1425 = vmatprep.subr.bf16.mxu1 %v1545_v42  ;;  %1016 = vmatprep.mubr.bf16.mxu0 %v1572_v4 }
  0x2c   : > { %1057 = vmatprep.mubr.bf16.mxu1 %v1576_v8 }
  0x2d   : > { %1404 = vmatpush3.bf16.msra.mxu0 %v1544_v41 }
  0x2e   : > { %1426 = vmatpush3.bf16.msra.mxu1 %v1546_v43  ;;  %1405 = vmatprep.subr.bf16.mxu0 %v1547_v44 }
  0x2f   : > { %1427 = vmatprep.subr.bf16.mxu1 %v1549_v46 }
  0x31   : > { %1406 = vmatpush3.bf16.msra.mxu0 %v1548_v45 }
  0x32   : > { %1428 = vmatpush3.bf16.msra.mxu1 %v1550_v47  ;;  %1407 = vmatprep.subr.bf16.mxu0 %v1551_v48 }
  0x33   : > { %1429 = vmatprep.subr.bf16.mxu1 %v1553_v50 }
  0x35   : > { %1408 = vmatpush3.bf16.msra.mxu0 %v1552_v49  ;;  %v1344_v49 = vld [vmem:[%s1912_s2] ss:$0 sm:$0xff] }
  0x36   : > { %1430 = vmatpush3.bf16.msra.mxu1 %v1554_v51  ;;  %1409 = vmatprep.subr.bf16.mxu0 %v1555_v52  ;;  %v1345_v52 = vld [vmem:[%s1913_s3] ss:$0 sm:$0xff] }
  0x37   : > { %1431 = vmatprep.subr.bf16.mxu1 %v1557_v54 }
  0x39   : > { %1410 = vmatpush3.bf16.msra.mxu0 %v1556_v53 }
  0x3a   : > { %1432 = vmatpush3.bf16.msra.mxu1 %v1558_v55  ;;  %1411 = vmatprep.subr.bf16.mxu0 %v1559_v56 }
  0x3b   : > { %1433 = vmatprep.subr.bf16.mxu1 %v1561_v58 }
  0x3d   : > { %1412 = vmatpush3.bf16.msra.mxu0 %v1560_v57 }
  0x3e   : > { %1434 = vmatpush3.bf16.msra.mxu1 %v1562_v59  ;;  %1413 = vmatprep.subr.bf16.mxu0 %v1563_v60 }
  0x3f   : > { %1435 = vmatprep.subr.bf16.mxu1 %v1565_v62 }
  0x41   : > { %1414 = vmatpush3.bf16.msra.mxu0 %v1564_v61 }
  0x42   : > { %1436 = vmatpush3.bf16.msra.mxu1 %v1566_v63  ;;  %1415 = vmatprep.subr.bf16.mxu0 %v1567_v0 }
  0x43   : > { %1437 = vmatprep.subr.bf16.mxu1 %v1569_v2 }
  0x45   : > { %1416 = vmatpush3.bf16.msra.mxu0 %v1568_v1 }
  0x46   : > { %1454 = vmatprep.subr.bf16.mxu0 %v1610_v6  ;;  %1438 = vmatpush3.bf16.msra.mxu1 %v1573_v5 }
  0x48   : > { %1017 = vmatmul.mubr.bf16.vlgmr.msra.gmra.mrb[4].mxu0 %v1570_v3 }
  0x49   : > { %1470 = vmatprep.mubr.msk.bf16.mxu0 %vm1611_vm0, %v1610_v6  ;;  %1455 = vmatpush3.bf16.msra.mxu0 %v1577_v9 }
  0x4a   : > { %1058 = vmatmul.mubr.bf16.vlgmr.msra.gmra.mrb[4].mxu1 %v1574_v7  ;;  %1456 = vmatprep.subr.bf16.mxu0 %v1610_v6 }
  0x4d   : > { %1457 = vmatpush3.bf16.msra.mxu0 %v1578_v10 }
  0x4e   : > { %1458 = vmatprep.subr.bf16.mxu0 %v1610_v6 }
  0x51   : > { %1459 = vmatpush3.bf16.msra.mxu0 %v1579_v11 }
  0x52   : > { %1460 = vmatprep.subr.bf16.mxu0 %v1610_v6 }
  0x55   : > { %1461 = vmatpush3.bf16.msra.mxu0 %v1580_v12 }
  0x56   : > { %1462 = vmatprep.subr.bf16.mxu0 %v1610_v6 }
  0x59   : > { %1463 = vmatpush3.bf16.msra.mxu0 %v1581_v13 }
  0x5a   : > { %1464 = vmatprep.subr.bf16.mxu0 %v1610_v6 }
  0x5d   : > { %1465 = vmatpush3.bf16.msra.mxu0 %v1582_v14 }
  0x5e   : > { %1466 = vmatprep.subr.bf16.mxu0 %v1610_v6 }
  0x61   : > { %1467 = vmatpush3.bf16.msra.mxu0 %v1583_v15 }
  0x62   : > { %1468 = vmatprep.subr.bf16.mxu0 %v1610_v6 }
  0x65   : > { %1469 = vmatpush3.bf16.msra.mxu0 %v1584_v16 }
  0x68   : > { %1471 = vmatmul.mubr.bf16.vlgmr.msra.gmra.mrb[8].mxu0 %v1585_v17 }
  0xfb   : > { %v1373_v18 = vpop.f32.mrb[0].mxu0 }
  0xfc   : > { %v1395_v19 = vpop.f32.mrb[0].mxu1  ;;  %v1374_v20 = vpop.f32.mrb[1].mxu0 }
  0xfd   : > { %v1375_v21 = vadd.f32 %v1374_v20, %v1373_v18  ;;  %v1396_v22 = vpop.f32.mrb[1].mxu1  ;;  %v1376_v23 = vpop.f32.mrb[2].mxu0 }
  0xfe   : > { %v1397_v24 = vadd.f32 %v1396_v22, %v1395_v19  ;;  %v1398_v25 = vpop.f32.mrb[2].mxu1  ;;  %v1377_v26 = vpop.f32.mrb[3].mxu0 }
  0xff   : > { %v1378_v27 = vadd.f32 %v1377_v26, %v1376_v23  ;;  %v1399_v28 = vpop.f32.mrb[3].mxu1 }
 0x100   : > { %v978_v29 = vadd.f32 %v1397_v24, %v1375_v21  ;;  %v1400_v30 = vadd.f32 %v1399_v28, %v1398_v25 }
 0x102   : > { %v981_v31 = vadd.f32 %v1400_v30, %v1378_v27 }
 0x11b   : > { %v1417_v32 = vpop.f32.mrb[4].mxu0 }
 0x11c   : > { %v1418_v33 = vpop.f32.mrb[5].mxu0 }
 0x11d   : > { %v1419_v34 = vadd.f32 %v1418_v33, %v1417_v32  ;;  %v1420_v35 = vpop.f32.mrb[6].mxu0  ;;  %v1439_v36 = vpop.f32.mrb[4].mxu1 }
 0x11e   : > { %v1421_v37 = vpop.f32.mrb[7].mxu0  ;;  %v1440_v40 = vpop.f32.mrb[5].mxu1 }
 0x11f   : > { %v1019_v38 = vadd.f32 %v1419_v34, %v978_v29  ;;  %v1422_v39 = vadd.f32 %v1421_v37, %v1420_v35  ;;  %v1441_v41 = vadd.f32 %v1440_v40, %v1439_v36  ;;  %v1442_v42 = vpop.f32.mrb[6].mxu1 }
 0x120   : > { %v1443_v44 = vpop.f32.mrb[7].mxu1 }
 0x121   : > { %v1022_v43 = vadd.f32 %v1422_v39, %v981_v31  ;;  %v1444_v45 = vadd.f32 %v1443_v44, %v1442_v42  ;;  %v1060_v46 = vadd.f32 %v1441_v41, %v1019_v38 }
 0x123   : > { %v1063_v47 = vadd.f32 %v1444_v45, %v1022_v43 }
 0x13b   : > { %v1100_v48 = vpop.f32.mrb[8].mxu0 }
 0x13c   : > { %v1101_v50 = vadd.f32 %v1100_v48, %v1060_v46  ;;  %v1472_v51 = vpop.f32.mrb[9].mxu0 }
 0x13d   : > { %v1103_v53 = vpop.f32.mrb[10].mxu0 }
 0x13e   : > { %v1114_v54 = vmul.f32 %v1344_v49, %v1101_v50  ;;  %v1104_v55 = vadd.f32 %v1103_v53, %v1063_v47  ;;  %v1473_v56 = vpop.f32.mrb[11].mxu0 }
 0x140   : > { %v1123_v57 = vadd.f32 %v1345_v52, %v1114_v54  ;;  %v1115_v58 = vmul.f32 %v1344_v49, %v1104_v55 }
 0x142   : > { %v1124_v59 = vadd.f32 %v1345_v52, %v1115_v58  ;;  %v1125_v60 = vmax.f32 %v1123_v57, 0.0 }
 0x144   : > { %v1126_v61 = vmax.f32 %v1124_v59, 0.0 }
 0x146   : > { %v1355_v62 = vpack.c.bf16 %v1126_v61, %v1125_v60 }
 0x148   : > { %1356 = vst [vmem:[%s267_s23] sm:$0xff] %v1355_v62  }
 0x149 PF: > { %s14_s17 = sadd.s32 1, %s1608_s17   ;;  %s1915_s15 = smov %s1604_s16 }
 0x14a   : > { %p11_p5 = scmp.ge.s32.totalorder %s14_s17, 4   ;;  %s1916_s16 = smov %s1918_s18 }
 0x14c   :  { %13 = sbr.rel (!%p11_p5) target bundleno = 2 (0x2), region = 75 }

// kernel: resnet_forward.28
= control target key start
LH: loop header
LB: loop body
LE: loop exit
PB: predicated region body
PF: predicated region fallthrough
CT: control target
= control target key end

     0   :  { %s1729_s18 = smov 0   ;;  %s1731_s19 = smov 0   ;;  %s2005_s0 = inlined_call_operand.vmem [shape: bf16[32,1152], index: 0, kind: input, shape index: {}]   ;;  %s2006_s1 = inlined_call_operand.vmem [shape: bf16[1152,128], index: 1, kind: input, shape index: {}]   ;;  %s2007_s2 = inlined_call_operand.vmem [shape: f32[1,128], index: 2, kind: input, shape index: {}]   ;;  %s2008_s3 = inlined_call_operand.vmem [shape: f32[1,128], index: 3, kind: input, shape index: {}]   ;;  %s2009_s4 = inlined_call_operand.vmem [shape: bf16[32,128], index: 4, kind: input, shape index: {}]   ;;  %s2010_s5 = inlined_call_operand.vmem [shape: bf16[32,128], index: 5, kind: output, shape index: {}]  }
   0x1   :  { %s1733_s20 = smov 0  }
   0x2 LB: > { %s27_s21 = sadd.s32 1, %s1691_s19  ;;  %p1339_p0 = scmp.ge.s32.totalorder %s1695_s20, 1  ;;  %s1695_s20 = sphi %s1733_s20, %s15_s20   ;;  %s1691_s19 = sphi %s1731_s19, %s2012_s19   ;;  %s1687_s18 = sphi %s1729_s18, %s2011_s18  }
   0x3   : > { %p29_p1 = scmp.ge.s32.totalorder %s27_s21, 2  ;;  %p244_p2 = scmp.lt.s32.totalorder %s1695_s20, 3 }
   0x5   : > { %s2014_s21 = smov (%p29_p1, %s27_s21), 0  ;;  %p245_p3 = pnand %p1339_p0, %p244_p2 }
   0x6   : > { %v1588_v0 = vld [vmem:[%s2006_s1 + $0x40] sm:$0xff] (!%p245_p3)   ;;  %v1592_v4 = vld [vmem:[%s2006_s1 + $0x48] sm:$0xff] (!%p245_p3)   ;;  %v1596_v8 = vld [vmem:[%s2006_s1 + $0x50] sm:$0xff] (!%p245_p3)   ;;  %s1340_s6 = sshll.u32 (!%p245_p3), %s1687_s18, 1  ;;  %vm1698_vm0 = vmmov (!%p245_p3), 0  }
   0x7   : > { %248 = sbr.rel (%p245_p3) target bundleno = 331 (0x14b), region = 40  ;;  %v1589_v1 = vld [vmem:[%s2006_s1 + $0xc0] sm:$0xff] (!%p245_p3)   ;;  %1444 = vmatprep.subr.bf16.mxu0 (!%p245_p3), %v1588_v0  ;;  %v1593_v5 = vld [vmem:[%s2006_s1 + $0xc8] sm:$0xff] (!%p245_p3)   ;;  %v1597_v9 = vld [vmem:[%s2006_s1 + $0xd0] sm:$0xff] (!%p245_p3)   ;;  %p295_p4 = scmp.lt.s32.totalorder (!%p245_p3), %s1340_s6, 3 }
   0x8   : > { %v1590_v2 = vld [vmem:[%s2006_s1] sm:$0xff] (!%p245_p3)   ;;  %1466 = vmatprep.subr.bf16.mxu1 (!%p245_p3), %v1589_v1  ;;  %v1594_v6 = vld [vmem:[%s2006_s1 + $0x8] sm:$0xff] (!%p245_p3)   ;;  %v1598_v10 = vld [vmem:[%s2006_s1 + $0x10] sm:$0xff] (!%p245_p3)  }
   0x9   : > { %v1591_v3 = vld [vmem:[%s2006_s1 + $0x80] sm:$0xff] (!%p245_p3)   ;;  %1445 = vmatpush3.bf16.msra.mxu0 (!%p245_p3), %v1590_v2  ;;  %v1595_v7 = vld [vmem:[%s2006_s1 + $0x88] sm:$0xff] (!%p245_p3)   ;;  %v1599_v11 = vld [vmem:[%s2006_s1 + $0x90] sm:$0xff] (!%p245_p3)  }
   0xa   : > { %1467 = vmatpush3.bf16.msra.mxu1 (!%p245_p3), %v1591_v3  ;;  %1446 = vmatprep.subr.bf16.mxu0 (!%p245_p3), %v1592_v4  ;;  %v1600_v12 = vld [vmem:[%s2006_s1 + $0x58] sm:$0xff] (!%p245_p3)   ;;  %v1604_v16 = vld [vmem:[%s2006_s1 + $0x60] sm:$0xff] (!%p245_p3)   ;;  %v1608_v20 = vld [vmem:[%s2006_s1 + $0x68] sm:$0xff] (!%p245_p3)  }
   0xb   : > { %1468 = vmatprep.subr.bf16.mxu1 (!%p245_p3), %v1593_v5  ;;  %v1601_v13 = vld [vmem:[%s2006_s1 + $0xd8] sm:$0xff] (!%p245_p3)   ;;  %v1605_v17 = vld [vmem:[%s2006_s1 + $0xe0] sm:$0xff] (!%p245_p3)   ;;  %v1609_v21 = vld [vmem:[%s2006_s1 + $0xe8] sm:$0xff] (!%p245_p3)  }
   0xc   : > { %v1602_v14 = vld [vmem:[%s2006_s1 + $0x18] sm:$0xff] (!%p245_p3)   ;;  %v1606_v18 = vld [vmem:[%s2006_s1 + $0x20] sm:$0xff] (!%p245_p3)   ;;  %v1610_v22 = vld [vmem:[%s2006_s1 + $0x28] sm:$0xff] (!%p245_p3)  }
   0xd   : > { %1447 = vmatpush3.bf16.msra.mxu0 (!%p245_p3), %v1594_v6  ;;  %v1603_v15 = vld [vmem:[%s2006_s1 + $0x98] sm:$0xff] (!%p245_p3)   ;;  %v1607_v19 = vld [vmem:[%s2006_s1 + $0xa0] sm:$0xff] (!%p245_p3)   ;;  %v1611_v23 = vld [vmem:[%s2006_s1 + $0xa8] sm:$0xff] (!%p245_p3)   ;;  %v1697_v6 = vmov (!%p245_p3), 0.0  }
   0xe   : > { %1469 = vmatpush3.bf16.msra.mxu1 %v1595_v7  ;;  %1448 = vmatprep.subr.bf16.mxu0 %v1596_v8  ;;  %s2016_s6 = smov (!%p295_p4, %s1340_s6), 3  ;;  %v1612_v24 = vld [vmem:[%s2006_s1 + $0x70] sm:$0xff]   ;;  %v1616_v28 = vld [vmem:[%s2006_s1 + $0x78] sm:$0xff]   ;;  %v1626_v36 = vld [vmem:[%s2006_s1 + $0x140] sm:$0xff]  }
   0xf   : > { %1470 = vmatprep.subr.bf16.mxu1 %v1597_v9  ;;  %v1613_v25 = vld [vmem:[%s2006_s1 + $0xf0] sm:$0xff]   ;;  %s1561_s8 = smul.u32 36, %s2016_s6  ;;  %v1617_v29 = vld [vmem:[%s2006_s1 + $0xf8] sm:$0xff]   ;;  %v1627_v37 = vld [vmem:[%s2006_s1 + $0x100] sm:$0xff]  }
  0x10   : > { %v1614_v26 = vld [vmem:[%s2006_s1 + $0x30] sm:$0xff]   ;;  %v1618_v30 = vld [vmem:[%s2006_s1 + $0x38] sm:$0xff]   ;;  %v1628_v38 = vld [vmem:[%s2006_s1 + $0x1c0] sm:$0xff]  }
  0x11   : > { %1449 = vmatpush3.bf16.msra.mxu0 %v1598_v10  ;;  %v1615_v27 = vld [vmem:[%s2006_s1 + $0xb0] sm:$0xff]   ;;  %s1846_s22 = scalar_lea.vmem %s2005_s0, %s1561_s8  ;;  %v1619_v31 = vld [vmem:[%s2006_s1 + $0xb8] sm:$0xff]   ;;  %v1629_v39 = vld [vmem:[%s2006_s1 + $0x180] sm:$0xff]  }
  0x12   : > { %1471 = vmatpush3.bf16.msra.mxu1 %v1599_v11  ;;  %1450 = vmatprep.subr.bf16.mxu0 %v1600_v12  ;;  %v1620_v32 = vld [vmem:[%s1846_s22] ss:$36 sps:$4 sm:$0xff]   ;;  %v1623_v34 = vld [vmem:[%s1846_s22 + $0x8] ss:$36 sps:$4 sm:$0xff]   ;;  %v1634_v44 = vld [vmem:[%s2006_s1 + $0x150] sm:$0xff]  }
  0x13   : > { %1472 = vmatprep.subr.bf16.mxu1 %v1601_v13  ;;  %v1622_v33 = vld [vmem:[%s1846_s22 + $0x4] ss:$36 sps:$4 sm:$0xff]   ;;  %v1625_v35 = vld [vmem:[%s1846_s22 + $0xc] ss:$36 sps:$4 sm:$0xff]   ;;  %v1638_v48 = vld [vmem:[%s2006_s1 + $0x158] sm:$0xff]  }
  0x14   : > { %994 = vmatprep.mubr.bf16.mxu0 %v1622_v33  ;;  %1035 = vmatprep.mubr.bf16.mxu1 %v1625_v35  ;;  %v1630_v40 = vld [vmem:[%s2006_s1 + $0x148] sm:$0xff]   ;;  %v1635_v45 = vld [vmem:[%s2006_s1 + $0x110] sm:$0xff]   ;;  %v1639_v49 = vld [vmem:[%s2006_s1 + $0x118] sm:$0xff]  }
  0x15   : > { %1451 = vmatpush3.bf16.msra.mxu0 %v1602_v14  ;;  %v1631_v41 = vld [vmem:[%s2006_s1 + $0x108] sm:$0xff]   ;;  %v1636_v46 = vld [vmem:[%s2006_s1 + $0x1d0] sm:$0xff]   ;;  %v1640_v50 = vld [vmem:[%s2006_s1 + $0x1d8] sm:$0xff]  }
  0x16   : > { %1473 = vmatpush3.bf16.msra.mxu1 %v1603_v15  ;;  %1452 = vmatprep.subr.bf16.mxu0 %v1604_v16  ;;  %v1632_v42 = vld [vmem:[%s2006_s1 + $0x1c8] sm:$0xff]   ;;  %v1637_v47 = vld [vmem:[%s2006_s1 + $0x190] sm:$0xff]   ;;  %v1641_v51 = vld [vmem:[%s2006_s1 + $0x198] sm:$0xff]  }
  0x17   : > { %1474 = vmatprep.subr.bf16.mxu1 %v1605_v17  ;;  %v1633_v43 = vld [vmem:[%s2006_s1 + $0x188] sm:$0xff]   ;;  %v1642_v52 = vld [vmem:[%s2006_s1 + $0x160] sm:$0xff]   ;;  %v1650_v60 = vld [vmem:[%s2006_s1 + $0x170] sm:$0xff]  }
  0x18   : > { %v1643_v53 = vld [vmem:[%s2006_s1 + $0x120] sm:$0xff]   ;;  %v1646_v56 = vld [vmem:[%s2006_s1 + $0x168] sm:$0xff]   ;;  %v1651_v61 = vld [vmem:[%s2006_s1 + $0x130] sm:$0xff]  }
  0x19   : > { %1453 = vmatpush3.bf16.msra.mxu0 %v1606_v18  ;;  %v1644_v54 = vld [vmem:[%s2006_s1 + $0x1e0] sm:$0xff]   ;;  %v1647_v57 = vld [vmem:[%s2006_s1 + $0x128] sm:$0xff]   ;;  %v1652_v62 = vld [vmem:[%s2006_s1 + $0x1f0] sm:$0xff]  }
  0x1a   : > { %1475 = vmatpush3.bf16.msra.mxu1 %v1607_v19  ;;  %1454 = vmatprep.subr.bf16.mxu0 %v1608_v20  ;;  %v1645_v55 = vld [vmem:[%s2006_s1 + $0x1a0] sm:$0xff]   ;;  %v1648_v58 = vld [vmem:[%s2006_s1 + $0x1e8] sm:$0xff]   ;;  %v1653_v63 = vld [vmem:[%s2006_s1 + $0x1b0] sm:$0xff]  }
  0x1b   : > { %1476 = vmatprep.subr.bf16.mxu1 %v1609_v21  ;;  %v1649_v59 = vld [vmem:[%s2006_s1 + $0x1a8] sm:$0xff]   ;;  %v1654_v0 = vld [vmem:[%s2006_s1 + $0x178] sm:$0xff]   ;;  %v1657_v3 = vld [vmem:[%s1846_s22 + $0x10] ss:$36 sps:$4 sm:$0xff]  }
  0x1c   : > { %v1655_v1 = vld [vmem:[%s2006_s1 + $0x138] sm:$0xff]   ;;  %v1664_v9 = vld [vmem:[%s2006_s1 + $0x200] sm:$0xff]   ;;  %v1665_v10 = vld [vmem:[%s2006_s1 + $0x208] sm:$0xff]  }
  0x1d   : > { %1455 = vmatpush3.bf16.msra.mxu0 %v1610_v22  ;;  %v1656_v2 = vld [vmem:[%s2006_s1 + $0x1f8] sm:$0xff]   ;;  %v1666_v11 = vld [vmem:[%s2006_s1 + $0x210] sm:$0xff]   ;;  %v1668_v13 = vld [vmem:[%s2006_s1 + $0x220] sm:$0xff]  }
  0x1e   : > { %1477 = vmatpush3.bf16.msra.mxu1 %v1611_v23  ;;  %1456 = vmatprep.subr.bf16.mxu0 %v1612_v24  ;;  %v1659_v4 = vld [vmem:[%s1846_s22 + $0x14] ss:$36 sps:$4 sm:$0xff]   ;;  %v1663_v8 = vld [vmem:[%s1846_s22 + $0x1c] ss:$36 sps:$4 sm:$0xff]   ;;  %v1669_v14 = vld [vmem:[%s2006_s1 + $0x228] sm:$0xff]  }
  0x1f   : > { %1478 = vmatprep.subr.bf16.mxu1 %v1613_v25  ;;  %v1660_v5 = vld [vmem:[%s2006_s1 + $0x1b8] sm:$0xff]   ;;  %v1670_v15 = vld [vmem:[%s2006_s1 + $0x230] sm:$0xff]   ;;  %v1672_v17 = vld [vmem:[%s1846_s22 + $0x20] ss:$36 sps:$4 sm:$0xff]  }
  0x20   : > { %v1661_v7 = vld [vmem:[%s1846_s22 + $0x18] ss:$36 sps:$4 sm:$0xff]   ;;  %s1343_s22 = sshll.u32 %s2016_s6, 2 }
  0x21   : > { %1457 = vmatpush3.bf16.msra.mxu0 %v1614_v26  ;;  %v1667_v12 = vld [vmem:[%s2006_s1 + $0x218] sm:$0xff]   ;;  %s318_s29 = scalar_lea.vmem %s2009_s4, %s1343_s22  ;;  %s327_s11 = scalar_lea.vmem %s2010_s5, %s1343_s22 }
  0x22   : > { %1479 = vmatpush3.bf16.msra.mxu1 %v1615_v27  ;;  %1458 = vmatprep.subr.bf16.mxu0 %v1616_v28  ;;  %v1671_v16 = vld [vmem:[%s2006_s1 + $0x238] sm:$0xff]  }
  0x23   : > { %1480 = vmatprep.subr.bf16.mxu1 %v1617_v29 }
  0x25   : > { %1459 = vmatpush3.bf16.msra.mxu0 %v1618_v30 }
  0x26   : > { %1481 = vmatpush3.bf16.msra.mxu1 %v1619_v31  ;;  %1488 = vmatprep.subr.bf16.mxu0 %v1626_v36 }
  0x27   : > { %1510 = vmatprep.subr.bf16.mxu1 %v1628_v38 }
  0x28   : > { %995 = vmatmul.mubr.bf16.vlgmr.msra.gmra.mrb[0].mxu0 %v1620_v32 }
  0x29   : > { %1036 = vmatmul.mubr.bf16.vlgmr.msra.gmra.mrb[0].mxu1 %v1623_v34  ;;  %1489 = vmatpush3.bf16.msra.mxu0 %v1627_v37 }
  0x2a   : > { %1511 = vmatpush3.bf16.msra.mxu1 %v1629_v39  ;;  %1490 = vmatprep.subr.bf16.mxu0 %v1630_v40 }
  0x2b   : > { %1512 = vmatprep.subr.bf16.mxu1 %v1632_v42  ;;  %1076 = vmatprep.mubr.bf16.mxu0 %v1659_v4 }
  0x2c   : > { %1117 = vmatprep.mubr.bf16.mxu1 %v1663_v8 }
  0x2d   : > { %1491 = vmatpush3.bf16.msra.mxu0 %v1631_v41 }
  0x2e   : > { %1513 = vmatpush3.bf16.msra.mxu1 %v1633_v43  ;;  %1492 = vmatprep.subr.bf16.mxu0 %v1634_v44 }
  0x2f   : > { %1514 = vmatprep.subr.bf16.mxu1 %v1636_v46 }
  0x31   : > { %1493 = vmatpush3.bf16.msra.mxu0 %v1635_v45 }
  0x32   : > { %1515 = vmatpush3.bf16.msra.mxu1 %v1637_v47  ;;  %1494 = vmatprep.subr.bf16.mxu0 %v1638_v48 }
  0x33   : > { %1516 = vmatprep.subr.bf16.mxu1 %v1640_v50  ;;  %v1436_v50 = vld [vmem:[%s318_s29] sm:$0xff]  }
  0x35   : > { %1495 = vmatpush3.bf16.msra.mxu0 %v1639_v49  ;;  %v1427_v49 = vld [vmem:[%s2007_s2] ss:$0 sm:$0xff] }
  0x36   : > { %1517 = vmatpush3.bf16.msra.mxu1 %v1641_v51  ;;  %1496 = vmatprep.subr.bf16.mxu0 %v1642_v52 }
  0x37   : > { %1518 = vmatprep.subr.bf16.mxu1 %v1644_v54 }
  0x39   : > { %1497 = vmatpush3.bf16.msra.mxu0 %v1643_v53  ;;  %v1428_v53 = vld [vmem:[%s2008_s3] ss:$0 sm:$0xff] }
  0x3a   : > { %1519 = vmatpush3.bf16.msra.mxu1 %v1645_v55  ;;  %1498 = vmatprep.subr.bf16.mxu0 %v1646_v56  ;;  %v1437_v56 = vunpack.c.l.bf16 %v1436_v50 }
  0x3b   : > { %1520 = vmatprep.subr.bf16.mxu1 %v1648_v58 }
  0x3d   : > { %1499 = vmatpush3.bf16.msra.mxu0 %v1647_v57 }
  0x3e   : > { %1521 = vmatpush3.bf16.msra.mxu1 %v1649_v59  ;;  %1500 = vmatprep.subr.bf16.mxu0 %v1650_v60 }
  0x3f   : > { %1522 = vmatprep.subr.bf16.mxu1 %v1652_v62 }
  0x41   : > { %1501 = vmatpush3.bf16.msra.mxu0 %v1651_v61  ;;  %v1438_v61 = vunpack.c.h.bf16 %v1436_v50 }
  0x42   : > { %1523 = vmatpush3.bf16.msra.mxu1 %v1653_v63  ;;  %1502 = vmatprep.subr.bf16.mxu0 %v1654_v0 }
  0x43   : > { %1524 = vmatprep.subr.bf16.mxu1 %v1656_v2 }
  0x45   : > { %1503 = vmatpush3.bf16.msra.mxu0 %v1655_v1 }
  0x46   : > { %1541 = vmatprep.subr.bf16.mxu0 %v1697_v6  ;;  %1525 = vmatpush3.bf16.msra.mxu1 %v1660_v5 }
  0x48   : > { %1077 = vmatmul.mubr.bf16.vlgmr.msra.gmra.mrb[4].mxu0 %v1657_v3 }
  0x49   : > { %1557 = vmatprep.mubr.msk.bf16.mxu0 %vm1698_vm0, %v1697_v6  ;;  %1542 = vmatpush3.bf16.msra.mxu0 %v1664_v9 }
  0x4a   : > { %1118 = vmatmul.mubr.bf16.vlgmr.msra.gmra.mrb[4].mxu1 %v1661_v7  ;;  %1543 = vmatprep.subr.bf16.mxu0 %v1697_v6 }
  0x4d   : > { %1544 = vmatpush3.bf16.msra.mxu0 %v1665_v10 }
  0x4e   : > { %1545 = vmatprep.subr.bf16.mxu0 %v1697_v6 }
  0x51   : > { %1546 = vmatpush3.bf16.msra.mxu0 %v1666_v11 }
  0x52   : > { %1547 = vmatprep.subr.bf16.mxu0 %v1697_v6 }
  0x55   : > { %1548 = vmatpush3.bf16.msra.mxu0 %v1667_v12 }
  0x56   : > { %1549 = vmatprep.subr.bf16.mxu0 %v1697_v6 }
  0x59   : > { %1550 = vmatpush3.bf16.msra.mxu0 %v1668_v13 }
  0x5a   : > { %1551 = vmatprep.subr.bf16.mxu0 %v1697_v6 }
  0x5d   : > { %1552 = vmatpush3.bf16.msra.mxu0 %v1669_v14 }
  0x5e   : > { %1553 = vmatprep.subr.bf16.mxu0 %v1697_v6 }
  0x61   : > { %1554 = vmatpush3.bf16.msra.mxu0 %v1670_v15 }
  0x62   : > { %1555 = vmatprep.subr.bf16.mxu0 %v1697_v6 }
  0x65   : > { %1556 = vmatpush3.bf16.msra.mxu0 %v1671_v16 }
  0x68   : > { %1558 = vmatmul.mubr.bf16.vlgmr.msra.gmra.mrb[8].mxu0 %v1672_v17 }
  0xfb   : > { %v1460_v18 = vpop.f32.mrb[0].mxu0 }
  0xfc   : > { %v1482_v19 = vpop.f32.mrb[0].mxu1  ;;  %v1461_v20 = vpop.f32.mrb[1].mxu0 }
  0xfd   : > { %v1462_v21 = vadd.f32 %v1461_v20, %v1460_v18  ;;  %v1483_v22 = vpop.f32.mrb[1].mxu1  ;;  %v1463_v23 = vpop.f32.mrb[2].mxu0 }
  0xfe   : > { %v1484_v24 = vadd.f32 %v1483_v22, %v1482_v19  ;;  %v1485_v25 = vpop.f32.mrb[2].mxu1  ;;  %v1464_v26 = vpop.f32.mrb[3].mxu0 }
  0xff   : > { %v1465_v27 = vadd.f32 %v1464_v26, %v1463_v23  ;;  %v1486_v28 = vpop.f32.mrb[3].mxu1 }
 0x100   : > { %v1038_v29 = vadd.f32 %v1484_v24, %v1462_v21  ;;  %v1487_v30 = vadd.f32 %v1486_v28, %v1485_v25 }
 0x102   : > { %v1041_v31 = vadd.f32 %v1487_v30, %v1465_v27 }
 0x11b   : > { %v1504_v32 = vpop.f32.mrb[4].mxu0 }
 0x11c   : > { %v1505_v33 = vpop.f32.mrb[5].mxu0 }
 0x11d   : > { %v1506_v34 = vadd.f32 %v1505_v33, %v1504_v32  ;;  %v1507_v35 = vpop.f32.mrb[6].mxu0  ;;  %v1526_v36 = vpop.f32.mrb[4].mxu1 }
 0x11e   : > { %v1508_v37 = vpop.f32.mrb[7].mxu0  ;;  %v1527_v40 = vpop.f32.mrb[5].mxu1 }
 0x11f   : > { %v1079_v38 = vadd.f32 %v1506_v34, %v1038_v29  ;;  %v1509_v39 = vadd.f32 %v1508_v37, %v1507_v35  ;;  %v1528_v41 = vadd.f32 %v1527_v40, %v1526_v36  ;;  %v1529_v42 = vpop.f32.mrb[6].mxu1 }
 0x120   : > { %v1530_v44 = vpop.f32.mrb[7].mxu1 }
 0x121   : > { %v1082_v43 = vadd.f32 %v1509_v39, %v1041_v31  ;;  %v1531_v45 = vadd.f32 %v1530_v44, %v1529_v42  ;;  %v1120_v46 = vadd.f32 %v1528_v41, %v1079_v38 }
 0x123   : > { %v1123_v47 = vadd.f32 %v1531_v45, %v1082_v43 }
 0x13b   : > { %v1160_v48 = vpop.f32.mrb[8].mxu0 }
 0x13c   : > { %v1161_v51 = vadd.f32 %v1160_v48, %v1120_v46  ;;  %v1559_v52 = vpop.f32.mrb[9].mxu0 }
 0x13d   : > { %v1163_v54 = vpop.f32.mrb[10].mxu0 }
 0x13e   : > { %v1174_v55 = vmul.f32 %v1427_v49, %v1161_v51  ;;  %v1164_v57 = vadd.f32 %v1163_v54, %v1123_v47  ;;  %v1560_v58 = vpop.f32.mrb[11].mxu0 }
 0x140   : > { %v1183_v59 = vadd.f32 %v1428_v53, %v1174_v55  ;;  %v1175_v60 = vmul.f32 %v1427_v49, %v1164_v57 }
 0x142   : > { %v1189_v62 = vadd.f32 %v1437_v56, %v1183_v59  ;;  %v1184_v63 = vadd.f32 %v1428_v53, %v1175_v60 }
 0x144   : > { %v1190_v0 = vadd.f32 %v1438_v61, %v1184_v63  ;;  %v1191_v1 = vmax.f32 %v1189_v62, 0.0 }
 0x146   : > { %v1192_v2 = vmax.f32 %v1190_v0, 0.0 }
 0x148   : > { %v1442_v3 = vpack.c.bf16 %v1192_v2, %v1191_v1 }
 0x14a   : > { %1443 = vst [vmem:[%s327_s11] sm:$0xff] %v1442_v3  }
 0x14b PF: > { %s15_s20 = sadd.s32 1, %s1695_s20   ;;  %s2011_s18 = smov %s1691_s19 }
 0x14c   : > { %p12_p5 = scmp.ge.s32.totalorder %s15_s20, 4   ;;  %s2012_s19 = smov %s2014_s21 }
 0x14e   :  { %14 = sbr.rel (!%p12_p5) target bundleno = 2 (0x2), region = 82 }

// kernel: resnet_forward.32
= control target key start
LH: loop header
LB: loop body
LE: loop exit
PB: predicated region body
PF: predicated region fallthrough
CT: control target
= control target key end

     0   :  { %v194_v0 = vmov 0.0   ;;  %vm195_vm0 = vmmov 0   ;;  %s257_s1 = inlined_call_operand.vmem [shape: bf16[128,128], index: 1, kind: input, shape index: {}]   ;;  %s258_s0 = inlined_call_operand.vmem [shape: bf16[8,128], index: 0, kind: input, shape index: {}]   ;;  %s259_s2 = inlined_call_operand.vmem [shape: f32[1,128], index: 2, kind: input, shape index: {}]   ;;  %s260_s3 = inlined_call_operand.vmem [shape: f32[1,128], index: 3, kind: input, shape index: {}]   ;;  %s261_s4 = inlined_call_operand.vmem [shape: bf16[8,128], index: 4, kind: output, shape index: {}]  }
   0x1   :  { %164 = vmatprep.subr.bf16.mxu0 %v194_v0  ;;  %v186_v1 = vld [vmem:[%s257_s1] sm:$0xff]   ;;  %180 = vmatprep.mubr.msk.bf16.mxu0 %vm195_vm0, %v194_v0  ;;  %v187_v2 = vld [vmem:[%s257_s1 + $0x8] sm:$0xff]   ;;  %v188_v3 = vld [vmem:[%s257_s1 + $0x10] sm:$0xff]  }
   0x2   :  { %165 = vmatpush3.bf16.msra.mxu0 %v186_v1  ;;  %v189_v4 = vld [vmem:[%s257_s1 + $0x18] sm:$0xff]   ;;  %v190_v5 = vld [vmem:[%s257_s1 + $0x20] sm:$0xff]   ;;  %v191_v6 = vld [vmem:[%s257_s1 + $0x28] sm:$0xff]  }
   0x3   :  { %166 = vmatprep.subr.bf16.mxu0 %v194_v0  ;;  %v192_v7 = vld [vmem:[%s257_s1 + $0x30] sm:$0xff]   ;;  %v193_v8 = vld [vmem:[%s257_s1 + $0x38] sm:$0xff]   ;;  %v18_v9 = vld [vmem:[%s258_s0] sm:$0xf] }
   0x4   :  { %v153_v10 = vld [vmem:[%s259_s2] ss:$0 sm:$0xff] }
   0x5   :  { %v154_v12 = vld [vmem:[%s260_s3] ss:$0 sm:$0xff] }
   0x6   :  { %167 = vmatpush3.bf16.msra.mxu0 %v187_v2 }
   0x7   :  { %168 = vmatprep.subr.bf16.mxu0 %v194_v0 }
   0xa   :  { %169 = vmatpush3.bf16.msra.mxu0 %v188_v3 }
   0xb   :  { %170 = vmatprep.subr.bf16.mxu0 %v194_v0 }
   0xe   :  { %171 = vmatpush3.bf16.msra.mxu0 %v189_v4 }
   0xf   :  { %172 = vmatprep.subr.bf16.mxu0 %v194_v0 }
  0x12   :  { %173 = vmatpush3.bf16.msra.mxu0 %v190_v5 }
  0x13   :  { %174 = vmatprep.subr.bf16.mxu0 %v194_v0 }
  0x16   :  { %175 = vmatpush3.bf16.msra.mxu0 %v191_v6 }
  0x17   :  { %176 = vmatprep.subr.bf16.mxu0 %v194_v0 }
  0x1a   :  { %177 = vmatpush3.bf16.msra.mxu0 %v192_v7 }
  0x1b   :  { %178 = vmatprep.subr.bf16.mxu0 %v194_v0 }
  0x1e   :  { %179 = vmatpush3.bf16.msra.mxu0 %v193_v8 }
  0x21   :  { %181 = vmatmul.mubr.bf16.vlgmr.msra.gmra.mrb[0].mxu0 %v18_v9 }
  0xf4   :  { %v117_v11 = vpop.f32.mrb[0].mxu0 }
  0xf5   :  { %v130_v13 = vmul.f32 %v153_v10, %v117_v11  ;;  %v182_v14 = vpop.f32.mrb[1].mxu0 }
  0xf6   :  { %v120_v15 = vpop.f32.mrb[2].mxu0 }
  0xf7   :  { %v138_v16 = vadd.f32 %v154_v12, %v130_v13  ;;  %v183_v17 = vpop.f32.mrb[3].mxu0 }
  0xf9   :  { %v139_v18 = vpack.c.bf16 %v138_v16, %v138_v16 }
  0xfb   :  { %140 = vst [vmem:[%s261_s4] sm:$0xf] %v139_v18 }

// kernel: resnet_forward.31
= control target key start
LH: loop header
LB: loop body
LE: loop exit
PB: predicated region body
PF: predicated region fallthrough
CT: control target
= control target key end

     0   :  { %vm1138_vm0 = vmmov 0   ;;  %s1404_s1 = inlined_call_operand.vmem [shape: bf16[1152,128], index: 1, kind: input, shape index: {}]   ;;  %s1405_s0 = inlined_call_operand.vmem [shape: bf16[8,1152], index: 0, kind: input, shape index: {}]   ;;  %s1406_s2 = inlined_call_operand.vmem [shape: f32[1,128], index: 2, kind: input, shape index: {}]   ;;  %s1407_s3 = inlined_call_operand.vmem [shape: f32[1,128], index: 3, kind: input, shape index: {}]   ;;  %s1408_s4 = inlined_call_operand.vmem [shape: bf16[8,128], index: 4, kind: output, shape index: {}]  }
   0x1   :  { %v1056_v0 = vld [vmem:[%s1404_s1 + $0x40] sm:$0xff]   ;;  %v1060_v4 = vld [vmem:[%s1404_s1 + $0x48] sm:$0xff]   ;;  %v1064_v8 = vld [vmem:[%s1404_s1 + $0x50] sm:$0xff]  }
   0x2   :  { %v1057_v1 = vld [vmem:[%s1404_s1 + $0xc0] sm:$0xff]   ;;  %937 = vmatprep.subr.bf16.mxu0 %v1056_v0  ;;  %v1061_v5 = vld [vmem:[%s1404_s1 + $0xc8] sm:$0xff]   ;;  %v1065_v9 = vld [vmem:[%s1404_s1 + $0xd0] sm:$0xff]  }
   0x3   :  { %v1058_v2 = vld [vmem:[%s1404_s1] sm:$0xff]   ;;  %959 = vmatprep.subr.bf16.mxu1 %v1057_v1  ;;  %v1062_v6 = vld [vmem:[%s1404_s1 + $0x8] sm:$0xff]   ;;  %v1066_v10 = vld [vmem:[%s1404_s1 + $0x10] sm:$0xff]  }
   0x4   :  { %v1059_v3 = vld [vmem:[%s1404_s1 + $0x80] sm:$0xff]   ;;  %938 = vmatpush3.bf16.msra.mxu0 %v1058_v2  ;;  %v1063_v7 = vld [vmem:[%s1404_s1 + $0x88] sm:$0xff]   ;;  %v1067_v11 = vld [vmem:[%s1404_s1 + $0x90] sm:$0xff]  }
   0x5   :  { %960 = vmatpush3.bf16.msra.mxu1 %v1059_v3  ;;  %939 = vmatprep.subr.bf16.mxu0 %v1060_v4  ;;  %v1068_v12 = vld [vmem:[%s1404_s1 + $0x58] sm:$0xff]   ;;  %v1072_v16 = vld [vmem:[%s1404_s1 + $0x60] sm:$0xff]   ;;  %v1076_v20 = vld [vmem:[%s1404_s1 + $0x68] sm:$0xff]  }
   0x6   :  { %961 = vmatprep.subr.bf16.mxu1 %v1061_v5  ;;  %v1069_v13 = vld [vmem:[%s1404_s1 + $0xd8] sm:$0xff]   ;;  %v1073_v17 = vld [vmem:[%s1404_s1 + $0xe0] sm:$0xff]   ;;  %v1077_v21 = vld [vmem:[%s1404_s1 + $0xe8] sm:$0xff]  }
   0x7   :  { %v1070_v14 = vld [vmem:[%s1404_s1 + $0x18] sm:$0xff]   ;;  %v1074_v18 = vld [vmem:[%s1404_s1 + $0x20] sm:$0xff]   ;;  %v1078_v22 = vld [vmem:[%s1404_s1 + $0x28] sm:$0xff]  }
   0x8   :  { %940 = vmatpush3.bf16.msra.mxu0 %v1062_v6  ;;  %v1071_v15 = vld [vmem:[%s1404_s1 + $0x98] sm:$0xff]   ;;  %v1075_v19 = vld [vmem:[%s1404_s1 + $0xa0] sm:$0xff]   ;;  %v1079_v23 = vld [vmem:[%s1404_s1 + $0xa8] sm:$0xff]  }
   0x9   :  { %962 = vmatpush3.bf16.msra.mxu1 %v1063_v7  ;;  %941 = vmatprep.subr.bf16.mxu0 %v1064_v8  ;;  %v1080_v24 = vld [vmem:[%s1404_s1 + $0x70] sm:$0xff]   ;;  %v1084_v28 = vld [vmem:[%s1404_s1 + $0x78] sm:$0xff]   ;;  %v18_v32 = vld [vmem:[%s1405_s0] sm:$0xff] }
   0xa   :  { %963 = vmatprep.subr.bf16.mxu1 %v1065_v9  ;;  %v1081_v25 = vld [vmem:[%s1404_s1 + $0xf0] sm:$0xff]   ;;  %v1085_v29 = vld [vmem:[%s1404_s1 + $0xf8] sm:$0xff]   ;;  %v19_v33 = vld [vmem:[%s1405_s0 + $0x8] sm:$0xff]  ;;  %v854_v34 = vcombine.low %v18_v32, %v18_v32  ;;  %v855_v35 = vcombine.high %v18_v32, %v18_v32 }
   0xb   :  { %v1082_v26 = vld [vmem:[%s1404_s1 + $0x30] sm:$0xff]   ;;  %v1086_v30 = vld [vmem:[%s1404_s1 + $0x38] sm:$0xff]   ;;  %v856_v36 = vcombine.low %v19_v33, %v19_v33  ;;  %v857_v37 = vcombine.high %v19_v33, %v19_v33  ;;  %v1092_v38 = vld [vmem:[%s1404_s1 + $0x140] sm:$0xff]  }
   0xc   :  { %942 = vmatpush3.bf16.msra.mxu0 %v1066_v10  ;;  %v1083_v27 = vld [vmem:[%s1404_s1 + $0xb0] sm:$0xff]   ;;  %v1087_v31 = vld [vmem:[%s1404_s1 + $0xb8] sm:$0xff]   ;;  %v1093_v39 = vld [vmem:[%s1404_s1 + $0x100] sm:$0xff]   ;;  %663 = vmatprep.mubr.bf16.mxu0 %v855_v35 }
   0xd   :  { %964 = vmatpush3.bf16.msra.mxu1 %v1067_v11  ;;  %943 = vmatprep.subr.bf16.mxu0 %v1068_v12  ;;  %v1094_v40 = vld [vmem:[%s1404_s1 + $0x1c0] sm:$0xff]   ;;  %v1096_v42 = vld [vmem:[%s1404_s1 + $0x148] sm:$0xff]   ;;  %v1100_v46 = vld [vmem:[%s1404_s1 + $0x150] sm:$0xff]  }
   0xe   :  { %965 = vmatprep.subr.bf16.mxu1 %v1069_v13  ;;  %703 = vmatprep.mubr.bf16.mxu1 %v857_v37  ;;  %v1095_v41 = vld [vmem:[%s1404_s1 + $0x180] sm:$0xff]   ;;  %v1097_v43 = vld [vmem:[%s1404_s1 + $0x108] sm:$0xff]   ;;  %v1101_v47 = vld [vmem:[%s1404_s1 + $0x110] sm:$0xff]   ;;  %v1137_v13 = vmov 0.0  }
   0xf   :  { %v1098_v44 = vld [vmem:[%s1404_s1 + $0x1c8] sm:$0xff]   ;;  %v1102_v48 = vld [vmem:[%s1404_s1 + $0x1d0] sm:$0xff]   ;;  %v1104_v50 = vld [vmem:[%s1404_s1 + $0x158] sm:$0xff]  }
  0x10   :  { %944 = vmatpush3.bf16.msra.mxu0 %v1070_v14  ;;  %v1099_v45 = vld [vmem:[%s1404_s1 + $0x188] sm:$0xff]   ;;  %v1103_v49 = vld [vmem:[%s1404_s1 + $0x190] sm:$0xff]   ;;  %v1105_v51 = vld [vmem:[%s1404_s1 + $0x118] sm:$0xff]  }
  0x11   :  { %966 = vmatpush3.bf16.msra.mxu1 %v1071_v15  ;;  %945 = vmatprep.subr.bf16.mxu0 %v1072_v16  ;;  %v1106_v52 = vld [vmem:[%s1404_s1 + $0x1d8] sm:$0xff]   ;;  %v1108_v54 = vld [vmem:[%s1404_s1 + $0x160] sm:$0xff]   ;;  %v1112_v58 = vld [vmem:[%s1404_s1 + $0x168] sm:$0xff]  }
  0x12   :  { %967 = vmatprep.subr.bf16.mxu1 %v1073_v17  ;;  %v1107_v53 = vld [vmem:[%s1404_s1 + $0x198] sm:$0xff]   ;;  %v1109_v55 = vld [vmem:[%s1404_s1 + $0x120] sm:$0xff]   ;;  %v1113_v59 = vld [vmem:[%s1404_s1 + $0x128] sm:$0xff]  }
  0x13   :  { %v1110_v56 = vld [vmem:[%s1404_s1 + $0x1e0] sm:$0xff]   ;;  %v1114_v60 = vld [vmem:[%s1404_s1 + $0x1e8] sm:$0xff]   ;;  %v1116_v62 = vld [vmem:[%s1404_s1 + $0x170] sm:$0xff]  }
  0x14   :  { %946 = vmatpush3.bf16.msra.mxu0 %v1074_v18  ;;  %v1111_v57 = vld [vmem:[%s1404_s1 + $0x1a0] sm:$0xff]   ;;  %v1115_v61 = vld [vmem:[%s1404_s1 + $0x1a8] sm:$0xff]   ;;  %v1117_v63 = vld [vmem:[%s1404_s1 + $0x130] sm:$0xff]  }
  0x15   :  { %968 = vmatpush3.bf16.msra.mxu1 %v1075_v19  ;;  %947 = vmatprep.subr.bf16.mxu0 %v1076_v20  ;;  %v1118_v0 = vld [vmem:[%s1404_s1 + $0x1f0] sm:$0xff]   ;;  %v1120_v2 = vld [vmem:[%s1404_s1 + $0x178] sm:$0xff]   ;;  %v1128_v12 = vld [vmem:[%s1404_s1 + $0x200] sm:$0xff]  }
  0x16   :  { %969 = vmatprep.subr.bf16.mxu1 %v1077_v21  ;;  %v1119_v1 = vld [vmem:[%s1404_s1 + $0x1b0] sm:$0xff]   ;;  %v1121_v3 = vld [vmem:[%s1404_s1 + $0x138] sm:$0xff]   ;;  %v1129_v14 = vld [vmem:[%s1404_s1 + $0x208] sm:$0xff]  }
  0x17   :  { %v1122_v4 = vld [vmem:[%s1404_s1 + $0x1f8] sm:$0xff]   ;;  %v20_v5 = vld [vmem:[%s1405_s0 + $0x10] sm:$0xff]  ;;  %v1132_v17 = vld [vmem:[%s1404_s1 + $0x220] sm:$0xff]  }
  0x18   :  { %948 = vmatpush3.bf16.msra.mxu0 %v1078_v22  ;;  %v859_v6 = vcombine.high %v20_v5, %v20_v5  ;;  %v1125_v7 = vld [vmem:[%s1404_s1 + $0x1b8] sm:$0xff]   ;;  %v858_v8 = vcombine.low %v20_v5, %v20_v5  ;;  %v1130_v15 = vld [vmem:[%s1404_s1 + $0x210] sm:$0xff]   ;;  %v1133_v18 = vld [vmem:[%s1404_s1 + $0x228] sm:$0xff]  }
  0x19   :  { %970 = vmatpush3.bf16.msra.mxu1 %v1079_v23  ;;  %949 = vmatprep.subr.bf16.mxu0 %v1080_v24  ;;  %v21_v9 = vld [vmem:[%s1405_s0 + $0x18] sm:$0xff]  ;;  %v1134_v19 = vld [vmem:[%s1404_s1 + $0x230] sm:$0xff]   ;;  %v1136_v21 = vld [vmem:[%s1405_s0 + $0x20] ss:$0 sps:$4 sm:$0xff]  }
  0x1a   :  { %971 = vmatprep.subr.bf16.mxu1 %v1081_v25  ;;  %v860_v10 = vcombine.low %v21_v9, %v21_v9  ;;  %v861_v11 = vcombine.high %v21_v9, %v21_v9  ;;  %v1131_v16 = vld [vmem:[%s1404_s1 + $0x218] sm:$0xff]  }
  0x1b   :  { %v1135_v20 = vld [vmem:[%s1404_s1 + $0x238] sm:$0xff]  }
  0x1c   :  { %950 = vmatpush3.bf16.msra.mxu0 %v1082_v26 }
  0x1d   :  { %972 = vmatpush3.bf16.msra.mxu1 %v1083_v27  ;;  %951 = vmatprep.subr.bf16.mxu0 %v1084_v28 }
  0x1e   :  { %973 = vmatprep.subr.bf16.mxu1 %v1085_v29 }
  0x20   :  { %952 = vmatpush3.bf16.msra.mxu0 %v1086_v30 }
  0x21   :  { %974 = vmatpush3.bf16.msra.mxu1 %v1087_v31  ;;  %981 = vmatprep.subr.bf16.mxu0 %v1092_v38 }
  0x22   :  { %1003 = vmatprep.subr.bf16.mxu1 %v1094_v40 }
  0x23   :  { %664 = vmatmul.mubr.bf16.vlgmr.msra.gmra.mrb[0].mxu0 %v854_v34 }
  0x24   :  { %704 = vmatmul.mubr.bf16.vlgmr.msra.gmra.mrb[0].mxu1 %v856_v36  ;;  %982 = vmatpush3.bf16.msra.mxu0 %v1093_v39 }
  0x25   :  { %1004 = vmatpush3.bf16.msra.mxu1 %v1095_v41  ;;  %983 = vmatprep.subr.bf16.mxu0 %v1096_v42 }
  0x26   :  { %1005 = vmatprep.subr.bf16.mxu1 %v1098_v44  ;;  %743 = vmatprep.mubr.bf16.mxu0 %v859_v6 }
  0x27   :  { %783 = vmatprep.mubr.bf16.mxu1 %v861_v11 }
  0x28   :  { %984 = vmatpush3.bf16.msra.mxu0 %v1097_v43 }
  0x29   :  { %1006 = vmatpush3.bf16.msra.mxu1 %v1099_v45  ;;  %985 = vmatprep.subr.bf16.mxu0 %v1100_v46  ;;  %v935_v46 = vld [vmem:[%s1406_s2] ss:$0 sm:$0xff] }
  0x2a   :  { %1007 = vmatprep.subr.bf16.mxu1 %v1102_v48 }
  0x2c   :  { %986 = vmatpush3.bf16.msra.mxu0 %v1101_v47 }
  0x2d   :  { %1008 = vmatpush3.bf16.msra.mxu1 %v1103_v49  ;;  %987 = vmatprep.subr.bf16.mxu0 %v1104_v50  ;;  %v936_v49 = vld [vmem:[%s1407_s3] ss:$0 sm:$0xff] }
  0x2e   :  { %1009 = vmatprep.subr.bf16.mxu1 %v1106_v52 }
  0x30   :  { %988 = vmatpush3.bf16.msra.mxu0 %v1105_v51 }
  0x31   :  { %1010 = vmatpush3.bf16.msra.mxu1 %v1107_v53  ;;  %989 = vmatprep.subr.bf16.mxu0 %v1108_v54 }
  0x32   :  { %1011 = vmatprep.subr.bf16.mxu1 %v1110_v56 }
  0x34   :  { %990 = vmatpush3.bf16.msra.mxu0 %v1109_v55 }
  0x35   :  { %1012 = vmatpush3.bf16.msra.mxu1 %v1111_v57  ;;  %991 = vmatprep.subr.bf16.mxu0 %v1112_v58 }
  0x36   :  { %1013 = vmatprep.subr.bf16.mxu1 %v1114_v60 }
  0x38   :  { %992 = vmatpush3.bf16.msra.mxu0 %v1113_v59 }
  0x39   :  { %1014 = vmatpush3.bf16.msra.mxu1 %v1115_v61  ;;  %993 = vmatprep.subr.bf16.mxu0 %v1116_v62 }
  0x3a   :  { %1015 = vmatprep.subr.bf16.mxu1 %v1118_v0 }
  0x3c   :  { %994 = vmatpush3.bf16.msra.mxu0 %v1117_v63 }
  0x3d   :  { %1016 = vmatpush3.bf16.msra.mxu1 %v1119_v1  ;;  %995 = vmatprep.subr.bf16.mxu0 %v1120_v2 }
  0x3e   :  { %1017 = vmatprep.subr.bf16.mxu1 %v1122_v4 }
  0x40   :  { %996 = vmatpush3.bf16.msra.mxu0 %v1121_v3 }
  0x41   :  { %1018 = vmatpush3.bf16.msra.mxu1 %v1125_v7  ;;  %1034 = vmatprep.subr.bf16.mxu0 %v1137_v13 }
  0x43   :  { %744 = vmatmul.mubr.bf16.vlgmr.msra.gmra.mrb[4].mxu0 %v858_v8 }
  0x44   :  { %1035 = vmatpush3.bf16.msra.mxu0 %v1128_v12  ;;  %784 = vmatmul.mubr.bf16.vlgmr.msra.gmra.mrb[4].mxu1 %v860_v10 }
  0x45   :  { %1036 = vmatprep.subr.bf16.mxu0 %v1137_v13  ;;  %1050 = vmatprep.mubr.msk.bf16.mxu0 %vm1138_vm0, %v1137_v13 }
  0x48   :  { %1037 = vmatpush3.bf16.msra.mxu0 %v1129_v14 }
  0x49   :  { %1038 = vmatprep.subr.bf16.mxu0 %v1137_v13 }
  0x4c   :  { %1039 = vmatpush3.bf16.msra.mxu0 %v1130_v15 }
  0x4d   :  { %1040 = vmatprep.subr.bf16.mxu0 %v1137_v13 }
  0x50   :  { %1041 = vmatpush3.bf16.msra.mxu0 %v1131_v16 }
  0x51   :  { %1042 = vmatprep.subr.bf16.mxu0 %v1137_v13 }
  0x54   :  { %1043 = vmatpush3.bf16.msra.mxu0 %v1132_v17 }
  0x55   :  { %1044 = vmatprep.subr.bf16.mxu0 %v1137_v13 }
  0x58   :  { %1045 = vmatpush3.bf16.msra.mxu0 %v1133_v18 }
  0x59   :  { %1046 = vmatprep.subr.bf16.mxu0 %v1137_v13 }
  0x5c   :  { %1047 = vmatpush3.bf16.msra.mxu0 %v1134_v19 }
  0x5d   :  { %1048 = vmatprep.subr.bf16.mxu0 %v1137_v13 }
  0x60   :  { %1049 = vmatpush3.bf16.msra.mxu0 %v1135_v20 }
  0x63   :  { %1051 = vmatmul.mubr.bf16.vlgmr.msra.gmra.mrb[8].mxu0 %v1136_v21 }
  0xf6   :  { %v953_v22 = vpop.f32.mrb[0].mxu0 }
  0xf7   :  { %v975_v23 = vpop.f32.mrb[0].mxu1  ;;  %v954_v24 = vpop.f32.mrb[1].mxu0 }
  0xf8   :  { %v976_v25 = vpop.f32.mrb[1].mxu1  ;;  %v955_v26 = vadd.f32 %v954_v24, %v953_v22  ;;  %v956_v28 = vpop.f32.mrb[2].mxu0 }
  0xf9   :  { %v977_v27 = vadd.f32 %v976_v25, %v975_v23  ;;  %v978_v29 = vpop.f32.mrb[2].mxu1  ;;  %v957_v30 = vpop.f32.mrb[3].mxu0 }
  0xfa   :  { %v979_v31 = vpop.f32.mrb[3].mxu1 }
  0xfb   :  { %v706_v32 = vadd.f32 %v977_v27, %v955_v26 }
 0x116   :  { %v997_v33 = vpop.f32.mrb[4].mxu0 }
 0x117   :  { %v998_v34 = vpop.f32.mrb[5].mxu0  ;;  %v1019_v35 = vpop.f32.mrb[4].mxu1 }
 0x118   :  { %v999_v36 = vadd.f32 %v998_v34, %v997_v33  ;;  %v1000_v37 = vpop.f32.mrb[6].mxu0  ;;  %v1020_v38 = vpop.f32.mrb[5].mxu1 }
 0x119   :  { %v1001_v39 = vpop.f32.mrb[7].mxu0  ;;  %v1021_v40 = vadd.f32 %v1020_v38, %v1019_v35  ;;  %v1022_v41 = vpop.f32.mrb[6].mxu1 }
 0x11a   :  { %v746_v42 = vadd.f32 %v999_v36, %v706_v32  ;;  %v1023_v43 = vpop.f32.mrb[7].mxu1 }
 0x11c   :  { %v786_v44 = vadd.f32 %v1021_v40, %v746_v42 }
 0x136   :  { %v825_v45 = vpop.f32.mrb[8].mxu0 }
 0x137   :  { %v826_v47 = vadd.f32 %v825_v45, %v786_v44  ;;  %v1052_v48 = vpop.f32.mrb[9].mxu0 }
 0x138   :  { %v828_v50 = vpop.f32.mrb[10].mxu0 }
 0x139   :  { %v838_v51 = vmul.f32 %v935_v46, %v826_v47  ;;  %v1053_v52 = vpop.f32.mrb[11].mxu0 }
 0x13b   :  { %v846_v53 = vadd.f32 %v936_v49, %v838_v51 }
 0x13d   :  { %v847_v54 = vmax.f32 %v846_v53, 0.0 }
 0x13f   :  { %v848_v55 = vpack.c.bf16 %v847_v54, %v847_v54 }
 0x141   :  { %849 = vst [vmem:[%s1408_s4] sm:$0xf] %v848_v55 }

// kernel: resnet_forward.33
= control target key start
LH: loop header
LB: loop body
LE: loop exit
PB: predicated region body
PF: predicated region fallthrough
CT: control target
= control target key end

     0   :  { %vm1144_vm0 = vmmov 0   ;;  %s1418_s1 = inlined_call_operand.vmem [shape: bf16[1152,128], index: 1, kind: input, shape index: {}]   ;;  %s1419_s0 = inlined_call_operand.vmem [shape: bf16[8,1152], index: 0, kind: input, shape index: {}]   ;;  %s1420_s2 = inlined_call_operand.vmem [shape: f32[1,128], index: 2, kind: input, shape index: {}]   ;;  %s1421_s4 = inlined_call_operand.vmem [shape: bf16[8,128], index: 4, kind: input, shape index: {}]   ;;  %s1422_s3 = inlined_call_operand.vmem [shape: f32[1,128], index: 3, kind: input, shape index: {}]   ;;  %s1423_s5 = inlined_call_operand.vmem [shape: bf16[8,128], index: 5, kind: output, shape index: {}]  }
   0x1   :  { %v1062_v0 = vld [vmem:[%s1418_s1 + $0x40] sm:$0xff]   ;;  %v1066_v4 = vld [vmem:[%s1418_s1 + $0x48] sm:$0xff]   ;;  %v1070_v8 = vld [vmem:[%s1418_s1 + $0x50] sm:$0xff]  }
   0x2   :  { %v1063_v1 = vld [vmem:[%s1418_s1 + $0xc0] sm:$0xff]   ;;  %943 = vmatprep.subr.bf16.mxu0 %v1062_v0  ;;  %v1067_v5 = vld [vmem:[%s1418_s1 + $0xc8] sm:$0xff]   ;;  %v1071_v9 = vld [vmem:[%s1418_s1 + $0xd0] sm:$0xff]  }
   0x3   :  { %v1064_v2 = vld [vmem:[%s1418_s1] sm:$0xff]   ;;  %965 = vmatprep.subr.bf16.mxu1 %v1063_v1  ;;  %v1068_v6 = vld [vmem:[%s1418_s1 + $0x8] sm:$0xff]   ;;  %v1072_v10 = vld [vmem:[%s1418_s1 + $0x10] sm:$0xff]  }
   0x4   :  { %v1065_v3 = vld [vmem:[%s1418_s1 + $0x80] sm:$0xff]   ;;  %944 = vmatpush3.bf16.msra.mxu0 %v1064_v2  ;;  %v1069_v7 = vld [vmem:[%s1418_s1 + $0x88] sm:$0xff]   ;;  %v1073_v11 = vld [vmem:[%s1418_s1 + $0x90] sm:$0xff]  }
   0x5   :  { %966 = vmatpush3.bf16.msra.mxu1 %v1065_v3  ;;  %945 = vmatprep.subr.bf16.mxu0 %v1066_v4  ;;  %v1074_v12 = vld [vmem:[%s1418_s1 + $0x58] sm:$0xff]   ;;  %v1078_v16 = vld [vmem:[%s1418_s1 + $0x60] sm:$0xff]   ;;  %v1082_v20 = vld [vmem:[%s1418_s1 + $0x68] sm:$0xff]  }
   0x6   :  { %967 = vmatprep.subr.bf16.mxu1 %v1067_v5  ;;  %v1075_v13 = vld [vmem:[%s1418_s1 + $0xd8] sm:$0xff]   ;;  %v1079_v17 = vld [vmem:[%s1418_s1 + $0xe0] sm:$0xff]   ;;  %v1083_v21 = vld [vmem:[%s1418_s1 + $0xe8] sm:$0xff]  }
   0x7   :  { %v1076_v14 = vld [vmem:[%s1418_s1 + $0x18] sm:$0xff]   ;;  %v1080_v18 = vld [vmem:[%s1418_s1 + $0x20] sm:$0xff]   ;;  %v1084_v22 = vld [vmem:[%s1418_s1 + $0x28] sm:$0xff]  }
   0x8   :  { %946 = vmatpush3.bf16.msra.mxu0 %v1068_v6  ;;  %v1077_v15 = vld [vmem:[%s1418_s1 + $0x98] sm:$0xff]   ;;  %v1081_v19 = vld [vmem:[%s1418_s1 + $0xa0] sm:$0xff]   ;;  %v1085_v23 = vld [vmem:[%s1418_s1 + $0xa8] sm:$0xff]  }
   0x9   :  { %968 = vmatpush3.bf16.msra.mxu1 %v1069_v7  ;;  %947 = vmatprep.subr.bf16.mxu0 %v1070_v8  ;;  %v1086_v24 = vld [vmem:[%s1418_s1 + $0x70] sm:$0xff]   ;;  %v1090_v28 = vld [vmem:[%s1418_s1 + $0x78] sm:$0xff]   ;;  %v21_v32 = vld [vmem:[%s1419_s0] sm:$0xff] }
   0xa   :  { %969 = vmatprep.subr.bf16.mxu1 %v1071_v9  ;;  %v1087_v25 = vld [vmem:[%s1418_s1 + $0xf0] sm:$0xff]   ;;  %v1091_v29 = vld [vmem:[%s1418_s1 + $0xf8] sm:$0xff]   ;;  %v22_v33 = vld [vmem:[%s1419_s0 + $0x8] sm:$0xff]  ;;  %v860_v34 = vcombine.low %v21_v32, %v21_v32  ;;  %v861_v35 = vcombine.high %v21_v32, %v21_v32 }
   0xb   :  { %v1088_v26 = vld [vmem:[%s1418_s1 + $0x30] sm:$0xff]   ;;  %v1092_v30 = vld [vmem:[%s1418_s1 + $0x38] sm:$0xff]   ;;  %v862_v36 = vcombine.low %v22_v33, %v22_v33  ;;  %v863_v37 = vcombine.high %v22_v33, %v22_v33  ;;  %v1098_v38 = vld [vmem:[%s1418_s1 + $0x140] sm:$0xff]  }
   0xc   :  { %948 = vmatpush3.bf16.msra.mxu0 %v1072_v10  ;;  %v1089_v27 = vld [vmem:[%s1418_s1 + $0xb0] sm:$0xff]   ;;  %v1093_v31 = vld [vmem:[%s1418_s1 + $0xb8] sm:$0xff]   ;;  %v1099_v39 = vld [vmem:[%s1418_s1 + $0x100] sm:$0xff]   ;;  %666 = vmatprep.mubr.bf16.mxu0 %v861_v35 }
   0xd   :  { %970 = vmatpush3.bf16.msra.mxu1 %v1073_v11  ;;  %949 = vmatprep.subr.bf16.mxu0 %v1074_v12  ;;  %v1100_v40 = vld [vmem:[%s1418_s1 + $0x1c0] sm:$0xff]   ;;  %v1102_v42 = vld [vmem:[%s1418_s1 + $0x148] sm:$0xff]   ;;  %v1106_v46 = vld [vmem:[%s1418_s1 + $0x150] sm:$0xff]  }
   0xe   :  { %971 = vmatprep.subr.bf16.mxu1 %v1075_v13  ;;  %706 = vmatprep.mubr.bf16.mxu1 %v863_v37  ;;  %v1101_v41 = vld [vmem:[%s1418_s1 + $0x180] sm:$0xff]   ;;  %v1103_v43 = vld [vmem:[%s1418_s1 + $0x108] sm:$0xff]   ;;  %v1107_v47 = vld [vmem:[%s1418_s1 + $0x110] sm:$0xff]   ;;  %v1143_v13 = vmov 0.0  }
   0xf   :  { %v1104_v44 = vld [vmem:[%s1418_s1 + $0x1c8] sm:$0xff]   ;;  %v1108_v48 = vld [vmem:[%s1418_s1 + $0x1d0] sm:$0xff]   ;;  %v1110_v50 = vld [vmem:[%s1418_s1 + $0x158] sm:$0xff]  }
  0x10   :  { %950 = vmatpush3.bf16.msra.mxu0 %v1076_v14  ;;  %v1105_v45 = vld [vmem:[%s1418_s1 + $0x188] sm:$0xff]   ;;  %v1109_v49 = vld [vmem:[%s1418_s1 + $0x190] sm:$0xff]   ;;  %v1111_v51 = vld [vmem:[%s1418_s1 + $0x118] sm:$0xff]  }
  0x11   :  { %972 = vmatpush3.bf16.msra.mxu1 %v1077_v15  ;;  %951 = vmatprep.subr.bf16.mxu0 %v1078_v16  ;;  %v1112_v52 = vld [vmem:[%s1418_s1 + $0x1d8] sm:$0xff]   ;;  %v1114_v54 = vld [vmem:[%s1418_s1 + $0x160] sm:$0xff]   ;;  %v1118_v58 = vld [vmem:[%s1418_s1 + $0x168] sm:$0xff]  }
  0x12   :  { %973 = vmatprep.subr.bf16.mxu1 %v1079_v17  ;;  %v1113_v53 = vld [vmem:[%s1418_s1 + $0x198] sm:$0xff]   ;;  %v1115_v55 = vld [vmem:[%s1418_s1 + $0x120] sm:$0xff]   ;;  %v1119_v59 = vld [vmem:[%s1418_s1 + $0x128] sm:$0xff]  }
  0x13   :  { %v1116_v56 = vld [vmem:[%s1418_s1 + $0x1e0] sm:$0xff]   ;;  %v1120_v60 = vld [vmem:[%s1418_s1 + $0x1e8] sm:$0xff]   ;;  %v1122_v62 = vld [vmem:[%s1418_s1 + $0x170] sm:$0xff]  }
  0x14   :  { %952 = vmatpush3.bf16.msra.mxu0 %v1080_v18  ;;  %v1117_v57 = vld [vmem:[%s1418_s1 + $0x1a0] sm:$0xff]   ;;  %v1121_v61 = vld [vmem:[%s1418_s1 + $0x1a8] sm:$0xff]   ;;  %v1123_v63 = vld [vmem:[%s1418_s1 + $0x130] sm:$0xff]  }
  0x15   :  { %974 = vmatpush3.bf16.msra.mxu1 %v1081_v19  ;;  %953 = vmatprep.subr.bf16.mxu0 %v1082_v20  ;;  %v1124_v0 = vld [vmem:[%s1418_s1 + $0x1f0] sm:$0xff]   ;;  %v1126_v2 = vld [vmem:[%s1418_s1 + $0x178] sm:$0xff]   ;;  %v1134_v12 = vld [vmem:[%s1418_s1 + $0x200] sm:$0xff]  }
  0x16   :  { %975 = vmatprep.subr.bf16.mxu1 %v1083_v21  ;;  %v1125_v1 = vld [vmem:[%s1418_s1 + $0x1b0] sm:$0xff]   ;;  %v1127_v3 = vld [vmem:[%s1418_s1 + $0x138] sm:$0xff]   ;;  %v1135_v14 = vld [vmem:[%s1418_s1 + $0x208] sm:$0xff]  }
  0x17   :  { %v1128_v4 = vld [vmem:[%s1418_s1 + $0x1f8] sm:$0xff]   ;;  %v23_v5 = vld [vmem:[%s1419_s0 + $0x10] sm:$0xff]  ;;  %v1138_v17 = vld [vmem:[%s1418_s1 + $0x220] sm:$0xff]  }
  0x18   :  { %954 = vmatpush3.bf16.msra.mxu0 %v1084_v22  ;;  %v865_v6 = vcombine.high %v23_v5, %v23_v5  ;;  %v1131_v7 = vld [vmem:[%s1418_s1 + $0x1b8] sm:$0xff]   ;;  %v864_v8 = vcombine.low %v23_v5, %v23_v5  ;;  %v1136_v15 = vld [vmem:[%s1418_s1 + $0x210] sm:$0xff]   ;;  %v1139_v18 = vld [vmem:[%s1418_s1 + $0x228] sm:$0xff]  }
  0x19   :  { %976 = vmatpush3.bf16.msra.mxu1 %v1085_v23  ;;  %955 = vmatprep.subr.bf16.mxu0 %v1086_v24  ;;  %v24_v9 = vld [vmem:[%s1419_s0 + $0x18] sm:$0xff]  ;;  %v1140_v19 = vld [vmem:[%s1418_s1 + $0x230] sm:$0xff]   ;;  %v1142_v21 = vld [vmem:[%s1419_s0 + $0x20] ss:$0 sps:$4 sm:$0xff]  }
  0x1a   :  { %977 = vmatprep.subr.bf16.mxu1 %v1087_v25  ;;  %v866_v10 = vcombine.low %v24_v9, %v24_v9  ;;  %v867_v11 = vcombine.high %v24_v9, %v24_v9  ;;  %v1137_v16 = vld [vmem:[%s1418_s1 + $0x218] sm:$0xff]  }
  0x1b   :  { %v1141_v20 = vld [vmem:[%s1418_s1 + $0x238] sm:$0xff]  }
  0x1c   :  { %956 = vmatpush3.bf16.msra.mxu0 %v1088_v26 }
  0x1d   :  { %978 = vmatpush3.bf16.msra.mxu1 %v1089_v27  ;;  %957 = vmatprep.subr.bf16.mxu0 %v1090_v28 }
  0x1e   :  { %979 = vmatprep.subr.bf16.mxu1 %v1091_v29 }
  0x20   :  { %958 = vmatpush3.bf16.msra.mxu0 %v1092_v30 }
  0x21   :  { %980 = vmatpush3.bf16.msra.mxu1 %v1093_v31  ;;  %987 = vmatprep.subr.bf16.mxu0 %v1098_v38 }
  0x22   :  { %1009 = vmatprep.subr.bf16.mxu1 %v1100_v40 }
  0x23   :  { %667 = vmatmul.mubr.bf16.vlgmr.msra.gmra.mrb[0].mxu0 %v860_v34 }
  0x24   :  { %707 = vmatmul.mubr.bf16.vlgmr.msra.gmra.mrb[0].mxu1 %v862_v36  ;;  %988 = vmatpush3.bf16.msra.mxu0 %v1099_v39 }
  0x25   :  { %1010 = vmatpush3.bf16.msra.mxu1 %v1101_v41  ;;  %989 = vmatprep.subr.bf16.mxu0 %v1102_v42 }
  0x26   :  { %1011 = vmatprep.subr.bf16.mxu1 %v1104_v44  ;;  %746 = vmatprep.mubr.bf16.mxu0 %v865_v6 }
  0x27   :  { %786 = vmatprep.mubr.bf16.mxu1 %v867_v11 }
  0x28   :  { %990 = vmatpush3.bf16.msra.mxu0 %v1103_v43 }
  0x29   :  { %1012 = vmatpush3.bf16.msra.mxu1 %v1105_v45  ;;  %991 = vmatprep.subr.bf16.mxu0 %v1106_v46  ;;  %v941_v46 = vld [vmem:[%s1420_s2] ss:$0 sm:$0xff] }
  0x2a   :  { %1013 = vmatprep.subr.bf16.mxu1 %v1108_v48 }
  0x2c   :  { %992 = vmatpush3.bf16.msra.mxu0 %v1107_v47  ;;  %v850_v47 = vld [vmem:[%s1421_s4] sm:$0xf] }
  0x2d   :  { %1014 = vmatpush3.bf16.msra.mxu1 %v1109_v49  ;;  %993 = vmatprep.subr.bf16.mxu0 %v1110_v50  ;;  %v942_v50 = vld [vmem:[%s1422_s3] ss:$0 sm:$0xff] }
  0x2e   :  { %1015 = vmatprep.subr.bf16.mxu1 %v1112_v52 }
  0x30   :  { %994 = vmatpush3.bf16.msra.mxu0 %v1111_v51 }
  0x31   :  { %1016 = vmatpush3.bf16.msra.mxu1 %v1113_v53  ;;  %995 = vmatprep.subr.bf16.mxu0 %v1114_v54  ;;  %v851_v53 = vunpack.c.l.bf16 %v850_v47 }
  0x32   :  { %1017 = vmatprep.subr.bf16.mxu1 %v1116_v56 }
  0x34   :  { %996 = vmatpush3.bf16.msra.mxu0 %v1115_v55 }
  0x35   :  { %1018 = vmatpush3.bf16.msra.mxu1 %v1117_v57  ;;  %997 = vmatprep.subr.bf16.mxu0 %v1118_v58 }
  0x36   :  { %1019 = vmatprep.subr.bf16.mxu1 %v1120_v60 }
  0x38   :  { %998 = vmatpush3.bf16.msra.mxu0 %v1119_v59 }
  0x39   :  { %1020 = vmatpush3.bf16.msra.mxu1 %v1121_v61  ;;  %999 = vmatprep.subr.bf16.mxu0 %v1122_v62 }
  0x3a   :  { %1021 = vmatprep.subr.bf16.mxu1 %v1124_v0 }
  0x3c   :  { %1000 = vmatpush3.bf16.msra.mxu0 %v1123_v63 }
  0x3d   :  { %1022 = vmatpush3.bf16.msra.mxu1 %v1125_v1  ;;  %1001 = vmatprep.subr.bf16.mxu0 %v1126_v2 }
  0x3e   :  { %1023 = vmatprep.subr.bf16.mxu1 %v1128_v4 }
  0x40   :  { %1002 = vmatpush3.bf16.msra.mxu0 %v1127_v3 }
  0x41   :  { %1024 = vmatpush3.bf16.msra.mxu1 %v1131_v7  ;;  %1040 = vmatprep.subr.bf16.mxu0 %v1143_v13 }
  0x43   :  { %747 = vmatmul.mubr.bf16.vlgmr.msra.gmra.mrb[4].mxu0 %v864_v8 }
  0x44   :  { %1041 = vmatpush3.bf16.msra.mxu0 %v1134_v12  ;;  %787 = vmatmul.mubr.bf16.vlgmr.msra.gmra.mrb[4].mxu1 %v866_v10 }
  0x45   :  { %1042 = vmatprep.subr.bf16.mxu0 %v1143_v13  ;;  %1056 = vmatprep.mubr.msk.bf16.mxu0 %vm1144_vm0, %v1143_v13 }
  0x48   :  { %1043 = vmatpush3.bf16.msra.mxu0 %v1135_v14 }
  0x49   :  { %1044 = vmatprep.subr.bf16.mxu0 %v1143_v13 }
  0x4c   :  { %1045 = vmatpush3.bf16.msra.mxu0 %v1136_v15 }
  0x4d   :  { %1046 = vmatprep.subr.bf16.mxu0 %v1143_v13 }
  0x50   :  { %1047 = vmatpush3.bf16.msra.mxu0 %v1137_v16 }
  0x51   :  { %1048 = vmatprep.subr.bf16.mxu0 %v1143_v13 }
  0x54   :  { %1049 = vmatpush3.bf16.msra.mxu0 %v1138_v17 }
  0x55   :  { %1050 = vmatprep.subr.bf16.mxu0 %v1143_v13 }
  0x58   :  { %1051 = vmatpush3.bf16.msra.mxu0 %v1139_v18 }
  0x59   :  { %1052 = vmatprep.subr.bf16.mxu0 %v1143_v13 }
  0x5c   :  { %1053 = vmatpush3.bf16.msra.mxu0 %v1140_v19 }
  0x5d   :  { %1054 = vmatprep.subr.bf16.mxu0 %v1143_v13 }
  0x60   :  { %1055 = vmatpush3.bf16.msra.mxu0 %v1141_v20 }
  0x63   :  { %1057 = vmatmul.mubr.bf16.vlgmr.msra.gmra.mrb[8].mxu0 %v1142_v21 }
  0xf6   :  { %v959_v22 = vpop.f32.mrb[0].mxu0 }
  0xf7   :  { %v981_v23 = vpop.f32.mrb[0].mxu1  ;;  %v960_v24 = vpop.f32.mrb[1].mxu0 }
  0xf8   :  { %v982_v25 = vpop.f32.mrb[1].mxu1  ;;  %v961_v26 = vadd.f32 %v960_v24, %v959_v22  ;;  %v962_v28 = vpop.f32.mrb[2].mxu0 }
  0xf9   :  { %v983_v27 = vadd.f32 %v982_v25, %v981_v23  ;;  %v984_v29 = vpop.f32.mrb[2].mxu1  ;;  %v963_v30 = vpop.f32.mrb[3].mxu0 }
  0xfa   :  { %v985_v31 = vpop.f32.mrb[3].mxu1 }
  0xfb   :  { %v709_v32 = vadd.f32 %v983_v27, %v961_v26 }
 0x116   :  { %v1003_v33 = vpop.f32.mrb[4].mxu0 }
 0x117   :  { %v1004_v34 = vpop.f32.mrb[5].mxu0  ;;  %v1025_v35 = vpop.f32.mrb[4].mxu1 }
 0x118   :  { %v1005_v36 = vadd.f32 %v1004_v34, %v1003_v33  ;;  %v1006_v37 = vpop.f32.mrb[6].mxu0  ;;  %v1026_v38 = vpop.f32.mrb[5].mxu1 }
 0x119   :  { %v1007_v39 = vpop.f32.mrb[7].mxu0  ;;  %v1027_v40 = vadd.f32 %v1026_v38, %v1025_v35  ;;  %v1028_v41 = vpop.f32.mrb[6].mxu1 }
 0x11a   :  { %v749_v42 = vadd.f32 %v1005_v36, %v709_v32  ;;  %v1029_v43 = vpop.f32.mrb[7].mxu1 }
 0x11c   :  { %v789_v44 = vadd.f32 %v1027_v40, %v749_v42 }
 0x136   :  { %v828_v45 = vpop.f32.mrb[8].mxu0 }
 0x137   :  { %v829_v48 = vadd.f32 %v828_v45, %v789_v44  ;;  %v1058_v49 = vpop.f32.mrb[9].mxu0 }
 0x138   :  { %v831_v51 = vpop.f32.mrb[10].mxu0 }
 0x139   :  { %v841_v52 = vmul.f32 %v941_v46, %v829_v48  ;;  %v1059_v54 = vpop.f32.mrb[11].mxu0 }
 0x13b   :  { %v849_v55 = vadd.f32 %v942_v50, %v841_v52 }
 0x13d   :  { %v852_v56 = vadd.f32 %v851_v53, %v849_v55 }
 0x13f   :  { %v853_v57 = vmax.f32 %v852_v56, 0.0 }
 0x141   :  { %v854_v58 = vpack.c.bf16 %v853_v57, %v853_v57 }
 0x143   :  { %855 = vst [vmem:[%s1423_s5] sm:$0xf] %v854_v58 }

// kernel: resnet_forward.41
= control target key start
LH: loop header
LB: loop body
LE: loop exit
PB: predicated region body
PF: predicated region fallthrough
CT: control target
= control target key end

     0   :  { %v247_v3 = vmov 0.0|0.0   ;;  %vm248_vm0 = vmmov 0   ;;  %v249_v6 = vmov 0.0   ;;  %s340_s0 = inlined_call_operand.vmem [shape: bf16[2,1,128], index: 0, kind: input, shape index: {}]   ;;  %s341_s1 = inlined_call_operand.vmem [shape: f32[128,128], index: 1, kind: input, shape index: {}]   ;;  %s342_s2 = inlined_call_operand.vmem [shape: f32[1,128], index: 2, kind: input, shape index: {}]   ;;  %s343_s3 = inlined_call_operand.hbm [shape: f32[2,128], index: 3, kind: output, shape index: {}]  }
   0x1   :  { %v21_v0 = vld [vmem:[%s341_s1] sm:$0xff]  ;;  %v22_v1 = vld [vmem:[%s341_s1 + $0x8] sm:$0xff]  ;;  %v23_v2 = vld [vmem:[%s341_s1 + $0x10] sm:$0xff]  ;;  %195 = vmatprep.subr.bf16.mxu0 %v247_v3  ;;  %192 = vmatprep.mubr.msk.f32.mxu0 %vm248_vm0, %v249_v6 }
   0x2   :  { %v196_v4 = vpack.c.bf16 %v22_v1, %v21_v0  ;;  %v24_v5 = vld [vmem:[%s341_s1 + $0x18] sm:$0xff]  ;;  %v25_v8 = vld [vmem:[%s341_s1 + $0x20] sm:$0xff]  ;;  %v26_v9 = vld [vmem:[%s341_s1 + $0x28] sm:$0xff] }
   0x3   :  { %v199_v7 = vpack.c.bf16 %v24_v5, %v23_v2 }
   0x4   :  { %197 = vmatpush3.bf16.msra.mxu0 %v196_v4 }
   0x5   :  { %198 = vmatprep.subr.bf16.mxu0 %v247_v3 }
   0x6   :  { %8 = vsyncpa [#allocation3], 0  ;;  %v202_v10 = vpack.c.bf16 %v26_v9, %v25_v8  ;;  %v27_v11 = vld [vmem:[%s341_s1 + $0x30] sm:$0xff]  ;;  %v28_v12 = vld [vmem:[%s341_s1 + $0x38] sm:$0xff]  ;;  %v46_v17 = vlaneseq  ;;  %vm54_vm1 = vcmask 1041409   ;;  %s250_s22 = smov [#allocation2]  }
   0x7   :  { %v205_v13 = vpack.c.bf16 %v28_v12, %v27_v11  ;;  %v29_v14 = vld [vmem:[%s341_s1 + $0x40] sm:$0xff]  ;;  %v30_v15 = vld [vmem:[%s341_s1 + $0x48] sm:$0xff]  ;;  %v31_v18 = vld [vmem:[%s341_s1 + $0x50] sm:$0xff]  ;;  %s134_s23 = sshll.u32 %s250_s22, 4  ;;  %s135_s23 = int_to_ptr.vmem [resolvable:$true] %s134_s23 }
   0x8   :  { %200 = vmatpush3.bf16.msra.mxu0 %v199_v7  ;;  %v208_v16 = vpack.c.bf16 %v30_v15, %v29_v14  ;;  %v32_v19 = vld [vmem:[%s341_s1 + $0x58] sm:$0xff]  ;;  %v33_v21 = vld [vmem:[%s341_s1 + $0x60] sm:$0xff]  ;;  %v47_v22 = vshrl.u32 %v46_v17, 7  ;;  %v34_v23 = vld [vmem:[%s341_s1 + $0x68] sm:$0xff]  ;;  %p228_p1 = scmp.lt.s32.totalorder %s135_s23, %s135_s23 }
   0x9   :  { %201 = vmatprep.subr.bf16.mxu0 %v247_v3  ;;  %v211_v20 = vpack.c.bf16 %v32_v19, %v31_v18  ;;  %v15_v24 = vld [vmem:[%s340_s0] sm:$0x1]  ;;  %v16_v25 = vld [vmem:[%s340_s0 + $0x1] sm:$0x1]  ;;  %v214_v26 = vpack.c.bf16 %v34_v23, %v33_v21  ;;  %v35_v30 = vld [vmem:[%s341_s1 + $0x70] sm:$0xff] }
   0xa   :  { %v17_v27 = vunpack.c.l.bf16 %v15_v24  ;;  %v18_v28 = vunpack.c.l.bf16 %v16_v25  ;;  %v48_v29 = vsub.s32 0, %v47_v22  ;;  %v36_v31 = vld [vmem:[%s341_s1 + $0x78] sm:$0xff]  ;;  %v142_v36 = vld [vmem:[%s342_s2] ss:$0 sm:$0xff]  ;;  %s223_s1 = scalar_lea.vmem %s135_s23, 32 }
   0xb   :  { %v217_v32 = vpack.c.bf16 %v36_v31, %v35_v30  ;;  %p224_p0 = scmp.ne.s32.totalorder %s135_s23, %s223_s1  ;;  %p229_p2 = scmp.lt.s32.totalorder %s223_s1, %s223_s1 }
   0xc   :  { %203 = vmatpush3.bf16.msra.mxu0 %v202_v10  ;;  %v49_v33 = vrot.slane %v17_v27, %v48_v29  ;;  %v53_v34 = vrot.slane %v18_v28, %v48_v29 }
   0xd   :  { %204 = vmatprep.subr.bf16.mxu0 %v247_v3  ;;  %p230_p3 = por %p229_p2, %p228_p1 }
   0xe   :  { %v55_v35 = vsel %vm54_vm1, %v53_v34, %v49_v33 }
   0xf   :  { %p231_p4 = pnand %p230_p3, %p224_p0 }
  0x10   :  { %206 = vmatpush3.bf16.msra.mxu0 %v205_v13 }
  0x11   :  { %207 = vmatprep.subr.bf16.mxu0 %v247_v3 }
  0x14   :  { %209 = vmatpush3.bf16.msra.mxu0 %v208_v16 }
  0x15   :  { %210 = vmatprep.subr.bf16.mxu0 %v247_v3 }
  0x18   :  { %212 = vmatpush3.bf16.msra.mxu0 %v211_v20 }
  0x19   :  { %213 = vmatprep.subr.bf16.mxu0 %v247_v3 }
  0x1c   :  { %215 = vmatpush3.bf16.msra.mxu0 %v214_v26 }
  0x1d   :  { %216 = vmatprep.subr.bf16.mxu0 %v247_v3 }
  0x20   :  { %218 = vmatpush3.bf16.msra.mxu0 %v217_v32 }
  0x23   :  { %193 = vmatmul.mubr.f32.vlgmr.msra.gmra.mrb[0].mxu0 %v55_v35 }
  0xf6   :  { %v123_v37 = vpop.f32.mrb[0].mxu0 }
  0xf7   :  { %v124_v38 = vadd.f32 %v142_v36, %v123_v37  ;;  %v194_v39 = vpop.f32.mrb[1].mxu0 }
  0xf9   :  { %127 = vst [vmem:[#allocation2] sm:$0x3] %v124_v38 }
  0xfa   :  { %234 = shalt.err (!%p231_p4)
}
  0xfb   :  { %s235_s26 = scalar_lea.hbm %s343_s3, 32 }
  0xfc   :  { %p236_p5 = scmp.ne.s32.totalorder %s343_s3, %s235_s26  ;;  %p239_p6 = scmp.lt.u32.totalorder %s235_s26, %s343_s3 }
  0xfe   :  { %p241_p7 = pnand %p239_p6, %p236_p5 }
 0x100   :  { %244 = shalt.err (!%p241_p7)
}
 0x101   :  { %137 = dma.vmem_to_hbm [thread:$0]  %s135_s23, 32, %s343_s3, [#allocation3]  }
 0x102   :  { %245 = dma.done.wait [#allocation3], 32  }
 0x103   :  { %246 = vsyncadd [#allocation3], 4294967264 }
 0x104   :  { %141 = vsyncpa [#allocation3], 1 }

</bundles_post_ra>
